<compile_context>
chip_gen: v7x
topology: tpu7x:2x2x1
jax: 0.10.0
libtpu: 0.0.40
codegen_flags: <defaults>
</compile_context>

<pallas_src>
import functools

import jax
import jax.numpy as jnp
from jax.experimental import pallas as pl
from jax.experimental.pallas import tpu as pltpu


def _deconv_relu_kernel(x_ref, w_ref, b_ref, o_ref, taps_ref, *,
                        cin, kh, kw, oh, w_lanes):
    """Grid = (batch, cout); one output-channel plane per step.

    x_ref   : (1, Cin, HD, W_IN)        VMEM  dilated + zero-padded input (f32)
    w_ref   : (Cout, Cin*KH*KW)         SMEM  flipped/transposed deconv weights
    b_ref   : (Cout,)                   SMEM  bias
    o_ref   : (1, 1, OH, W_LANES)       VMEM  lane-dense output slab
    taps_ref: (Cin*KH*KW, OH, W_LANES)  VMEM  scratch of shifted input views
    """
    co = pl.program_id(1)

    # Build the shifted views once per batch element (first cout step); the
    # scratch persists across the "arbitrary" cout grid axis.
    @pl.when(co == 0)
    def _():
        for ci in range(cin):
            for i in range(kh):
                for j in range(kw):
                    t = (ci * kh + i) * kw + j
                    taps_ref[t] = x_ref[0, ci, i:i + oh, j:j + w_lanes]

    # Scalar-weight MACs on lane-dense (OH, W_LANES) planes; f32 accumulator in
    # vregs, fused bias + ReLU, unmasked 128-lane stores.
    acc = jnp.zeros((oh, w_lanes), jnp.float32)
    for t in range(cin * kh * kw):
        acc = acc + w_ref[co, t] * taps_ref[t]
    o_ref[0, 0] = jnp.maximum(acc + b_ref[co], 0.0).astype(o_ref.dtype)


def _pair(v):
    return (v, v) if isinstance(v, int) else (int(v[0]), int(v[1]))


def deconv_relu(x, weight, bias, *, stride, padding=0):
    """relu(ConvTranspose2d(x)) matching nn.ConvTranspose2d(stride, padding).

    x      : (N, Cin, H, W)       NCHW (PyTorch layout, kept end-to-end)
    weight : (Cin, Cout, KH, KW)  PyTorch ConvTranspose2d weight layout
    bias   : (Cout,)
    """
    sh, sw = _pair(stride)
    ph, pw = _pair(padding)
    n, cin, h, w = x.shape
    cin2, cout, kh, kw = weight.shape
    assert cin == cin2

    oh = (h - 1) * sh - 2 * ph + kh
    ow = (w - 1) * sw - 2 * pw + kw
    w_lanes = pl.cdiv(ow, 128) * 128      # lane-dense output width
    hd = oh + kh - 1                      # dilated + padded input height
    w_in = w_lanes + kw - 1               # dilated + padded input width

    x = x.astype(jnp.float32)
    # One fused XLA pad: stride dilation (interior), ConvTranspose edge padding
    # (k-1-p), and the right lane padding, all in a single HBM pass.
    eh, ew = kh - 1 - ph, kw - 1 - pw
    x_dil = jax.lax.pad(
        x, jnp.zeros((), jnp.float32),
        ((0, 0, 0), (0, 0, 0),
         (eh, eh, sh - 1), (ew, ew + (w_lanes - ow), sw - 1)))
    assert x_dil.shape == (n, cin, hd, w_in), x_dil.shape

    # Equivalent regular-conv weights: swap in/out channels, flip spatially.
    w_conv = jnp.transpose(weight[:, :, ::-1, ::-1], (1, 0, 2, 3))
    w_flat = w_conv.reshape(cout, cin * kh * kw).astype(jnp.float32)
    b_vec = bias.astype(jnp.float32)

    kernel = functools.partial(_deconv_relu_kernel, cin=cin, kh=kh, kw=kw,
                               oh=oh, w_lanes=w_lanes)
    flops = 2 * n * oh * ow * kh * kw * cin * cout
    bytes_accessed = 4 * (x_dil.size + w_flat.size + b_vec.size
                          + n * cout * oh * w_lanes)

    out_padded = pl.pallas_call(
        kernel,
        out_shape=jax.ShapeDtypeStruct((n, cout, oh, w_lanes), jnp.float32),
        grid_spec=pltpu.PrefetchScalarGridSpec(
            num_scalar_prefetch=0,
            grid=(n, cout),
            in_specs=[
                pl.BlockSpec((1, cin, hd, w_in), lambda b, c: (b, 0, 0, 0)),
                pl.BlockSpec(memory_space=pltpu.MemorySpace.SMEM),
                pl.BlockSpec(memory_space=pltpu.MemorySpace.SMEM),
            ],
            out_specs=pl.BlockSpec((1, 1, oh, w_lanes),
                                   lambda b, c: (b, c, 0, 0)),
            scratch_shapes=[
                pltpu.VMEM((cin * kh * kw, oh, w_lanes), jnp.float32)],
        ),
        compiler_params=pltpu.CompilerParams(
            dimension_semantics=("parallel", "arbitrary")),
        cost_estimate=pl.CostEstimate(flops=flops, transcendentals=0,
                                      bytes_accessed=bytes_accessed),
    )(x_dil, w_flat, b_vec)

    # Drop the lane padding (no-op when OW is already a multiple of 128).
    return out_padded[:, :, :, :ow]


if __name__ == "__main__":
    # Deconv(inputs=4, outputs=8, kernel_size=3, stride=2, padding=1)
    N, CIN, COUT, H, W, K, S, P = 2, 4, 8, 16, 16, 3, 2, 1

    key = jax.random.PRNGKey(0)
    kx, kwt, kb = jax.random.split(key, 3)
    fan_in = COUT * K * K                 # PyTorch fan-in for ConvTranspose2d
    bound = float(fan_in) ** -0.5
    x = jax.random.normal(kx, (N, CIN, H, W), dtype=jnp.float32)
    weight = jax.random.uniform(kwt, (CIN, COUT, K, K),
                                minval=-bound, maxval=bound, dtype=jnp.float32)
    bias = jax.random.uniform(kb, (COUT,),
                              minval=-bound, maxval=bound, dtype=jnp.float32)

    fwd = jax.jit(functools.partial(deconv_relu, stride=S, padding=P))
    out = jax.block_until_ready(fwd(x, weight, bias))

    # Reference: direct scatter-form definition of ConvTranspose2d (+bias,ReLU),
    # independent of the dilate-and-convolve path used inside the kernel.
    OH = (H - 1) * S - 2 * P + K
    OW = (W - 1) * S - 2 * P + K
    full = jnp.zeros((N, COUT, (H - 1) * S + K, (W - 1) * S + K), jnp.float32)
    for i in range(K):
        for j in range(K):
            contrib = jnp.einsum("nchw,cd->ndhw", x, weight[:, :, i, j])
            full = full.at[:, :, i:i + (H - 1) * S + 1:S,
                           j:j + (W - 1) * S + 1:S].add(contrib)
    ref = jnp.maximum(full[:, :, P:P + OH, P:P + OW]
                      + bias[None, :, None, None], 0.0)

    assert out.shape == (N, COUT, OH, OW), out.shape
    max_err = float(jnp.max(jnp.abs(out - ref)))
    assert jnp.allclose(out, ref, atol=1e-5, rtol=1e-5), max_err
    print("KERNEL_OK")
</pallas_src>

<mosaic_0001>
module attributes {stable_mosaic.version = 11 : i64} {
  func.func @_deconv_relu_kernel(%arg0: i32, %arg1: i32, %arg2: memref<1x4x33x130xf32, #tpu.memory_space<vmem>>, %arg3: memref<8x36xf32, #tpu.memory_space<smem>>, %arg4: memref<8xf32, #tpu.memory_space<smem>>, %arg5: memref<1x1x31x128xf32, #tpu.memory_space<vmem>>, %arg6: memref<36x31x128xf32, #tpu.memory_space<vmem>>) attributes {dimension_semantics = [#tpu.dimension_semantics<parallel>, #tpu.dimension_semantics<arbitrary>], iteration_bounds = array<i64: 2, 8>, scalar_prefetch = 0 : i64, scratch_operands = 1 : i64, tpu.core_type = #tpu.core_type<tc>, window_params = [{transform_indices = @transform_0, window_bounds = array<i64: 1, 4, 33, 130>}, {transform_indices = @transform_1, window_bounds = array<i64: 8, 36>}, {transform_indices = @transform_2, window_bounds = array<i64: 8>}, {transform_indices = @transform_3, window_bounds = array<i64: 1, 1, 31, 128>}]} {
    %c0_i32 = arith.constant 0 : i32
    %0 = arith.cmpi eq, %arg1, %c0_i32 : i32
    %1 = arith.extui %0 : i1 to i32
    %c0_i32_0 = arith.constant 0 : i32
    %2 = arith.cmpi ne, %1, %c0_i32_0 : i32
    scf.if %2 {
      %c0_114 = arith.constant 0 : index
      %c0_115 = arith.constant 0 : index
      %c0_116 = arith.constant 0 : index
      %c0_117 = arith.constant 0 : index
      %265 = vector.load %arg2[%c0_114, %c0_115, %c0_116, %c0_117] : memref<1x4x33x130xf32, #tpu.memory_space<vmem>>, vector<1x1x31x128xf32>
      %266 = vector.shape_cast %265 : vector<1x1x31x128xf32> to vector<31x128xf32>
      %c0_118 = arith.constant 0 : index
      %c0_119 = arith.constant 0 : index
      %c0_120 = arith.constant 0 : index
      %267 = vector.load %arg6[%c0_118, %c0_119, %c0_120] : memref<36x31x128xf32, #tpu.memory_space<vmem>>, vector<1x31x128xf32>
      %268 = vector.shape_cast %267 : vector<1x31x128xf32> to vector<31x128xf32>
      %269 = vector.shape_cast %266 : vector<31x128xf32> to vector<1x31x128xf32>
      tpu.vector_store %arg6[%c0_118, %c0_119, %c0_120], %269 {strides = array<i32>} : memref<36x31x128xf32, #tpu.memory_space<vmem>>, vector<1x31x128xf32>,
      %c0_121 = arith.constant 0 : index
      %c0_122 = arith.constant 0 : index
      %c0_123 = arith.constant 0 : index
      %c1_124 = arith.constant 1 : index
      %270 = vector.load %arg2[%c0_121, %c0_122, %c0_123, %c1_124] : memref<1x4x33x130xf32, #tpu.memory_space<vmem>>, vector<1x1x31x128xf32>
      %271 = vector.shape_cast %270 : vector<1x1x31x128xf32> to vector<31x128xf32>
      %c1_125 = arith.constant 1 : index
      %c0_126 = arith.constant 0 : index
      %c0_127 = arith.constant 0 : index
      %272 = vector.load %arg6[%c1_125, %c0_126, %c0_127] : memref<36x31x128xf32, #tpu.memory_space<vmem>>, vector<1x31x128xf32>
      %273 = vector.shape_cast %272 : vector<1x31x128xf32> to vector<31x128xf32>
      %274 = vector.shape_cast %271 : vector<31x128xf32> to vector<1x31x128xf32>
      tpu.vector_store %arg6[%c1_125, %c0_126, %c0_127], %274 {strides = array<i32>} : memref<36x31x128xf32, #tpu.memory_space<vmem>>, vector<1x31x128xf32>,
      %c0_128 = arith.constant 0 : index
      %c0_129 = arith.constant 0 : index
      %c0_130 = arith.constant 0 : index
      %c2_131 = arith.constant 2 : index
      %275 = vector.load %arg2[%c0_128, %c0_129, %c0_130, %c2_131] : memref<1x4x33x130xf32, #tpu.memory_space<vmem>>, vector<1x1x31x128xf32>
      %276 = vector.shape_cast %275 : vector<1x1x31x128xf32> to vector<31x128xf32>
      %c2_132 = arith.constant 2 : index
      %c0_133 = arith.constant 0 : index
      %c0_134 = arith.constant 0 : index
      %277 = vector.load %arg6[%c2_132, %c0_133, %c0_134] : memref<36x31x128xf32, #tpu.memory_space<vmem>>, vector<1x31x128xf32>
      %278 = vector.shape_cast %277 : vector<1x31x128xf32> to vector<31x128xf32>
      %279 = vector.shape_cast %276 : vector<31x128xf32> to vector<1x31x128xf32>
      tpu.vector_store %arg6[%c2_132, %c0_133, %c0_134], %279 {strides = array<i32>} : memref<36x31x128xf32, #tpu.memory_space<vmem>>, vector<1x31x128xf32>,
      %c0_135 = arith.constant 0 : index
      %c0_136 = arith.constant 0 : index
      %c1_137 = arith.constant 1 : index
      %c0_138 = arith.constant 0 : index
      %280 = vector.load %arg2[%c0_135, %c0_136, %c1_137, %c0_138] : memref<1x4x33x130xf32, #tpu.memory_space<vmem>>, vector<1x1x31x128xf32>
      %281 = vector.shape_cast %280 : vector<1x1x31x128xf32> to vector<31x128xf32>
      %c3_139 = arith.constant 3 : index
      %c0_140 = arith.constant 0 : index
      %c0_141 = arith.constant 0 : index
      %282 = vector.load %arg6[%c3_139, %c0_140, %c0_141] : memref<36x31x128xf32, #tpu.memory_space<vmem>>, vector<1x31x128xf32>
      %283 = vector.shape_cast %282 : vector<1x31x128xf32> to vector<31x128xf32>
      %284 = vector.shape_cast %281 : vector<31x128xf32> to vector<1x31x128xf32>
      tpu.vector_store %arg6[%c3_139, %c0_140, %c0_141], %284 {strides = array<i32>} : memref<36x31x128xf32, #tpu.memory_space<vmem>>, vector<1x31x128xf32>,
      %c0_142 = arith.constant 0 : index
      %c0_143 = arith.constant 0 : index
      %c1_144 = arith.constant 1 : index
      %c1_145 = arith.constant 1 : index
      %285 = vector.load %arg2[%c0_142, %c0_143, %c1_144, %c1_145] : memref<1x4x33x130xf32, #tpu.memory_space<vmem>>, vector<1x1x31x128xf32>
      %286 = vector.shape_cast %285 : vector<1x1x31x128xf32> to vector<31x128xf32>
      %c4_146 = arith.constant 4 : index
      %c0_147 = arith.constant 0 : index
      %c0_148 = arith.constant 0 : index
      %287 = vector.load %arg6[%c4_146, %c0_147, %c0_148] : memref<36x31x128xf32, #tpu.memory_space<vmem>>, vector<1x31x128xf32>
      %288 = vector.shape_cast %287 : vector<1x31x128xf32> to vector<31x128xf32>
      %289 = vector.shape_cast %286 : vector<31x128xf32> to vector<1x31x128xf32>
      tpu.vector_store %arg6[%c4_146, %c0_147, %c0_148], %289 {strides = array<i32>} : memref<36x31x128xf32, #tpu.memory_space<vmem>>, vector<1x31x128xf32>,
      %c0_149 = arith.constant 0 : index
      %c0_150 = arith.constant 0 : index
      %c1_151 = arith.constant 1 : index
      %c2_152 = arith.constant 2 : index
      %290 = vector.load %arg2[%c0_149, %c0_150, %c1_151, %c2_152] : memref<1x4x33x130xf32, #tpu.memory_space<vmem>>, vector<1x1x31x128xf32>
      %291 = vector.shape_cast %290 : vector<1x1x31x128xf32> to vector<31x128xf32>
      %c5_153 = arith.constant 5 : index
      %c0_154 = arith.constant 0 : index
      %c0_155 = arith.constant 0 : index
      %292 = vector.load %arg6[%c5_153, %c0_154, %c0_155] : memref<36x31x128xf32, #tpu.memory_space<vmem>>, vector<1x31x128xf32>
      %293 = vector.shape_cast %292 : vector<1x31x128xf32> to vector<31x128xf32>
      %294 = vector.shape_cast %291 : vector<31x128xf32> to vector<1x31x128xf32>
      tpu.vector_store %arg6[%c5_153, %c0_154, %c0_155], %294 {strides = array<i32>} : memref<36x31x128xf32, #tpu.memory_space<vmem>>, vector<1x31x128xf32>,
      %c0_156 = arith.constant 0 : index
      %c0_157 = arith.constant 0 : index
      %c2_158 = arith.constant 2 : index
      %c0_159 = arith.constant 0 : index
      %295 = vector.load %arg2[%c0_156, %c0_157, %c2_158, %c0_159] : memref<1x4x33x130xf32, #tpu.memory_space<vmem>>, vector<1x1x31x128xf32>
      %296 = vector.shape_cast %295 : vector<1x1x31x128xf32> to vector<31x128xf32>
      %c6_160 = arith.constant 6 : index
      %c0_161 = arith.constant 0 : index
      %c0_162 = arith.constant 0 : index
      %297 = vector.load %arg6[%c6_160, %c0_161, %c0_162] : memref<36x31x128xf32, #tpu.memory_space<vmem>>, vector<1x31x128xf32>
      %298 = vector.shape_cast %297 : vector<1x31x128xf32> to vector<31x128xf32>
      %299 = vector.shape_cast %296 : vector<31x128xf32> to vector<1x31x128xf32>
      tpu.vector_store %arg6[%c6_160, %c0_161, %c0_162], %299 {strides = array<i32>} : memref<36x31x128xf32, #tpu.memory_space<vmem>>, vector<1x31x128xf32>,
      %c0_163 = arith.constant 0 : index
      %c0_164 = arith.constant 0 : index
      %c2_165 = arith.constant 2 : index
      %c1_166 = arith.constant 1 : index
      %300 = vector.load %arg2[%c0_163, %c0_164, %c2_165, %c1_166] : memref<1x4x33x130xf32, #tpu.memory_space<vmem>>, vector<1x1x31x128xf32>
      %301 = vector.shape_cast %300 : vector<1x1x31x128xf32> to vector<31x128xf32>
      %c7_167 = arith.constant 7 : index
      %c0_168 = arith.constant 0 : index
      %c0_169 = arith.constant 0 : index
      %302 = vector.load %arg6[%c7_167, %c0_168, %c0_169] : memref<36x31x128xf32, #tpu.memory_space<vmem>>, vector<1x31x128xf32>
      %303 = vector.shape_cast %302 : vector<1x31x128xf32> to vector<31x128xf32>
      %304 = vector.shape_cast %301 : vector<31x128xf32> to vector<1x31x128xf32>
      tpu.vector_store %arg6[%c7_167, %c0_168, %c0_169], %304 {strides = array<i32>} : memref<36x31x128xf32, #tpu.memory_space<vmem>>, vector<1x31x128xf32>,
      %c0_170 = arith.constant 0 : index
      %c0_171 = arith.constant 0 : index
      %c2_172 = arith.constant 2 : index
      %c2_173 = arith.constant 2 : index
      %305 = vector.load %arg2[%c0_170, %c0_171, %c2_172, %c2_173] : memref<1x4x33x130xf32, #tpu.memory_space<vmem>>, vector<1x1x31x128xf32>
      %306 = vector.shape_cast %305 : vector<1x1x31x128xf32> to vector<31x128xf32>
      %c8_174 = arith.constant 8 : index
      %c0_175 = arith.constant 0 : index
      %c0_176 = arith.constant 0 : index
      %307 = vector.load %arg6[%c8_174, %c0_175, %c0_176] : memref<36x31x128xf32, #tpu.memory_space<vmem>>, vector<1x31x128xf32>
      %308 = vector.shape_cast %307 : vector<1x31x128xf32> to vector<31x128xf32>
      %309 = vector.shape_cast %306 : vector<31x128xf32> to vector<1x31x128xf32>
      tpu.vector_store %arg6[%c8_174, %c0_175, %c0_176], %309 {strides = array<i32>} : memref<36x31x128xf32, #tpu.memory_space<vmem>>, vector<1x31x128xf32>,
      %c0_177 = arith.constant 0 : index
      %c1_178 = arith.constant 1 : index
      %c0_179 = arith.constant 0 : index
      %c0_180 = arith.constant 0 : index
      %310 = vector.load %arg2[%c0_177, %c1_178, %c0_179, %c0_180] : memref<1x4x33x130xf32, #tpu.memory_space<vmem>>, vector<1x1x31x128xf32>
      %311 = vector.shape_cast %310 : vector<1x1x31x128xf32> to vector<31x128xf32>
      %c9_181 = arith.constant 9 : index
      %c0_182 = arith.constant 0 : index
      %c0_183 = arith.constant 0 : index
      %312 = vector.load %arg6[%c9_181, %c0_182, %c0_183] : memref<36x31x128xf32, #tpu.memory_space<vmem>>, vector<1x31x128xf32>
      %313 = vector.shape_cast %312 : vector<1x31x128xf32> to vector<31x128xf32>
      %314 = vector.shape_cast %311 : vector<31x128xf32> to vector<1x31x128xf32>
      tpu.vector_store %arg6[%c9_181, %c0_182, %c0_183], %314 {strides = array<i32>} : memref<36x31x128xf32, #tpu.memory_space<vmem>>, vector<1x31x128xf32>,
      %c0_184 = arith.constant 0 : index
      %c1_185 = arith.constant 1 : index
      %c0_186 = arith.constant 0 : index
      %c1_187 = arith.constant 1 : index
      %315 = vector.load %arg2[%c0_184, %c1_185, %c0_186, %c1_187] : memref<1x4x33x130xf32, #tpu.memory_space<vmem>>, vector<1x1x31x128xf32>
      %316 = vector.shape_cast %315 : vector<1x1x31x128xf32> to vector<31x128xf32>
      %c10_188 = arith.constant 10 : index
      %c0_189 = arith.constant 0 : index
      %c0_190 = arith.constant 0 : index
      %317 = vector.load %arg6[%c10_188, %c0_189, %c0_190] : memref<36x31x128xf32, #tpu.memory_space<vmem>>, vector<1x31x128xf32>
      %318 = vector.shape_cast %317 : vector<1x31x128xf32> to vector<31x128xf32>
      %319 = vector.shape_cast %316 : vector<31x128xf32> to vector<1x31x128xf32>
      tpu.vector_store %arg6[%c10_188, %c0_189, %c0_190], %319 {strides = array<i32>} : memref<36x31x128xf32, #tpu.memory_space<vmem>>, vector<1x31x128xf32>,
      %c0_191 = arith.constant 0 : index
      %c1_192 = arith.constant 1 : index
      %c0_193 = arith.constant 0 : index
      %c2_194 = arith.constant 2 : index
      %320 = vector.load %arg2[%c0_191, %c1_192, %c0_193, %c2_194] : memref<1x4x33x130xf32, #tpu.memory_space<vmem>>, vector<1x1x31x128xf32>
      %321 = vector.shape_cast %320 : vector<1x1x31x128xf32> to vector<31x128xf32>
      %c11_195 = arith.constant 11 : index
      %c0_196 = arith.constant 0 : index
      %c0_197 = arith.constant 0 : index
      %322 = vector.load %arg6[%c11_195, %c0_196, %c0_197] : memref<36x31x128xf32, #tpu.memory_space<vmem>>, vector<1x31x128xf32>
      %323 = vector.shape_cast %322 : vector<1x31x128xf32> to vector<31x128xf32>
      %324 = vector.shape_cast %321 : vector<31x128xf32> to vector<1x31x128xf32>
      tpu.vector_store %arg6[%c11_195, %c0_196, %c0_197], %324 {strides = array<i32>} : memref<36x31x128xf32, #tpu.memory_space<vmem>>, vector<1x31x128xf32>,
      %c0_198 = arith.constant 0 : index
      %c1_199 = arith.constant 1 : index
      %c1_200 = arith.constant 1 : index
      %c0_201 = arith.constant 0 : index
      %325 = vector.load %arg2[%c0_198, %c1_199, %c1_200, %c0_201] : memref<1x4x33x130xf32, #tpu.memory_space<vmem>>, vector<1x1x31x128xf32>
      %326 = vector.shape_cast %325 : vector<1x1x31x128xf32> to vector<31x128xf32>
      %c12_202 = arith.constant 12 : index
      %c0_203 = arith.constant 0 : index
      %c0_204 = arith.constant 0 : index
      %327 = vector.load %arg6[%c12_202, %c0_203, %c0_204] : memref<36x31x128xf32, #tpu.memory_space<vmem>>, vector<1x31x128xf32>
      %328 = vector.shape_cast %327 : vector<1x31x128xf32> to vector<31x128xf32>
      %329 = vector.shape_cast %326 : vector<31x128xf32> to vector<1x31x128xf32>
      tpu.vector_store %arg6[%c12_202, %c0_203, %c0_204], %329 {strides = array<i32>} : memref<36x31x128xf32, #tpu.memory_space<vmem>>, vector<1x31x128xf32>,
      %c0_205 = arith.constant 0 : index
      %c1_206 = arith.constant 1 : index
      %c1_207 = arith.constant 1 : index
      %c1_208 = arith.constant 1 : index
      %330 = vector.load %arg2[%c0_205, %c1_206, %c1_207, %c1_208] : memref<1x4x33x130xf32, #tpu.memory_space<vmem>>, vector<1x1x31x128xf32>
      %331 = vector.shape_cast %330 : vector<1x1x31x128xf32> to vector<31x128xf32>
      %c13_209 = arith.constant 13 : index
      %c0_210 = arith.constant 0 : index
      %c0_211 = arith.constant 0 : index
      %332 = vector.load %arg6[%c13_209, %c0_210, %c0_211] : memref<36x31x128xf32, #tpu.memory_space<vmem>>, vector<1x31x128xf32>
      %333 = vector.shape_cast %332 : vector<1x31x128xf32> to vector<31x128xf32>
      %334 = vector.shape_cast %331 : vector<31x128xf32> to vector<1x31x128xf32>
      tpu.vector_store %arg6[%c13_209, %c0_210, %c0_211], %334 {strides = array<i32>} : memref<36x31x128xf32, #tpu.memory_space<vmem>>, vector<1x31x128xf32>,
      %c0_212 = arith.constant 0 : index
      %c1_213 = arith.constant 1 : index
      %c1_214 = arith.constant 1 : index
      %c2_215 = arith.constant 2 : index
      %335 = vector.load %arg2[%c0_212, %c1_213, %c1_214, %c2_215] : memref<1x4x33x130xf32, #tpu.memory_space<vmem>>, vector<1x1x31x128xf32>
      %336 = vector.shape_cast %335 : vector<1x1x31x128xf32> to vector<31x128xf32>
      %c14_216 = arith.constant 14 : index
      %c0_217 = arith.constant 0 : index
      %c0_218 = arith.constant 0 : index
      %337 = vector.load %arg6[%c14_216, %c0_217, %c0_218] : memref<36x31x128xf32, #tpu.memory_space<vmem>>, vector<1x31x128xf32>
      %338 = vector.shape_cast %337 : vector<1x31x128xf32> to vector<31x128xf32>
      %339 = vector.shape_cast %336 : vector<31x128xf32> to vector<1x31x128xf32>
      tpu.vector_store %arg6[%c14_216, %c0_217, %c0_218], %339 {strides = array<i32>} : memref<36x31x128xf32, #tpu.memory_space<vmem>>, vector<1x31x128xf32>,
      %c0_219 = arith.constant 0 : index
      %c1_220 = arith.constant 1 : index
      %c2_221 = arith.constant 2 : index
      %c0_222 = arith.constant 0 : index
      %340 = vector.load %arg2[%c0_219, %c1_220, %c2_221, %c0_222] : memref<1x4x33x130xf32, #tpu.memory_space<vmem>>, vector<1x1x31x128xf32>
      %341 = vector.shape_cast %340 : vector<1x1x31x128xf32> to vector<31x128xf32>
      %c15_223 = arith.constant 15 : index
      %c0_224 = arith.constant 0 : index
      %c0_225 = arith.constant 0 : index
      %342 = vector.load %arg6[%c15_223, %c0_224, %c0_225] : memref<36x31x128xf32, #tpu.memory_space<vmem>>, vector<1x31x128xf32>
      %343 = vector.shape_cast %342 : vector<1x31x128xf32> to vector<31x128xf32>
      %344 = vector.shape_cast %341 : vector<31x128xf32> to vector<1x31x128xf32>
      tpu.vector_store %arg6[%c15_223, %c0_224, %c0_225], %344 {strides = array<i32>} : memref<36x31x128xf32, #tpu.memory_space<vmem>>, vector<1x31x128xf32>,
      %c0_226 = arith.constant 0 : index
      %c1_227 = arith.constant 1 : index
      %c2_228 = arith.constant 2 : index
      %c1_229 = arith.constant 1 : index
      %345 = vector.load %arg2[%c0_226, %c1_227, %c2_228, %c1_229] : memref<1x4x33x130xf32, #tpu.memory_space<vmem>>, vector<1x1x31x128xf32>
      %346 = vector.shape_cast %345 : vector<1x1x31x128xf32> to vector<31x128xf32>
      %c16_230 = arith.constant 16 : index
      %c0_231 = arith.constant 0 : index
      %c0_232 = arith.constant 0 : index
      %347 = vector.load %arg6[%c16_230, %c0_231, %c0_232] : memref<36x31x128xf32, #tpu.memory_space<vmem>>, vector<1x31x128xf32>
      %348 = vector.shape_cast %347 : vector<1x31x128xf32> to vector<31x128xf32>
      %349 = vector.shape_cast %346 : vector<31x128xf32> to vector<1x31x128xf32>
      tpu.vector_store %arg6[%c16_230, %c0_231, %c0_232], %349 {strides = array<i32>} : memref<36x31x128xf32, #tpu.memory_space<vmem>>, vector<1x31x128xf32>,
      %c0_233 = arith.constant 0 : index
      %c1_234 = arith.constant 1 : index
      %c2_235 = arith.constant 2 : index
      %c2_236 = arith.constant 2 : index
      %350 = vector.load %arg2[%c0_233, %c1_234, %c2_235, %c2_236] : memref<1x4x33x130xf32, #tpu.memory_space<vmem>>, vector<1x1x31x128xf32>
      %351 = vector.shape_cast %350 : vector<1x1x31x128xf32> to vector<31x128xf32>
      %c17_237 = arith.constant 17 : index
      %c0_238 = arith.constant 0 : index
      %c0_239 = arith.constant 0 : index
      %352 = vector.load %arg6[%c17_237, %c0_238, %c0_239] : memref<36x31x128xf32, #tpu.memory_space<vmem>>, vector<1x31x128xf32>
      %353 = vector.shape_cast %352 : vector<1x31x128xf32> to vector<31x128xf32>
      %354 = vector.shape_cast %351 : vector<31x128xf32> to vector<1x31x128xf32>
      tpu.vector_store %arg6[%c17_237, %c0_238, %c0_239], %354 {strides = array<i32>} : memref<36x31x128xf32, #tpu.memory_space<vmem>>, vector<1x31x128xf32>,
      %c0_240 = arith.constant 0 : index
      %c2_241 = arith.constant 2 : index
      %c0_242 = arith.constant 0 : index
      %c0_243 = arith.constant 0 : index
      %355 = vector.load %arg2[%c0_240, %c2_241, %c0_242, %c0_243] : memref<1x4x33x130xf32, #tpu.memory_space<vmem>>, vector<1x1x31x128xf32>
      %356 = vector.shape_cast %355 : vector<1x1x31x128xf32> to vector<31x128xf32>
      %c18_244 = arith.constant 18 : index
      %c0_245 = arith.constant 0 : index
      %c0_246 = arith.constant 0 : index
      %357 = vector.load %arg6[%c18_244, %c0_245, %c0_246] : memref<36x31x128xf32, #tpu.memory_space<vmem>>, vector<1x31x128xf32>
      %358 = vector.shape_cast %357 : vector<1x31x128xf32> to vector<31x128xf32>
      %359 = vector.shape_cast %356 : vector<31x128xf32> to vector<1x31x128xf32>
      tpu.vector_store %arg6[%c18_244, %c0_245, %c0_246], %359 {strides = array<i32>} : memref<36x31x128xf32, #tpu.memory_space<vmem>>, vector<1x31x128xf32>,
      %c0_247 = arith.constant 0 : index
      %c2_248 = arith.constant 2 : index
      %c0_249 = arith.constant 0 : index
      %c1_250 = arith.constant 1 : index
      %360 = vector.load %arg2[%c0_247, %c2_248, %c0_249, %c1_250] : memref<1x4x33x130xf32, #tpu.memory_space<vmem>>, vector<1x1x31x128xf32>
      %361 = vector.shape_cast %360 : vector<1x1x31x128xf32> to vector<31x128xf32>
      %c19_251 = arith.constant 19 : index
      %c0_252 = arith.constant 0 : index
      %c0_253 = arith.constant 0 : index
      %362 = vector.load %arg6[%c19_251, %c0_252, %c0_253] : memref<36x31x128xf32, #tpu.memory_space<vmem>>, vector<1x31x128xf32>
      %363 = vector.shape_cast %362 : vector<1x31x128xf32> to vector<31x128xf32>
      %364 = vector.shape_cast %361 : vector<31x128xf32> to vector<1x31x128xf32>
      tpu.vector_store %arg6[%c19_251, %c0_252, %c0_253], %364 {strides = array<i32>} : memref<36x31x128xf32, #tpu.memory_space<vmem>>, vector<1x31x128xf32>,
      %c0_254 = arith.constant 0 : index
      %c2_255 = arith.constant 2 : index
      %c0_256 = arith.constant 0 : index
      %c2_257 = arith.constant 2 : index
      %365 = vector.load %arg2[%c0_254, %c2_255, %c0_256, %c2_257] : memref<1x4x33x130xf32, #tpu.memory_space<vmem>>, vector<1x1x31x128xf32>
      %366 = vector.shape_cast %365 : vector<1x1x31x128xf32> to vector<31x128xf32>
      %c20_258 = arith.constant 20 : index
      %c0_259 = arith.constant 0 : index
      %c0_260 = arith.constant 0 : index
      %367 = vector.load %arg6[%c20_258, %c0_259, %c0_260] : memref<36x31x128xf32, #tpu.memory_space<vmem>>, vector<1x31x128xf32>
      %368 = vector.shape_cast %367 : vector<1x31x128xf32> to vector<31x128xf32>
      %369 = vector.shape_cast %366 : vector<31x128xf32> to vector<1x31x128xf32>
      tpu.vector_store %arg6[%c20_258, %c0_259, %c0_260], %369 {strides = array<i32>} : memref<36x31x128xf32, #tpu.memory_space<vmem>>, vector<1x31x128xf32>,
      %c0_261 = arith.constant 0 : index
      %c2_262 = arith.constant 2 : index
      %c1_263 = arith.constant 1 : index
      %c0_264 = arith.constant 0 : index
      %370 = vector.load %arg2[%c0_261, %c2_262, %c1_263, %c0_264] : memref<1x4x33x130xf32, #tpu.memory_space<vmem>>, vector<1x1x31x128xf32>
      %371 = vector.shape_cast %370 : vector<1x1x31x128xf32> to vector<31x128xf32>
      %c21_265 = arith.constant 21 : index
      %c0_266 = arith.constant 0 : index
      %c0_267 = arith.constant 0 : index
      %372 = vector.load %arg6[%c21_265, %c0_266, %c0_267] : memref<36x31x128xf32, #tpu.memory_space<vmem>>, vector<1x31x128xf32>
      %373 = vector.shape_cast %372 : vector<1x31x128xf32> to vector<31x128xf32>
      %374 = vector.shape_cast %371 : vector<31x128xf32> to vector<1x31x128xf32>
      tpu.vector_store %arg6[%c21_265, %c0_266, %c0_267], %374 {strides = array<i32>} : memref<36x31x128xf32, #tpu.memory_space<vmem>>, vector<1x31x128xf32>,
      %c0_268 = arith.constant 0 : index
      %c2_269 = arith.constant 2 : index
      %c1_270 = arith.constant 1 : index
      %c1_271 = arith.constant 1 : index
      %375 = vector.load %arg2[%c0_268, %c2_269, %c1_270, %c1_271] : memref<1x4x33x130xf32, #tpu.memory_space<vmem>>, vector<1x1x31x128xf32>
      %376 = vector.shape_cast %375 : vector<1x1x31x128xf32> to vector<31x128xf32>
      %c22_272 = arith.constant 22 : index
      %c0_273 = arith.constant 0 : index
      %c0_274 = arith.constant 0 : index
      %377 = vector.load %arg6[%c22_272, %c0_273, %c0_274] : memref<36x31x128xf32, #tpu.memory_space<vmem>>, vector<1x31x128xf32>
      %378 = vector.shape_cast %377 : vector<1x31x128xf32> to vector<31x128xf32>
      %379 = vector.shape_cast %376 : vector<31x128xf32> to vector<1x31x128xf32>
      tpu.vector_store %arg6[%c22_272, %c0_273, %c0_274], %379 {strides = array<i32>} : memref<36x31x128xf32, #tpu.memory_space<vmem>>, vector<1x31x128xf32>,
      %c0_275 = arith.constant 0 : index
      %c2_276 = arith.constant 2 : index
      %c1_277 = arith.constant 1 : index
      %c2_278 = arith.constant 2 : index
      %380 = vector.load %arg2[%c0_275, %c2_276, %c1_277, %c2_278] : memref<1x4x33x130xf32, #tpu.memory_space<vmem>>, vector<1x1x31x128xf32>
      %381 = vector.shape_cast %380 : vector<1x1x31x128xf32> to vector<31x128xf32>
      %c23_279 = arith.constant 23 : index
      %c0_280 = arith.constant 0 : index
      %c0_281 = arith.constant 0 : index
      %382 = vector.load %arg6[%c23_279, %c0_280, %c0_281] : memref<36x31x128xf32, #tpu.memory_space<vmem>>, vector<1x31x128xf32>
      %383 = vector.shape_cast %382 : vector<1x31x128xf32> to vector<31x128xf32>
      %384 = vector.shape_cast %381 : vector<31x128xf32> to vector<1x31x128xf32>
      tpu.vector_store %arg6[%c23_279, %c0_280, %c0_281], %384 {strides = array<i32>} : memref<36x31x128xf32, #tpu.memory_space<vmem>>, vector<1x31x128xf32>,
      %c0_282 = arith.constant 0 : index
      %c2_283 = arith.constant 2 : index
      %c2_284 = arith.constant 2 : index
      %c0_285 = arith.constant 0 : index
      %385 = vector.load %arg2[%c0_282, %c2_283, %c2_284, %c0_285] : memref<1x4x33x130xf32, #tpu.memory_space<vmem>>, vector<1x1x31x128xf32>
      %386 = vector.shape_cast %385 : vector<1x1x31x128xf32> to vector<31x128xf32>
      %c24_286 = arith.constant 24 : index
      %c0_287 = arith.constant 0 : index
      %c0_288 = arith.constant 0 : index
      %387 = vector.load %arg6[%c24_286, %c0_287, %c0_288] : memref<36x31x128xf32, #tpu.memory_space<vmem>>, vector<1x31x128xf32>
      %388 = vector.shape_cast %387 : vector<1x31x128xf32> to vector<31x128xf32>
      %389 = vector.shape_cast %386 : vector<31x128xf32> to vector<1x31x128xf32>
      tpu.vector_store %arg6[%c24_286, %c0_287, %c0_288], %389 {strides = array<i32>} : memref<36x31x128xf32, #tpu.memory_space<vmem>>, vector<1x31x128xf32>,
      %c0_289 = arith.constant 0 : index
      %c2_290 = arith.constant 2 : index
      %c2_291 = arith.constant 2 : index
      %c1_292 = arith.constant 1 : index
      %390 = vector.load %arg2[%c0_289, %c2_290, %c2_291, %c1_292] : memref<1x4x33x130xf32, #tpu.memory_space<vmem>>, vector<1x1x31x128xf32>
      %391 = vector.shape_cast %390 : vector<1x1x31x128xf32> to vector<31x128xf32>
      %c25_293 = arith.constant 25 : index
      %c0_294 = arith.constant 0 : index
      %c0_295 = arith.constant 0 : index
      %392 = vector.load %arg6[%c25_293, %c0_294, %c0_295] : memref<36x31x128xf32, #tpu.memory_space<vmem>>, vector<1x31x128xf32>
      %393 = vector.shape_cast %392 : vector<1x31x128xf32> to vector<31x128xf32>
      %394 = vector.shape_cast %391 : vector<31x128xf32> to vector<1x31x128xf32>
      tpu.vector_store %arg6[%c25_293, %c0_294, %c0_295], %394 {strides = array<i32>} : memref<36x31x128xf32, #tpu.memory_space<vmem>>, vector<1x31x128xf32>,
      %c0_296 = arith.constant 0 : index
      %c2_297 = arith.constant 2 : index
      %c2_298 = arith.constant 2 : index
      %c2_299 = arith.constant 2 : index
      %395 = vector.load %arg2[%c0_296, %c2_297, %c2_298, %c2_299] : memref<1x4x33x130xf32, #tpu.memory_space<vmem>>, vector<1x1x31x128xf32>
      %396 = vector.shape_cast %395 : vector<1x1x31x128xf32> to vector<31x128xf32>
      %c26_300 = arith.constant 26 : index
      %c0_301 = arith.constant 0 : index
      %c0_302 = arith.constant 0 : index
      %397 = vector.load %arg6[%c26_300, %c0_301, %c0_302] : memref<36x31x128xf32, #tpu.memory_space<vmem>>, vector<1x31x128xf32>
      %398 = vector.shape_cast %397 : vector<1x31x128xf32> to vector<31x128xf32>
      %399 = vector.shape_cast %396 : vector<31x128xf32> to vector<1x31x128xf32>
      tpu.vector_store %arg6[%c26_300, %c0_301, %c0_302], %399 {strides = array<i32>} : memref<36x31x128xf32, #tpu.memory_space<vmem>>, vector<1x31x128xf32>,
      %c0_303 = arith.constant 0 : index
      %c3_304 = arith.constant 3 : index
      %c0_305 = arith.constant 0 : index
      %c0_306 = arith.constant 0 : index
      %400 = vector.load %arg2[%c0_303, %c3_304, %c0_305, %c0_306] : memref<1x4x33x130xf32, #tpu.memory_space<vmem>>, vector<1x1x31x128xf32>
      %401 = vector.shape_cast %400 : vector<1x1x31x128xf32> to vector<31x128xf32>
      %c27_307 = arith.constant 27 : index
      %c0_308 = arith.constant 0 : index
      %c0_309 = arith.constant 0 : index
      %402 = vector.load %arg6[%c27_307, %c0_308, %c0_309] : memref<36x31x128xf32, #tpu.memory_space<vmem>>, vector<1x31x128xf32>
      %403 = vector.shape_cast %402 : vector<1x31x128xf32> to vector<31x128xf32>
      %404 = vector.shape_cast %401 : vector<31x128xf32> to vector<1x31x128xf32>
      tpu.vector_store %arg6[%c27_307, %c0_308, %c0_309], %404 {strides = array<i32>} : memref<36x31x128xf32, #tpu.memory_space<vmem>>, vector<1x31x128xf32>,
      %c0_310 = arith.constant 0 : index
      %c3_311 = arith.constant 3 : index
      %c0_312 = arith.constant 0 : index
      %c1_313 = arith.constant 1 : index
      %405 = vector.load %arg2[%c0_310, %c3_311, %c0_312, %c1_313] : memref<1x4x33x130xf32, #tpu.memory_space<vmem>>, vector<1x1x31x128xf32>
      %406 = vector.shape_cast %405 : vector<1x1x31x128xf32> to vector<31x128xf32>
      %c28_314 = arith.constant 28 : index
      %c0_315 = arith.constant 0 : index
      %c0_316 = arith.constant 0 : index
      %407 = vector.load %arg6[%c28_314, %c0_315, %c0_316] : memref<36x31x128xf32, #tpu.memory_space<vmem>>, vector<1x31x128xf32>
      %408 = vector.shape_cast %407 : vector<1x31x128xf32> to vector<31x128xf32>
      %409 = vector.shape_cast %406 : vector<31x128xf32> to vector<1x31x128xf32>
      tpu.vector_store %arg6[%c28_314, %c0_315, %c0_316], %409 {strides = array<i32>} : memref<36x31x128xf32, #tpu.memory_space<vmem>>, vector<1x31x128xf32>,
      %c0_317 = arith.constant 0 : index
      %c3_318 = arith.constant 3 : index
      %c0_319 = arith.constant 0 : index
      %c2_320 = arith.constant 2 : index
      %410 = vector.load %arg2[%c0_317, %c3_318, %c0_319, %c2_320] : memref<1x4x33x130xf32, #tpu.memory_space<vmem>>, vector<1x1x31x128xf32>
      %411 = vector.shape_cast %410 : vector<1x1x31x128xf32> to vector<31x128xf32>
      %c29_321 = arith.constant 29 : index
      %c0_322 = arith.constant 0 : index
      %c0_323 = arith.constant 0 : index
      %412 = vector.load %arg6[%c29_321, %c0_322, %c0_323] : memref<36x31x128xf32, #tpu.memory_space<vmem>>, vector<1x31x128xf32>
      %413 = vector.shape_cast %412 : vector<1x31x128xf32> to vector<31x128xf32>
      %414 = vector.shape_cast %411 : vector<31x128xf32> to vector<1x31x128xf32>
      tpu.vector_store %arg6[%c29_321, %c0_322, %c0_323], %414 {strides = array<i32>} : memref<36x31x128xf32, #tpu.memory_space<vmem>>, vector<1x31x128xf32>,
      %c0_324 = arith.constant 0 : index
      %c3_325 = arith.constant 3 : index
      %c1_326 = arith.constant 1 : index
      %c0_327 = arith.constant 0 : index
      %415 = vector.load %arg2[%c0_324, %c3_325, %c1_326, %c0_327] : memref<1x4x33x130xf32, #tpu.memory_space<vmem>>, vector<1x1x31x128xf32>
      %416 = vector.shape_cast %415 : vector<1x1x31x128xf32> to vector<31x128xf32>
      %c30_328 = arith.constant 30 : index
      %c0_329 = arith.constant 0 : index
      %c0_330 = arith.constant 0 : index
      %417 = vector.load %arg6[%c30_328, %c0_329, %c0_330] : memref<36x31x128xf32, #tpu.memory_space<vmem>>, vector<1x31x128xf32>
      %418 = vector.shape_cast %417 : vector<1x31x128xf32> to vector<31x128xf32>
      %419 = vector.shape_cast %416 : vector<31x128xf32> to vector<1x31x128xf32>
      tpu.vector_store %arg6[%c30_328, %c0_329, %c0_330], %419 {strides = array<i32>} : memref<36x31x128xf32, #tpu.memory_space<vmem>>, vector<1x31x128xf32>,
      %c0_331 = arith.constant 0 : index
      %c3_332 = arith.constant 3 : index
      %c1_333 = arith.constant 1 : index
      %c1_334 = arith.constant 1 : index
      %420 = vector.load %arg2[%c0_331, %c3_332, %c1_333, %c1_334] : memref<1x4x33x130xf32, #tpu.memory_space<vmem>>, vector<1x1x31x128xf32>
      %421 = vector.shape_cast %420 : vector<1x1x31x128xf32> to vector<31x128xf32>
      %c31_335 = arith.constant 31 : index
      %c0_336 = arith.constant 0 : index
      %c0_337 = arith.constant 0 : index
      %422 = vector.load %arg6[%c31_335, %c0_336, %c0_337] : memref<36x31x128xf32, #tpu.memory_space<vmem>>, vector<1x31x128xf32>
      %423 = vector.shape_cast %422 : vector<1x31x128xf32> to vector<31x128xf32>
      %424 = vector.shape_cast %421 : vector<31x128xf32> to vector<1x31x128xf32>
      tpu.vector_store %arg6[%c31_335, %c0_336, %c0_337], %424 {strides = array<i32>} : memref<36x31x128xf32, #tpu.memory_space<vmem>>, vector<1x31x128xf32>,
      %c0_338 = arith.constant 0 : index
      %c3_339 = arith.constant 3 : index
      %c1_340 = arith.constant 1 : index
      %c2_341 = arith.constant 2 : index
      %425 = vector.load %arg2[%c0_338, %c3_339, %c1_340, %c2_341] : memref<1x4x33x130xf32, #tpu.memory_space<vmem>>, vector<1x1x31x128xf32>
      %426 = vector.shape_cast %425 : vector<1x1x31x128xf32> to vector<31x128xf32>
      %c32_342 = arith.constant 32 : index
      %c0_343 = arith.constant 0 : index
      %c0_344 = arith.constant 0 : index
      %427 = vector.load %arg6[%c32_342, %c0_343, %c0_344] : memref<36x31x128xf32, #tpu.memory_space<vmem>>, vector<1x31x128xf32>
      %428 = vector.shape_cast %427 : vector<1x31x128xf32> to vector<31x128xf32>
      %429 = vector.shape_cast %426 : vector<31x128xf32> to vector<1x31x128xf32>
      tpu.vector_store %arg6[%c32_342, %c0_343, %c0_344], %429 {strides = array<i32>} : memref<36x31x128xf32, #tpu.memory_space<vmem>>, vector<1x31x128xf32>,
      %c0_345 = arith.constant 0 : index
      %c3_346 = arith.constant 3 : index
      %c2_347 = arith.constant 2 : index
      %c0_348 = arith.constant 0 : index
      %430 = vector.load %arg2[%c0_345, %c3_346, %c2_347, %c0_348] : memref<1x4x33x130xf32, #tpu.memory_space<vmem>>, vector<1x1x31x128xf32>
      %431 = vector.shape_cast %430 : vector<1x1x31x128xf32> to vector<31x128xf32>
      %c33_349 = arith.constant 33 : index
      %c0_350 = arith.constant 0 : index
      %c0_351 = arith.constant 0 : index
      %432 = vector.load %arg6[%c33_349, %c0_350, %c0_351] : memref<36x31x128xf32, #tpu.memory_space<vmem>>, vector<1x31x128xf32>
      %433 = vector.shape_cast %432 : vector<1x31x128xf32> to vector<31x128xf32>
      %434 = vector.shape_cast %431 : vector<31x128xf32> to vector<1x31x128xf32>
      tpu.vector_store %arg6[%c33_349, %c0_350, %c0_351], %434 {strides = array<i32>} : memref<36x31x128xf32, #tpu.memory_space<vmem>>, vector<1x31x128xf32>,
      %c0_352 = arith.constant 0 : index
      %c3_353 = arith.constant 3 : index
      %c2_354 = arith.constant 2 : index
      %c1_355 = arith.constant 1 : index
      %435 = vector.load %arg2[%c0_352, %c3_353, %c2_354, %c1_355] : memref<1x4x33x130xf32, #tpu.memory_space<vmem>>, vector<1x1x31x128xf32>
      %436 = vector.shape_cast %435 : vector<1x1x31x128xf32> to vector<31x128xf32>
      %c34_356 = arith.constant 34 : index
      %c0_357 = arith.constant 0 : index
      %c0_358 = arith.constant 0 : index
      %437 = vector.load %arg6[%c34_356, %c0_357, %c0_358] : memref<36x31x128xf32, #tpu.memory_space<vmem>>, vector<1x31x128xf32>
      %438 = vector.shape_cast %437 : vector<1x31x128xf32> to vector<31x128xf32>
      %439 = vector.shape_cast %436 : vector<31x128xf32> to vector<1x31x128xf32>
      tpu.vector_store %arg6[%c34_356, %c0_357, %c0_358], %439 {strides = array<i32>} : memref<36x31x128xf32, #tpu.memory_space<vmem>>, vector<1x31x128xf32>,
      %c0_359 = arith.constant 0 : index
      %c3_360 = arith.constant 3 : index
      %c2_361 = arith.constant 2 : index
      %c2_362 = arith.constant 2 : index
      %440 = vector.load %arg2[%c0_359, %c3_360, %c2_361, %c2_362] : memref<1x4x33x130xf32, #tpu.memory_space<vmem>>, vector<1x1x31x128xf32>
      %441 = vector.shape_cast %440 : vector<1x1x31x128xf32> to vector<31x128xf32>
      %c35_363 = arith.constant 35 : index
      %c0_364 = arith.constant 0 : index
      %c0_365 = arith.constant 0 : index
      %442 = vector.load %arg6[%c35_363, %c0_364, %c0_365] : memref<36x31x128xf32, #tpu.memory_space<vmem>>, vector<1x31x128xf32>
      %443 = vector.shape_cast %442 : vector<1x31x128xf32> to vector<31x128xf32>
      %444 = vector.shape_cast %441 : vector<31x128xf32> to vector<1x31x128xf32>
      tpu.vector_store %arg6[%c35_363, %c0_364, %c0_365], %444 {strides = array<i32>} : memref<36x31x128xf32, #tpu.memory_space<vmem>>, vector<1x31x128xf32>,
    } else {
    }
    %cst = arith.constant 0.000000e+00 : f32
    %3 = vector.broadcast %cst : f32 to vector<31x128xf32>
    %4 = arith.index_cast %arg1 : i32 to index
    %c0 = arith.constant 0 : index
    %5 = memref.load %arg3[%4, %c0] : memref<8x36xf32, #tpu.memory_space<smem>>
    %c0_1 = arith.constant 0 : index
    %c0_2 = arith.constant 0 : index
    %c0_3 = arith.constant 0 : index
    %6 = vector.load %arg6[%c0_1, %c0_2, %c0_3] : memref<36x31x128xf32, #tpu.memory_space<vmem>>, vector<1x31x128xf32>
    %7 = vector.shape_cast %6 : vector<1x31x128xf32> to vector<31x128xf32>
    %8 = vector.broadcast %5 : f32 to vector<31x128xf32>
    %9 = arith.mulf %8, %7 : vector<31x128xf32>
    %10 = arith.addf %3, %9 : vector<31x128xf32>
    %11 = arith.index_cast %arg1 : i32 to index
    %c1 = arith.constant 1 : index
    %12 = memref.load %arg3[%11, %c1] : memref<8x36xf32, #tpu.memory_space<smem>>
    %c1_4 = arith.constant 1 : index
    %c0_5 = arith.constant 0 : index
    %c0_6 = arith.constant 0 : index
    %13 = vector.load %arg6[%c1_4, %c0_5, %c0_6] : memref<36x31x128xf32, #tpu.memory_space<vmem>>, vector<1x31x128xf32>
    %14 = vector.shape_cast %13 : vector<1x31x128xf32> to vector<31x128xf32>
    %15 = vector.broadcast %12 : f32 to vector<31x128xf32>
    %16 = arith.mulf %15, %14 : vector<31x128xf32>
    %17 = arith.addf %10, %16 : vector<31x128xf32>
    %18 = arith.index_cast %arg1 : i32 to index
    %c2 = arith.constant 2 : index
    %19 = memref.load %arg3[%18, %c2] : memref<8x36xf32, #tpu.memory_space<smem>>
    %c2_7 = arith.constant 2 : index
    %c0_8 = arith.constant 0 : index
    %c0_9 = arith.constant 0 : index
    %20 = vector.load %arg6[%c2_7, %c0_8, %c0_9] : memref<36x31x128xf32, #tpu.memory_space<vmem>>, vector<1x31x128xf32>
    %21 = vector.shape_cast %20 : vector<1x31x128xf32> to vector<31x128xf32>
    %22 = vector.broadcast %19 : f32 to vector<31x128xf32>
    %23 = arith.mulf %22, %21 : vector<31x128xf32>
    %24 = arith.addf %17, %23 : vector<31x128xf32>
    %25 = arith.index_cast %arg1 : i32 to index
    %c3 = arith.constant 3 : index
    %26 = memref.load %arg3[%25, %c3] : memref<8x36xf32, #tpu.memory_space<smem>>
    %c3_10 = arith.constant 3 : index
    %c0_11 = arith.constant 0 : index
    %c0_12 = arith.constant 0 : index
    %27 = vector.load %arg6[%c3_10, %c0_11, %c0_12] : memref<36x31x128xf32, #tpu.memory_space<vmem>>, vector<1x31x128xf32>
    %28 = vector.shape_cast %27 : vector<1x31x128xf32> to vector<31x128xf32>
    %29 = vector.broadcast %26 : f32 to vector<31x128xf32>
    %30 = arith.mulf %29, %28 : vector<31x128xf32>
    %31 = arith.addf %24, %30 : vector<31x128xf32>
    %32 = arith.index_cast %arg1 : i32 to index
    %c4 = arith.constant 4 : index
    %33 = memref.load %arg3[%32, %c4] : memref<8x36xf32, #tpu.memory_space<smem>>
    %c4_13 = arith.constant 4 : index
    %c0_14 = arith.constant 0 : index
    %c0_15 = arith.constant 0 : index
    %34 = vector.load %arg6[%c4_13, %c0_14, %c0_15] : memref<36x31x128xf32, #tpu.memory_space<vmem>>, vector<1x31x128xf32>
    %35 = vector.shape_cast %34 : vector<1x31x128xf32> to vector<31x128xf32>
    %36 = vector.broadcast %33 : f32 to vector<31x128xf32>
    %37 = arith.mulf %36, %35 : vector<31x128xf32>
    %38 = arith.addf %31, %37 : vector<31x128xf32>
    %39 = arith.index_cast %arg1 : i32 to index
    %c5 = arith.constant 5 : index
    %40 = memref.load %arg3[%39, %c5] : memref<8x36xf32, #tpu.memory_space<smem>>
    %c5_16 = arith.constant 5 : index
    %c0_17 = arith.constant 0 : index
    %c0_18 = arith.constant 0 : index
    %41 = vector.load %arg6[%c5_16, %c0_17, %c0_18] : memref<36x31x128xf32, #tpu.memory_space<vmem>>, vector<1x31x128xf32>
    %42 = vector.shape_cast %41 : vector<1x31x128xf32> to vector<31x128xf32>
    %43 = vector.broadcast %40 : f32 to vector<31x128xf32>
    %44 = arith.mulf %43, %42 : vector<31x128xf32>
    %45 = arith.addf %38, %44 : vector<31x128xf32>
    %46 = arith.index_cast %arg1 : i32 to index
    %c6 = arith.constant 6 : index
    %47 = memref.load %arg3[%46, %c6] : memref<8x36xf32, #tpu.memory_space<smem>>
    %c6_19 = arith.constant 6 : index
    %c0_20 = arith.constant 0 : index
    %c0_21 = arith.constant 0 : index
    %48 = vector.load %arg6[%c6_19, %c0_20, %c0_21] : memref<36x31x128xf32, #tpu.memory_space<vmem>>, vector<1x31x128xf32>
    %49 = vector.shape_cast %48 : vector<1x31x128xf32> to vector<31x128xf32>
    %50 = vector.broadcast %47 : f32 to vector<31x128xf32>
    %51 = arith.mulf %50, %49 : vector<31x128xf32>
    %52 = arith.addf %45, %51 : vector<31x128xf32>
    %53 = arith.index_cast %arg1 : i32 to index
    %c7 = arith.constant 7 : index
    %54 = memref.load %arg3[%53, %c7] : memref<8x36xf32, #tpu.memory_space<smem>>
    %c7_22 = arith.constant 7 : index
    %c0_23 = arith.constant 0 : index
    %c0_24 = arith.constant 0 : index
    %55 = vector.load %arg6[%c7_22, %c0_23, %c0_24] : memref<36x31x128xf32, #tpu.memory_space<vmem>>, vector<1x31x128xf32>
    %56 = vector.shape_cast %55 : vector<1x31x128xf32> to vector<31x128xf32>
    %57 = vector.broadcast %54 : f32 to vector<31x128xf32>
    %58 = arith.mulf %57, %56 : vector<31x128xf32>
    %59 = arith.addf %52, %58 : vector<31x128xf32>
    %60 = arith.index_cast %arg1 : i32 to index
    %c8 = arith.constant 8 : index
    %61 = memref.load %arg3[%60, %c8] : memref<8x36xf32, #tpu.memory_space<smem>>
    %c8_25 = arith.constant 8 : index
    %c0_26 = arith.constant 0 : index
    %c0_27 = arith.constant 0 : index
    %62 = vector.load %arg6[%c8_25, %c0_26, %c0_27] : memref<36x31x128xf32, #tpu.memory_space<vmem>>, vector<1x31x128xf32>
    %63 = vector.shape_cast %62 : vector<1x31x128xf32> to vector<31x128xf32>
    %64 = vector.broadcast %61 : f32 to vector<31x128xf32>
    %65 = arith.mulf %64, %63 : vector<31x128xf32>
    %66 = arith.addf %59, %65 : vector<31x128xf32>
    %67 = arith.index_cast %arg1 : i32 to index
    %c9 = arith.constant 9 : index
    %68 = memref.load %arg3[%67, %c9] : memref<8x36xf32, #tpu.memory_space<smem>>
    %c9_28 = arith.constant 9 : index
    %c0_29 = arith.constant 0 : index
    %c0_30 = arith.constant 0 : index
    %69 = vector.load %arg6[%c9_28, %c0_29, %c0_30] : memref<36x31x128xf32, #tpu.memory_space<vmem>>, vector<1x31x128xf32>
    %70 = vector.shape_cast %69 : vector<1x31x128xf32> to vector<31x128xf32>
    %71 = vector.broadcast %68 : f32 to vector<31x128xf32>
    %72 = arith.mulf %71, %70 : vector<31x128xf32>
    %73 = arith.addf %66, %72 : vector<31x128xf32>
    %74 = arith.index_cast %arg1 : i32 to index
    %c10 = arith.constant 10 : index
    %75 = memref.load %arg3[%74, %c10] : memref<8x36xf32, #tpu.memory_space<smem>>
    %c10_31 = arith.constant 10 : index
    %c0_32 = arith.constant 0 : index
    %c0_33 = arith.constant 0 : index
    %76 = vector.load %arg6[%c10_31, %c0_32, %c0_33] : memref<36x31x128xf32, #tpu.memory_space<vmem>>, vector<1x31x128xf32>
    %77 = vector.shape_cast %76 : vector<1x31x128xf32> to vector<31x128xf32>
    %78 = vector.broadcast %75 : f32 to vector<31x128xf32>
    %79 = arith.mulf %78, %77 : vector<31x128xf32>
    %80 = arith.addf %73, %79 : vector<31x128xf32>
    %81 = arith.index_cast %arg1 : i32 to index
    %c11 = arith.constant 11 : index
    %82 = memref.load %arg3[%81, %c11] : memref<8x36xf32, #tpu.memory_space<smem>>
    %c11_34 = arith.constant 11 : index
    %c0_35 = arith.constant 0 : index
    %c0_36 = arith.constant 0 : index
    %83 = vector.load %arg6[%c11_34, %c0_35, %c0_36] : memref<36x31x128xf32, #tpu.memory_space<vmem>>, vector<1x31x128xf32>
    %84 = vector.shape_cast %83 : vector<1x31x128xf32> to vector<31x128xf32>
    %85 = vector.broadcast %82 : f32 to vector<31x128xf32>
    %86 = arith.mulf %85, %84 : vector<31x128xf32>
    %87 = arith.addf %80, %86 : vector<31x128xf32>
    %88 = arith.index_cast %arg1 : i32 to index
    %c12 = arith.constant 12 : index
    %89 = memref.load %arg3[%88, %c12] : memref<8x36xf32, #tpu.memory_space<smem>>
    %c12_37 = arith.constant 12 : index
    %c0_38 = arith.constant 0 : index
    %c0_39 = arith.constant 0 : index
    %90 = vector.load %arg6[%c12_37, %c0_38, %c0_39] : memref<36x31x128xf32, #tpu.memory_space<vmem>>, vector<1x31x128xf32>
    %91 = vector.shape_cast %90 : vector<1x31x128xf32> to vector<31x128xf32>
    %92 = vector.broadcast %89 : f32 to vector<31x128xf32>
    %93 = arith.mulf %92, %91 : vector<31x128xf32>
    %94 = arith.addf %87, %93 : vector<31x128xf32>
    %95 = arith.index_cast %arg1 : i32 to index
    %c13 = arith.constant 13 : index
    %96 = memref.load %arg3[%95, %c13] : memref<8x36xf32, #tpu.memory_space<smem>>
    %c13_40 = arith.constant 13 : index
    %c0_41 = arith.constant 0 : index
    %c0_42 = arith.constant 0 : index
    %97 = vector.load %arg6[%c13_40, %c0_41, %c0_42] : memref<36x31x128xf32, #tpu.memory_space<vmem>>, vector<1x31x128xf32>
    %98 = vector.shape_cast %97 : vector<1x31x128xf32> to vector<31x128xf32>
    %99 = vector.broadcast %96 : f32 to vector<31x128xf32>
    %100 = arith.mulf %99, %98 : vector<31x128xf32>
    %101 = arith.addf %94, %100 : vector<31x128xf32>
    %102 = arith.index_cast %arg1 : i32 to index
    %c14 = arith.constant 14 : index
    %103 = memref.load %arg3[%102, %c14] : memref<8x36xf32, #tpu.memory_space<smem>>
    %c14_43 = arith.constant 14 : index
    %c0_44 = arith.constant 0 : index
    %c0_45 = arith.constant 0 : index
    %104 = vector.load %arg6[%c14_43, %c0_44, %c0_45] : memref<36x31x128xf32, #tpu.memory_space<vmem>>, vector<1x31x128xf32>
    %105 = vector.shape_cast %104 : vector<1x31x128xf32> to vector<31x128xf32>
    %106 = vector.broadcast %103 : f32 to vector<31x128xf32>
    %107 = arith.mulf %106, %105 : vector<31x128xf32>
    %108 = arith.addf %101, %107 : vector<31x128xf32>
    %109 = arith.index_cast %arg1 : i32 to index
    %c15 = arith.constant 15 : index
    %110 = memref.load %arg3[%109, %c15] : memref<8x36xf32, #tpu.memory_space<smem>>
    %c15_46 = arith.constant 15 : index
    %c0_47 = arith.constant 0 : index
    %c0_48 = arith.constant 0 : index
    %111 = vector.load %arg6[%c15_46, %c0_47, %c0_48] : memref<36x31x128xf32, #tpu.memory_space<vmem>>, vector<1x31x128xf32>
    %112 = vector.shape_cast %111 : vector<1x31x128xf32> to vector<31x128xf32>
    %113 = vector.broadcast %110 : f32 to vector<31x128xf32>
    %114 = arith.mulf %113, %112 : vector<31x128xf32>
    %115 = arith.addf %108, %114 : vector<31x128xf32>
    %116 = arith.index_cast %arg1 : i32 to index
    %c16 = arith.constant 16 : index
    %117 = memref.load %arg3[%116, %c16] : memref<8x36xf32, #tpu.memory_space<smem>>
    %c16_49 = arith.constant 16 : index
    %c0_50 = arith.constant 0 : index
    %c0_51 = arith.constant 0 : index
    %118 = vector.load %arg6[%c16_49, %c0_50, %c0_51] : memref<36x31x128xf32, #tpu.memory_space<vmem>>, vector<1x31x128xf32>
    %119 = vector.shape_cast %118 : vector<1x31x128xf32> to vector<31x128xf32>
    %120 = vector.broadcast %117 : f32 to vector<31x128xf32>
    %121 = arith.mulf %120, %119 : vector<31x128xf32>
    %122 = arith.addf %115, %121 : vector<31x128xf32>
    %123 = arith.index_cast %arg1 : i32 to index
    %c17 = arith.constant 17 : index
    %124 = memref.load %arg3[%123, %c17] : memref<8x36xf32, #tpu.memory_space<smem>>
    %c17_52 = arith.constant 17 : index
    %c0_53 = arith.constant 0 : index
    %c0_54 = arith.constant 0 : index
    %125 = vector.load %arg6[%c17_52, %c0_53, %c0_54] : memref<36x31x128xf32, #tpu.memory_space<vmem>>, vector<1x31x128xf32>
    %126 = vector.shape_cast %125 : vector<1x31x128xf32> to vector<31x128xf32>
    %127 = vector.broadcast %124 : f32 to vector<31x128xf32>
    %128 = arith.mulf %127, %126 : vector<31x128xf32>
    %129 = arith.addf %122, %128 : vector<31x128xf32>
    %130 = arith.index_cast %arg1 : i32 to index
    %c18 = arith.constant 18 : index
    %131 = memref.load %arg3[%130, %c18] : memref<8x36xf32, #tpu.memory_space<smem>>
    %c18_55 = arith.constant 18 : index
    %c0_56 = arith.constant 0 : index
    %c0_57 = arith.constant 0 : index
    %132 = vector.load %arg6[%c18_55, %c0_56, %c0_57] : memref<36x31x128xf32, #tpu.memory_space<vmem>>, vector<1x31x128xf32>
    %133 = vector.shape_cast %132 : vector<1x31x128xf32> to vector<31x128xf32>
    %134 = vector.broadcast %131 : f32 to vector<31x128xf32>
    %135 = arith.mulf %134, %133 : vector<31x128xf32>
    %136 = arith.addf %129, %135 : vector<31x128xf32>
    %137 = arith.index_cast %arg1 : i32 to index
    %c19 = arith.constant 19 : index
    %138 = memref.load %arg3[%137, %c19] : memref<8x36xf32, #tpu.memory_space<smem>>
    %c19_58 = arith.constant 19 : index
    %c0_59 = arith.constant 0 : index
    %c0_60 = arith.constant 0 : index
    %139 = vector.load %arg6[%c19_58, %c0_59, %c0_60] : memref<36x31x128xf32, #tpu.memory_space<vmem>>, vector<1x31x128xf32>
    %140 = vector.shape_cast %139 : vector<1x31x128xf32> to vector<31x128xf32>
    %141 = vector.broadcast %138 : f32 to vector<31x128xf32>
    %142 = arith.mulf %141, %140 : vector<31x128xf32>
    %143 = arith.addf %136, %142 : vector<31x128xf32>
    %144 = arith.index_cast %arg1 : i32 to index
    %c20 = arith.constant 20 : index
    %145 = memref.load %arg3[%144, %c20] : memref<8x36xf32, #tpu.memory_space<smem>>
    %c20_61 = arith.constant 20 : index
    %c0_62 = arith.constant 0 : index
    %c0_63 = arith.constant 0 : index
    %146 = vector.load %arg6[%c20_61, %c0_62, %c0_63] : memref<36x31x128xf32, #tpu.memory_space<vmem>>, vector<1x31x128xf32>
    %147 = vector.shape_cast %146 : vector<1x31x128xf32> to vector<31x128xf32>
    %148 = vector.broadcast %145 : f32 to vector<31x128xf32>
    %149 = arith.mulf %148, %147 : vector<31x128xf32>
    %150 = arith.addf %143, %149 : vector<31x128xf32>
    %151 = arith.index_cast %arg1 : i32 to index
    %c21 = arith.constant 21 : index
    %152 = memref.load %arg3[%151, %c21] : memref<8x36xf32, #tpu.memory_space<smem>>
    %c21_64 = arith.constant 21 : index
    %c0_65 = arith.constant 0 : index
    %c0_66 = arith.constant 0 : index
    %153 = vector.load %arg6[%c21_64, %c0_65, %c0_66] : memref<36x31x128xf32, #tpu.memory_space<vmem>>, vector<1x31x128xf32>
    %154 = vector.shape_cast %153 : vector<1x31x128xf32> to vector<31x128xf32>
    %155 = vector.broadcast %152 : f32 to vector<31x128xf32>
    %156 = arith.mulf %155, %154 : vector<31x128xf32>
    %157 = arith.addf %150, %156 : vector<31x128xf32>
    %158 = arith.index_cast %arg1 : i32 to index
    %c22 = arith.constant 22 : index
    %159 = memref.load %arg3[%158, %c22] : memref<8x36xf32, #tpu.memory_space<smem>>
    %c22_67 = arith.constant 22 : index
    %c0_68 = arith.constant 0 : index
    %c0_69 = arith.constant 0 : index
    %160 = vector.load %arg6[%c22_67, %c0_68, %c0_69] : memref<36x31x128xf32, #tpu.memory_space<vmem>>, vector<1x31x128xf32>
    %161 = vector.shape_cast %160 : vector<1x31x128xf32> to vector<31x128xf32>
    %162 = vector.broadcast %159 : f32 to vector<31x128xf32>
    %163 = arith.mulf %162, %161 : vector<31x128xf32>
    %164 = arith.addf %157, %163 : vector<31x128xf32>
    %165 = arith.index_cast %arg1 : i32 to index
    %c23 = arith.constant 23 : index
    %166 = memref.load %arg3[%165, %c23] : memref<8x36xf32, #tpu.memory_space<smem>>
    %c23_70 = arith.constant 23 : index
    %c0_71 = arith.constant 0 : index
    %c0_72 = arith.constant 0 : index
    %167 = vector.load %arg6[%c23_70, %c0_71, %c0_72] : memref<36x31x128xf32, #tpu.memory_space<vmem>>, vector<1x31x128xf32>
    %168 = vector.shape_cast %167 : vector<1x31x128xf32> to vector<31x128xf32>
    %169 = vector.broadcast %166 : f32 to vector<31x128xf32>
    %170 = arith.mulf %169, %168 : vector<31x128xf32>
    %171 = arith.addf %164, %170 : vector<31x128xf32>
    %172 = arith.index_cast %arg1 : i32 to index
    %c24 = arith.constant 24 : index
    %173 = memref.load %arg3[%172, %c24] : memref<8x36xf32, #tpu.memory_space<smem>>
    %c24_73 = arith.constant 24 : index
    %c0_74 = arith.constant 0 : index
    %c0_75 = arith.constant 0 : index
    %174 = vector.load %arg6[%c24_73, %c0_74, %c0_75] : memref<36x31x128xf32, #tpu.memory_space<vmem>>, vector<1x31x128xf32>
    %175 = vector.shape_cast %174 : vector<1x31x128xf32> to vector<31x128xf32>
    %176 = vector.broadcast %173 : f32 to vector<31x128xf32>
    %177 = arith.mulf %176, %175 : vector<31x128xf32>
    %178 = arith.addf %171, %177 : vector<31x128xf32>
    %179 = arith.index_cast %arg1 : i32 to index
    %c25 = arith.constant 25 : index
    %180 = memref.load %arg3[%179, %c25] : memref<8x36xf32, #tpu.memory_space<smem>>
    %c25_76 = arith.constant 25 : index
    %c0_77 = arith.constant 0 : index
    %c0_78 = arith.constant 0 : index
    %181 = vector.load %arg6[%c25_76, %c0_77, %c0_78] : memref<36x31x128xf32, #tpu.memory_space<vmem>>, vector<1x31x128xf32>
    %182 = vector.shape_cast %181 : vector<1x31x128xf32> to vector<31x128xf32>
    %183 = vector.broadcast %180 : f32 to vector<31x128xf32>
    %184 = arith.mulf %183, %182 : vector<31x128xf32>
    %185 = arith.addf %178, %184 : vector<31x128xf32>
    %186 = arith.index_cast %arg1 : i32 to index
    %c26 = arith.constant 26 : index
    %187 = memref.load %arg3[%186, %c26] : memref<8x36xf32, #tpu.memory_space<smem>>
    %c26_79 = arith.constant 26 : index
    %c0_80 = arith.constant 0 : index
    %c0_81 = arith.constant 0 : index
    %188 = vector.load %arg6[%c26_79, %c0_80, %c0_81] : memref<36x31x128xf32, #tpu.memory_space<vmem>>, vector<1x31x128xf32>
    %189 = vector.shape_cast %188 : vector<1x31x128xf32> to vector<31x128xf32>
    %190 = vector.broadcast %187 : f32 to vector<31x128xf32>
    %191 = arith.mulf %190, %189 : vector<31x128xf32>
    %192 = arith.addf %185, %191 : vector<31x128xf32>
    %193 = arith.index_cast %arg1 : i32 to index
    %c27 = arith.constant 27 : index
    %194 = memref.load %arg3[%193, %c27] : memref<8x36xf32, #tpu.memory_space<smem>>
    %c27_82 = arith.constant 27 : index
    %c0_83 = arith.constant 0 : index
    %c0_84 = arith.constant 0 : index
    %195 = vector.load %arg6[%c27_82, %c0_83, %c0_84] : memref<36x31x128xf32, #tpu.memory_space<vmem>>, vector<1x31x128xf32>
    %196 = vector.shape_cast %195 : vector<1x31x128xf32> to vector<31x128xf32>
    %197 = vector.broadcast %194 : f32 to vector<31x128xf32>
    %198 = arith.mulf %197, %196 : vector<31x128xf32>
    %199 = arith.addf %192, %198 : vector<31x128xf32>
    %200 = arith.index_cast %arg1 : i32 to index
    %c28 = arith.constant 28 : index
    %201 = memref.load %arg3[%200, %c28] : memref<8x36xf32, #tpu.memory_space<smem>>
    %c28_85 = arith.constant 28 : index
    %c0_86 = arith.constant 0 : index
    %c0_87 = arith.constant 0 : index
    %202 = vector.load %arg6[%c28_85, %c0_86, %c0_87] : memref<36x31x128xf32, #tpu.memory_space<vmem>>, vector<1x31x128xf32>
    %203 = vector.shape_cast %202 : vector<1x31x128xf32> to vector<31x128xf32>
    %204 = vector.broadcast %201 : f32 to vector<31x128xf32>
    %205 = arith.mulf %204, %203 : vector<31x128xf32>
    %206 = arith.addf %199, %205 : vector<31x128xf32>
    %207 = arith.index_cast %arg1 : i32 to index
    %c29 = arith.constant 29 : index
    %208 = memref.load %arg3[%207, %c29] : memref<8x36xf32, #tpu.memory_space<smem>>
    %c29_88 = arith.constant 29 : index
    %c0_89 = arith.constant 0 : index
    %c0_90 = arith.constant 0 : index
    %209 = vector.load %arg6[%c29_88, %c0_89, %c0_90] : memref<36x31x128xf32, #tpu.memory_space<vmem>>, vector<1x31x128xf32>
    %210 = vector.shape_cast %209 : vector<1x31x128xf32> to vector<31x128xf32>
    %211 = vector.broadcast %208 : f32 to vector<31x128xf32>
    %212 = arith.mulf %211, %210 : vector<31x128xf32>
    %213 = arith.addf %206, %212 : vector<31x128xf32>
    %214 = arith.index_cast %arg1 : i32 to index
    %c30 = arith.constant 30 : index
    %215 = memref.load %arg3[%214, %c30] : memref<8x36xf32, #tpu.memory_space<smem>>
    %c30_91 = arith.constant 30 : index
    %c0_92 = arith.constant 0 : index
    %c0_93 = arith.constant 0 : index
    %216 = vector.load %arg6[%c30_91, %c0_92, %c0_93] : memref<36x31x128xf32, #tpu.memory_space<vmem>>, vector<1x31x128xf32>
    %217 = vector.shape_cast %216 : vector<1x31x128xf32> to vector<31x128xf32>
    %218 = vector.broadcast %215 : f32 to vector<31x128xf32>
    %219 = arith.mulf %218, %217 : vector<31x128xf32>
    %220 = arith.addf %213, %219 : vector<31x128xf32>
    %221 = arith.index_cast %arg1 : i32 to index
    %c31 = arith.constant 31 : index
    %222 = memref.load %arg3[%221, %c31] : memref<8x36xf32, #tpu.memory_space<smem>>
    %c31_94 = arith.constant 31 : index
    %c0_95 = arith.constant 0 : index
    %c0_96 = arith.constant 0 : index
    %223 = vector.load %arg6[%c31_94, %c0_95, %c0_96] : memref<36x31x128xf32, #tpu.memory_space<vmem>>, vector<1x31x128xf32>
    %224 = vector.shape_cast %223 : vector<1x31x128xf32> to vector<31x128xf32>
    %225 = vector.broadcast %222 : f32 to vector<31x128xf32>
    %226 = arith.mulf %225, %224 : vector<31x128xf32>
    %227 = arith.addf %220, %226 : vector<31x128xf32>
    %228 = arith.index_cast %arg1 : i32 to index
    %c32 = arith.constant 32 : index
    %229 = memref.load %arg3[%228, %c32] : memref<8x36xf32, #tpu.memory_space<smem>>
    %c32_97 = arith.constant 32 : index
    %c0_98 = arith.constant 0 : index
    %c0_99 = arith.constant 0 : index
    %230 = vector.load %arg6[%c32_97, %c0_98, %c0_99] : memref<36x31x128xf32, #tpu.memory_space<vmem>>, vector<1x31x128xf32>
    %231 = vector.shape_cast %230 : vector<1x31x128xf32> to vector<31x128xf32>
    %232 = vector.broadcast %229 : f32 to vector<31x128xf32>
    %233 = arith.mulf %232, %231 : vector<31x128xf32>
    %234 = arith.addf %227, %233 : vector<31x128xf32>
    %235 = arith.index_cast %arg1 : i32 to index
    %c33 = arith.constant 33 : index
    %236 = memref.load %arg3[%235, %c33] : memref<8x36xf32, #tpu.memory_space<smem>>
    %c33_100 = arith.constant 33 : index
    %c0_101 = arith.constant 0 : index
    %c0_102 = arith.constant 0 : index
    %237 = vector.load %arg6[%c33_100, %c0_101, %c0_102] : memref<36x31x128xf32, #tpu.memory_space<vmem>>, vector<1x31x128xf32>
    %238 = vector.shape_cast %237 : vector<1x31x128xf32> to vector<31x128xf32>
    %239 = vector.broadcast %236 : f32 to vector<31x128xf32>
    %240 = arith.mulf %239, %238 : vector<31x128xf32>
    %241 = arith.addf %234, %240 : vector<31x128xf32>
    %242 = arith.index_cast %arg1 : i32 to index
    %c34 = arith.constant 34 : index
    %243 = memref.load %arg3[%242, %c34] : memref<8x36xf32, #tpu.memory_space<smem>>
    %c34_103 = arith.constant 34 : index
    %c0_104 = arith.constant 0 : index
    %c0_105 = arith.constant 0 : index
    %244 = vector.load %arg6[%c34_103, %c0_104, %c0_105] : memref<36x31x128xf32, #tpu.memory_space<vmem>>, vector<1x31x128xf32>
    %245 = vector.shape_cast %244 : vector<1x31x128xf32> to vector<31x128xf32>
    %246 = vector.broadcast %243 : f32 to vector<31x128xf32>
    %247 = arith.mulf %246, %245 : vector<31x128xf32>
    %248 = arith.addf %241, %247 : vector<31x128xf32>
    %249 = arith.index_cast %arg1 : i32 to index
    %c35 = arith.constant 35 : index
    %250 = memref.load %arg3[%249, %c35] : memref<8x36xf32, #tpu.memory_space<smem>>
    %c35_106 = arith.constant 35 : index
    %c0_107 = arith.constant 0 : index
    %c0_108 = arith.constant 0 : index
    %251 = vector.load %arg6[%c35_106, %c0_107, %c0_108] : memref<36x31x128xf32, #tpu.memory_space<vmem>>, vector<1x31x128xf32>
    %252 = vector.shape_cast %251 : vector<1x31x128xf32> to vector<31x128xf32>
    %253 = vector.broadcast %250 : f32 to vector<31x128xf32>
    %254 = arith.mulf %253, %252 : vector<31x128xf32>
    %255 = arith.addf %248, %254 : vector<31x128xf32>
    %256 = arith.index_cast %arg1 : i32 to index
    %257 = memref.load %arg4[%256] : memref<8xf32, #tpu.memory_space<smem>>
    %258 = vector.broadcast %257 : f32 to vector<31x128xf32>
    %259 = arith.addf %255, %258 : vector<31x128xf32>
    %cst_109 = arith.constant 0.000000e+00 : f32
    %260 = vector.broadcast %cst_109 : f32 to vector<31x128xf32>
    %261 = arith.maximumf %259, %260 : vector<31x128xf32>
    %c0_110 = arith.constant 0 : index
    %c0_111 = arith.constant 0 : index
    %c0_112 = arith.constant 0 : index
    %c0_113 = arith.constant 0 : index
    %262 = vector.load %arg5[%c0_110, %c0_111, %c0_112, %c0_113] : memref<1x1x31x128xf32, #tpu.memory_space<vmem>>, vector<1x1x31x128xf32>
    %263 = vector.shape_cast %262 : vector<1x1x31x128xf32> to vector<31x128xf32>
    %264 = vector.shape_cast %261 : vector<31x128xf32> to vector<1x1x31x128xf32>
    tpu.vector_store %arg5[%c0_110, %c0_111, %c0_112, %c0_113], %264 {strides = array<i32>} : memref<1x1x31x128xf32, #tpu.memory_space<vmem>>, vector<1x1x31x128xf32>,
    return
  }
  func.func @transform_0(%arg0: i32, %arg1: i32) -> (i32, i32, i32, i32) {
    %c0_i32 = arith.constant 0 : i32
    %c0_i32_0 = arith.constant 0 : i32
    %c0_i32_1 = arith.constant 0 : i32
    %c0_i32_2 = arith.constant 0 : i32
    return %arg0, %c0_i32, %c0_i32_0, %c0_i32_1 : i32, i32, i32, i32
  }
  func.func @transform_1(%arg0: i32, %arg1: i32) -> (i32, i32) {
    %c0_i32 = arith.constant 0 : i32
    %c0_i32_0 = arith.constant 0 : i32
    %c0_i32_1 = arith.constant 0 : i32
    return %c0_i32, %c0_i32_0 : i32, i32
  }
  func.func @transform_2(%arg0: i32, %arg1: i32) -> i32 {
    %c0_i32 = arith.constant 0 : i32
    %c0_i32_0 = arith.constant 0 : i32
    return %c0_i32 : i32
  }
  func.func @transform_3(%arg0: i32, %arg1: i32) -> (i32, i32, i32, i32) {
    %c0_i32 = arith.constant 0 : i32
    %c0_i32_0 = arith.constant 0 : i32
    %c0_i32_1 = arith.constant 0 : i32
    return %arg0, %arg1, %c0_i32, %c0_i32_0 : i32, i32, i32, i32
  }
}

</mosaic_0001>

<bundles_post_ra>
// kernel: deconv_relu.1
= control target key start
LH: loop header
LB: loop body
LE: loop exit
PB: predicated region body
PF: predicated region fallthrough
CT: control target
= control target key end

     0   :  { %8 = vsyncpa [#allocation4], 0  ;;  %s3424_s0 = inlined_call_operand.vmem [shape: f32[2,4,33,130], index: 0, kind: input, shape index: {}]   ;;  %s3425_s1 = inlined_call_operand.vmem [shape: f32[8,36], index: 1, kind: input, shape index: {}]   ;;  %s3426_s2 = inlined_call_operand.vmem [shape: f32[8], index: 2, kind: input, shape index: {}]   ;;  %s3427_s3 = inlined_call_operand.vmem [shape: f32[2,8,31,128], index: 3, kind: output, shape index: {}]  }
   0x1   :  { %9 = vsyncpa [#allocation6], 0  ;;  %s2588_s12 = smov 0   ;;  %s2590_s13 = smov 0  }
   0x2   :  { %s2592_s14 = smov 0   ;;  %s2594_s15 = smov 0  }
   0x3   :  { %s2596_s16 = smov 0  }
   0x4 LB: > { %s2210_s17 = sadd.s32 4294967295, %s2562_s16   ;;  %s24_s18 = sadd.s32 1, %s2554_s14  ;;  %s2562_s16 = sphi %s2596_s16, %s15_s16   ;;  %s2558_s15 = sphi %s2594_s15, %s3439_s15   ;;  %s2554_s14 = sphi %s2592_s14, %s3438_s14   ;;  %s2550_s13 = sphi %s2590_s13, %s3437_s13   ;;  %s2546_s12 = sphi %s2588_s12, %s3436_s12  }
   0x5   : > { %p25_p0 = scmp.ge.s32.totalorder %s24_s18, 8  ;;  %s27_s19 = sadd.s32 1, %s2558_s15 }
   0x6   : > { %p2212_p1 = scmp.ge.s32.totalorder %s2562_s16, 1  ;;  %p128_p2 = scmp.lt.s32.totalorder %s2562_s16, 17 }
   0x7   : > { %s3441_s18 = smov (%p25_p0, %s24_s18), 0  ;;  %s3443_s19 = smov (!%p25_p0, %s27_s19), %s2558_s15 }
   0x8   : > { %p2621_p3 = pnand %p2212_p1, %p128_p2  ;;  %p29_p4 = scmp.ge.s32.totalorder %s3443_s19, 2 }
   0x9   : > { %p2625_p5 = scmp.eq.s32.totalorder %s2210_s17, 0  ;;  %s141_s24 = sshll.u32 %s3425_s1, 4  ;;  %s142_s24 = int_to_ptr.vmem [resolvable:$true] %s141_s24 }
   0xa   : > { %s3431_s20 = scalar_select %p2621_p3, 1, 0 }
   0xb   : > { %s3432_s21 = scalar_select %p2625_p5, 1, 0 }
   0xc   : > { %p2431_p6 = pneg %p2621_p3  ;;  %s3445_s19 = smov (%p29_p4, %s3443_s19), 0 }
   0xd   : > { %s152_s28 = sshll.u32 %s3426_s2, 4  ;;  %s2486_s29 = scalar_lea.vmem %s142_s24, 128  ;;  %s153_s28 = int_to_ptr.vmem [resolvable:$true] %s152_s28 }
   0xe   : > { %p2638_p7 = pnand %p2625_p5, %p2431_p6  ;;  %p2487_p8 = scmp.ne.s32.totalorder %s142_s24, %s2486_s29 }
   0xf   : > { %p2494_p12 = scmp.lt.s32.totalorder %s142_s24, %s142_s24  ;;  %p2495_p13 = scmp.lt.s32.totalorder %s2486_s29, %s2486_s29 }
  0x10   : > { %p2488_p9 = pneg %p2638_p7 }
  0x11   : > { %p2496_p0 = por %p2495_p13, %p2494_p12 }
  0x12   : > { %p2489_p10 = pnand %p2488_p9, %p2487_p8 }
  0x14   : > { %p2490_p11 = pneg %p2489_p10 }
  0x16   : > { %p2497_p1 = pnand %p2496_p0, %p2490_p11 }
  0x18   : > { %2500 = shalt.err (!%p2497_p1)
}
  0x19   : > { %s2564_s30 = smov [#allocation3]   ;;  %s2501_s4 = scalar_lea.vmem %s153_s28, 16 }
  0x1a   : > { %2434 = dma.vmem_to_smem (!%p2638_p7), %s142_s24, 128, %s2564_s30, [#allocation4]  }
  0x1b   : > { %p2502_p2 = scmp.ne.s32.totalorder %s153_s28, %s2501_s4  ;;  %p2509_p5 = scmp.lt.s32.totalorder %s153_s28, %s153_s28 }
  0x1c   : > { %p2510_p3 = scmp.lt.s32.totalorder %s2501_s4, %s2501_s4 }
  0x1d   : > { %p2504_p4 = pnand %p2502_p2, %p2488_p9 }
  0x1e   : > { %p2511_p8 = por %p2510_p3, %p2509_p5 }
  0x1f   : > { %p2505_p6 = pneg %p2504_p4 }
  0x21   : > { %p2512_p10 = pnand %p2511_p8, %p2505_p6 }
  0x23   : > { %2515 = shalt.err (!%p2512_p10)
}
  0x24   : > { %s2565_s5 = smov [#allocation5]   ;;  %p3434_p11 = scmp.ne.s32.totalorder %s3431_s20, 0 }
  0x25   : > { %2437 = dma.vmem_to_smem (!%p2638_p7), %s153_s28, 16, %s2565_s5, [#allocation6]  }
  0x26   : > { %173 = sbr.rel (%p3434_p11) target bundleno = 684 (0x2ac), region = 32  ;;  %p3435_p12 = scmp.ne.s32.totalorder (!%p3434_p11), %s3432_s21, 0 }
  0x2d   : > { %2537 = dma.done.wait (%p3435_p12), [#allocation4], 128  }
  0x2e   : > { %2539 = vsyncadd (%p3435_p12), [#allocation4], 4294967168 }
  0x2f   : > { %2541 = dma.done.wait (%p3435_p12), [#allocation6], 16  }
  0x30   : > { %2543 = vsyncadd (%p3435_p12), [#allocation6], 4294967280 }
  0x31   : > { %183 = sfence }
  0x32   : > { %p206_p3 = scmp.lt.s32.totalorder %s2550_s13, 1  ;;  %p213_p5 = scmp.lt.s32.totalorder %s2546_s12, 7 }
  0x33   : > { %p2223_p7 = scmp.ne.s32.totalorder %s2546_s12, 0 }
  0x34   : > { %s3447_s13 = smov (!%p206_p3, %s2550_s13), 1  ;;  %s2567_s25 = smov (!%p2223_p7), 126   ;;  %vm264_vm0 = vcmask (!%p2223_p7), 1039360   ;;  %vm310_vm1 = vcmask (!%p2223_p7), 1031168  }
  0x35   : > { %s214_s6 = scalar_select %p213_p5, %s2546_s12, 7 }
  0x36   : > { %s2422_s7 = smul.u32 320, %s3447_s13  ;;  %s2221_s8 = sshll.u32 %s3447_s13, 5 }
  0x37   : > { %s2220_s9 = sshll.u32 %s214_s6, 2  ;;  %223 = sbr.rel (%p2223_p7) target bundleno = 587 (0x24b), region = 44 }
  0x38   : > { %s2668_s17 = scalar_lea.vmem %s3424_s0, %s2422_s7  ;;  %s217_s20 = sadd.s32 %s2221_s8, %s2220_s9 }
  0x39   : > { %s2222_s21 = sshll.u32 %s217_s20, 3  ;;  %v2677_v0 = vld [vmem:[%s2668_s17 + $0x10] sm:$0xff] (!%p2223_p7)  ;;  %v232_v1 = vld [vmem:[%s2668_s17] sm:$0xff] (!%p2223_p7)  ;;  %s2566_s13 = smov (!%p2223_p7), 127   ;;  %v235_v2 = vld [vmem:[%s2668_s17 + $0x18] sm:$0xff] (!%p2223_p7) }
  0x3a   : > { %s2673_s24 = scalar_lea.vmem %s3427_s3, %s2222_s21  ;;  %252 = vrot.lane.b32.xlu1 (!%p2223_p7), %v2677_v0, %s2566_s13  ;;  %248 = vrot.lane.b32.xlu0 (!%p2223_p7), %v232_v1, %s2566_s13  ;;  %v233_v3 = vld [vmem:[%s2668_s17 + $0x8] sm:$0xff] (!%p2223_p7)  ;;  %v236_v5 = vld [vmem:[%s2668_s17 + $0x20] sm:$0xff] (!%p2223_p7) }
  0x3b   : > { %v237_v4 = vld [vmem:[%s2668_s17 + $0x28] sm:$0xff] (!%p2223_p7)  ;;  %v239_v6 = vld [vmem:[%s2668_s17 + $0x38] sm:$0x7f] (!%p2223_p7)  ;;  %v238_v7 = vld [vmem:[%s2668_s17 + $0x30] sm:$0x7f] (!%p2223_p7) }
  0x3c   : > { %v285_v8 = vld [vmem:[%s2668_s17 + $0x38] sm:$0x7f] (!%p2223_p7)  ;;  %v284_v9 = vld [vmem:[%s2668_s17 + $0x30] sm:$0x7f] (!%p2223_p7)  ;;  %v334_v10 = vld [vmem:[%s2668_s17 + $0x8] sm:$0xfe] (!%p2223_p7) }
  0x3d   : > { %v333_v11 = vld [vmem:[%s2668_s17] sm:$0xfe] (!%p2223_p7)  ;;  %v340_v12 = vld [vmem:[%s2668_s17 + $0x38] sm:$0xff] (!%p2223_p7)  ;;  %v339_v13 = vld [vmem:[%s2668_s17 + $0x30] sm:$0xff] (!%p2223_p7) }
  0x3e   : > { %254 = vrot.lane.b32.xlu1 %v235_v2, %s2566_s13  ;;  %250 = vrot.lane.b32.xlu0 %v233_v3, %s2566_s13  ;;  %v379_v14 = vld [vmem:[%s2668_s17 + $0x8] sm:$0xfe]  ;;  %v378_v15 = vld [vmem:[%s2668_s17] sm:$0xfe] }
  0x3f   : > { %v435_v16 = vld [vmem:[%s2668_s17 + $0x8] sm:$0xfc]  ;;  %v434_v17 = vld [vmem:[%s2668_s17] sm:$0xfc]  ;;  %v443_v18 = vld [vmem:[%s2668_s17 + $0x48] sm:$0x1] }
  0x40   : > { %v442_v19 = vld [vmem:[%s2668_s17 + $0x40] sm:$0x1]  ;;  %v491_v20 = vld [vmem:[%s2668_s17 + $0x8] sm:$0xfc]  ;;  %v490_v21 = vld [vmem:[%s2668_s17] sm:$0xfc] }
  0x41   : > { %v499_v22 = vld [vmem:[%s2668_s17 + $0x48] sm:$0x1]  ;;  %v498_v23 = vld [vmem:[%s2668_s17 + $0x40] sm:$0x1]  ;;  %v2229_v24 = vld [vmem:[%s2668_s17 + $0x58] sm:$0xff] }
  0x42   : > { %258 = vrot.lane.b32.xlu1 %v237_v4, %s2566_s13  ;;  %256 = vrot.lane.b32.xlu0 %v236_v5, %s2566_s13  ;;  %v2228_v25 = vld [vmem:[%s2668_s17 + $0x50] sm:$0xff]  ;;  %v2765_v26 = vld [vmem:[%s2668_s17 + $0x68] sm:$0xff] }
  0x43   : > { %v2768_v27 = vld [vmem:[%s2668_s17 + $0x60] sm:$0xff]  ;;  %v2775_v28 = vld [vmem:[%s2668_s17 + $0x78] sm:$0xff]  ;;  %v2778_v29 = vld [vmem:[%s2668_s17 + $0x70] sm:$0xff] }
  0x44   : > { %v2235_v30 = vld [vmem:[%s2668_s17 + $0x88] sm:$0x7f]  ;;  %v2234_v31 = vld [vmem:[%s2668_s17 + $0x80] sm:$0x7f]  ;;  %v2794_v41 = vld [vmem:[%s2668_s17 + $0xd0] sm:$0xff] }
  0x45   : > { %976 = vst [vmem:[#allocation2 + $0x2b7] sm:$0xff] %v2794_v41  ;;  %1076 = vst [vmem:[#allocation2 + $0x316] sm:$0xff] %v2794_v41  ;;  %v2243_v45 = vld [vmem:[%s2668_s17 + $0x88] sm:$0x7f]  ;;  %v2242_v46 = vld [vmem:[%s2668_s17 + $0x80] sm:$0x7f] }
  0x46   : > { %262 = vrot.lane.b32.xlu1 %v239_v6, %s2566_s13  ;;  %260 = vrot.lane.b32.xlu0 %v238_v7, %s2566_s13  ;;  %v2249_v50 = vld [vmem:[%s2668_s17 + $0x58] sm:$0xfe]  ;;  %v2248_v51 = vld [vmem:[%s2668_s17 + $0x50] sm:$0xfe] }
  0x47   : > { %v2828_v61 = vld [vmem:[%s2668_s17 + $0x88] sm:$0xff]  ;;  %v2831_v62 = vld [vmem:[%s2668_s17 + $0x80] sm:$0xff] }
  0x4a   : > { %296 = vrot.lane.b32.xlu1 %v233_v3, %s2567_s25  ;;  %294 = vrot.lane.b32.xlu0 %v232_v1, %s2567_s25  ;;  %v2256_v3 = vld [vmem:[%s2668_s17 + $0x50] sm:$0xfe] }
  0x4e   : > { %300 = vrot.lane.b32.xlu1 %v235_v2, %s2567_s25  ;;  %298 = vrot.lane.b32.xlu0 %v2677_v0, %s2567_s25 }
  0x52   : > { %304 = vrot.lane.b32.xlu1 %v237_v4, %s2567_s25  ;;  %302 = vrot.lane.b32.xlu0 %v236_v5, %s2567_s25 }
  0x56   : > { %308 = vrot.lane.b32.xlu1 %v285_v8, %s2567_s25  ;;  %306 = vrot.lane.b32.xlu0 %v284_v9, %s2567_s25 }
  0x5a   : > { %351 = vrot.lane.b32.xlu1 %v334_v10, %s2566_s13  ;;  %349 = vrot.lane.b32.xlu0 %v333_v11, %s2566_s13 }
  0x5e   : > { %355 = vrot.lane.b32.xlu1 %v235_v2, %s2566_s13  ;;  %353 = vrot.lane.b32.xlu0 %v2677_v0, %s2566_s13 }
  0x62   : > { %359 = vrot.lane.b32.xlu1 %v237_v4, %s2566_s13  ;;  %357 = vrot.lane.b32.xlu0 %v236_v5, %s2566_s13 }
  0x66   : > { %363 = vrot.lane.b32.xlu1 %v340_v12, %s2566_s13  ;;  %361 = vrot.lane.b32.xlu0 %v339_v13, %s2566_s13 }
  0x6a   : > { %396 = vrot.lane.b32.xlu1 %v379_v14, %s2567_s25  ;;  %394 = vrot.lane.b32.xlu0 %v378_v15, %s2567_s25 }
  0x6e   : > { %400 = vrot.lane.b32.xlu1 %v235_v2, %s2567_s25  ;;  %398 = vrot.lane.b32.xlu0 %v2677_v0, %s2567_s25 }
  0x72   : > { %404 = vrot.lane.b32.xlu1 %v237_v4, %s2567_s25  ;;  %402 = vrot.lane.b32.xlu0 %v236_v5, %s2567_s25 }
  0x76   : > { %408 = vrot.lane.b32.xlu1 %v340_v12, %s2567_s25  ;;  %406 = vrot.lane.b32.xlu0 %v339_v13, %s2567_s25 }
  0x7a   : > { %456 = vrot.lane.b32.xlu1 %v435_v16, %s2566_s13  ;;  %454 = vrot.lane.b32.xlu0 %v434_v17, %s2566_s13  ;;  %v2270_v16 = vld [vmem:[%s2668_s17 + $0x58] sm:$0xfc]  ;;  %v2269_v17 = vld [vmem:[%s2668_s17 + $0x50] sm:$0xfc] }
  0x7e   : > { %460 = vrot.lane.b32.xlu1 %v235_v2, %s2566_s13  ;;  %458 = vrot.lane.b32.xlu0 %v2677_v0, %s2566_s13 }
  0x82   : > { %464 = vrot.lane.b32.xlu1 %v237_v4, %s2566_s13  ;;  %462 = vrot.lane.b32.xlu0 %v236_v5, %s2566_s13 }
  0x86   : > { %468 = vrot.lane.b32.xlu1 %v340_v12, %s2566_s13  ;;  %466 = vrot.lane.b32.xlu0 %v339_v13, %s2566_s13 }
  0x8a   : > { %472 = vrot.lane.b32.xlu1 %v443_v18, %s2566_s13  ;;  %470 = vrot.lane.b32.xlu0 %v442_v19, %s2566_s13 }
  0x8e   : > { %512 = vrot.lane.b32.xlu1 %v491_v20, %s2567_s25  ;;  %510 = vrot.lane.b32.xlu0 %v490_v21, %s2567_s25 }
  0x92   : > { %516 = vrot.lane.b32.xlu1 %v235_v2, %s2567_s25  ;;  %514 = vrot.lane.b32.xlu0 %v2677_v0, %s2567_s25  ;;  %v2257_v2 = vld [vmem:[%s2668_s17 + $0x58] sm:$0xfe] }
  0x96   : > { %520 = vrot.lane.b32.xlu1 %v237_v4, %s2567_s25  ;;  %518 = vrot.lane.b32.xlu0 %v236_v5, %s2567_s25 }
  0x9a   : > { %524 = vrot.lane.b32.xlu1 %v340_v12, %s2567_s25  ;;  %522 = vrot.lane.b32.xlu0 %v339_v13, %s2567_s25 }
  0x9e   : > { %528 = vrot.lane.b32.xlu1 %v499_v22, %s2567_s25  ;;  %526 = vrot.lane.b32.xlu0 %v498_v23, %s2567_s25 }
  0xa2   : > { %574 = vrot.lane.b32.xlu1 %v2229_v24, %s2566_s13  ;;  %572 = vrot.lane.b32.xlu0 %v2228_v25, %s2566_s13 }
  0xa6   : > { %578 = vrot.lane.b32.xlu1 %v2765_v26, %s2566_s13  ;;  %576 = vrot.lane.b32.xlu0 %v2768_v27, %s2566_s13 }
  0xaa   : > { %582 = vrot.lane.b32.xlu1 %v2775_v28, %s2566_s13  ;;  %580 = vrot.lane.b32.xlu0 %v2778_v29, %s2566_s13 }
  0xac   : > { %v253_v32 = vpop.permute.xlu1 %252  ;;  %v249_v33 = vpop.permute.xlu0 %248 }
  0xae   : > { %586 = vrot.lane.b32.xlu1 %v2235_v30, %s2566_s13  ;;  %584 = vrot.lane.b32.xlu0 %v2234_v31, %s2566_s13 }
  0xb0   : > { %v255_v34 = vpop.permute.xlu1 %254  ;;  %v251_v35 = vpop.permute.xlu0 %250 }
  0xb1   : > { %v266_v36 = vsel %vm264_vm0, %v253_v32, %v255_v34  ;;  %v265_v37 = vsel %vm264_vm0, %v249_v33, %v251_v35  ;;  %v2278_v34 = vld [vmem:[%s2668_s17 + $0x98] sm:$0x1]  ;;  %v2277_v35 = vld [vmem:[%s2668_s17 + $0x90] sm:$0x1] }
  0xb2   : > { %275 = vst [vmem:[#allocation2 + $0x28] sm:$0xff] %v266_v36  ;;  %274 = vst [vmem:[#allocation2 + $0x20] sm:$0xff] %v265_v37  ;;  %619 = vrot.lane.b32.xlu1 %v2229_v24, %s2567_s25  ;;  %617 = vrot.lane.b32.xlu0 %v2228_v25, %s2567_s25 }
  0xb4   : > { %v259_v38 = vpop.permute.xlu1 %258  ;;  %v257_v39 = vpop.permute.xlu0 %256 }
  0xb5   : > { %v267_v40 = vsel %vm264_vm0, %v257_v39, %v259_v38  ;;  %v2882_v39 = vld [vmem:[%s2668_s17 + $0xf0] sm:$0xff] }
  0xb6   : > { %276 = vst [vmem:[#allocation2 + $0x30] sm:$0xff] %v267_v40  ;;  %623 = vrot.lane.b32.xlu1 %v2765_v26, %s2567_s25  ;;  %621 = vrot.lane.b32.xlu0 %v2768_v27, %s2567_s25  ;;  %1196 = vst [vmem:[#allocation2 + $0x360] sm:$0xff] %v2882_v39  ;;  %v2280_v40 = vld [vmem:[%s2668_s17 + $0x58] sm:$0xfc] }
  0xb8   : > { %v263_v42 = vpop.permute.xlu1 %262  ;;  %v261_v43 = vpop.permute.xlu0 %260 }
  0xb9   : > { %v268_v44 = vsel %vm264_vm0, %v261_v43, %v263_v42  ;;  %v2279_v42 = vld [vmem:[%s2668_s17 + $0x50] sm:$0xfc] }
  0xba   : > { %277 = vst [vmem:[#allocation2 + $0x38] sm:$0x7f] %v268_v44  ;;  %627 = vrot.lane.b32.xlu1 %v2775_v28, %s2567_s25  ;;  %625 = vrot.lane.b32.xlu0 %v2778_v29, %s2567_s25 }
  0xbc   : > { %v297_v47 = vpop.permute.xlu1 %296  ;;  %v295_v48 = vpop.permute.xlu0 %294 }
  0xbd   : > { %v311_v49 = vsel %vm310_vm1, %v295_v48, %v297_v47 }
  0xbe   : > { %320 = vst [vmem:[#allocation2 + $0x40] sm:$0xff] %v311_v49  ;;  %631 = vrot.lane.b32.xlu1 %v2243_v45, %s2567_s25  ;;  %629 = vrot.lane.b32.xlu0 %v2242_v46, %s2567_s25  ;;  %v2891_v46 = vld [vmem:[%s2668_s17 + $0x100] sm:$0xff] }
  0xbf   : > { %1197 = vst [vmem:[#allocation2 + $0x368] sm:$0xff] %v2891_v46  ;;  %1296 = vst [vmem:[#allocation2 + $0x3c7] sm:$0xff] %v2891_v46 }
  0xc0   : > { %v301_v52 = vpop.permute.xlu1 %300  ;;  %v299_v53 = vpop.permute.xlu0 %298  ;;  %1396 = vst [vmem:[#allocation2 + $0x426] sm:$0xff] %v2891_v46 }
  0xc1   : > { %v312_v54 = vsel %vm310_vm1, %v299_v53, %v301_v52 }
  0xc2   : > { %321 = vst [vmem:[#allocation2 + $0x48] sm:$0xff] %v312_v54  ;;  %673 = vrot.lane.b32.xlu1 %v2249_v50, %s2566_s13  ;;  %671 = vrot.lane.b32.xlu0 %v2248_v51, %s2566_s13  ;;  %v2900_v50 = vld [vmem:[%s2668_s17 + $0x110] sm:$0xff] }
  0xc3   : > { %1198 = vst [vmem:[#allocation2 + $0x370] sm:$0xff] %v2900_v50  ;;  %1297 = vst [vmem:[#allocation2 + $0x3cf] sm:$0xff] %v2900_v50 }
  0xc4   : > { %v305_v55 = vpop.permute.xlu1 %304  ;;  %v303_v56 = vpop.permute.xlu0 %302  ;;  %1397 = vst [vmem:[#allocation2 + $0x42e] sm:$0xff] %v2900_v50 }
  0xc5   : > { %v313_v57 = vsel %vm310_vm1, %v303_v56, %v305_v55  ;;  %v2288_v55 = vld [vmem:[%s2668_s17 + $0x98] sm:$0x1]  ;;  %v2287_v56 = vld [vmem:[%s2668_s17 + $0x90] sm:$0x1] }
  0xc6   : > { %322 = vst [vmem:[#allocation2 + $0x50] sm:$0xff] %v313_v57  ;;  %677 = vrot.lane.b32.xlu1 %v2765_v26, %s2566_s13  ;;  %675 = vrot.lane.b32.xlu0 %v2768_v27, %s2566_s13 }
  0xc8   : > { %v309_v58 = vpop.permute.xlu1 %308  ;;  %v307_v59 = vpop.permute.xlu0 %306 }
  0xc9   : > { %v314_v60 = vsel %vm310_vm1, %v307_v59, %v309_v58  ;;  %v2294_v58 = vld [vmem:[%s2668_s17 + $0xa8] sm:$0xff]  ;;  %v2293_v59 = vld [vmem:[%s2668_s17 + $0xa0] sm:$0xff] }
  0xca   : > { %323 = vst [vmem:[#allocation2 + $0x58] sm:$0x7f] %v314_v60  ;;  %681 = vrot.lane.b32.xlu1 %v2775_v28, %s2566_s13  ;;  %679 = vrot.lane.b32.xlu0 %v2778_v29, %s2566_s13 }
  0xcc   : > { %v352_v63 = vpop.permute.xlu1 %351  ;;  %v350_v0 = vpop.permute.xlu0 %349 }
  0xcd   : > { %v365_v1 = vsel %vm264_vm0, %v350_v0, %v352_v63  ;;  %v2930_v63 = vld [vmem:[%s2668_s17 + $0xb8] sm:$0xff]  ;;  %v2933_v0 = vld [vmem:[%s2668_s17 + $0xb0] sm:$0xff] }
  0xce   : > { %374 = vst [vmem:[#allocation2 + $0x7f] sm:$0xfe] %v365_v1  ;;  %685 = vrot.lane.b32.xlu1 %v2828_v61, %s2566_s13  ;;  %683 = vrot.lane.b32.xlu0 %v2831_v62, %s2566_s13 }
  0xd0   : > { %v356_v4 = vpop.permute.xlu1 %355  ;;  %v354_v5 = vpop.permute.xlu0 %353 }
  0xd1   : > { %v366_v6 = vsel %vm264_vm0, %v354_v5, %v356_v4  ;;  %v2941_v4 = vld [vmem:[%s2668_s17 + $0xc8] sm:$0xff]  ;;  %v2944_v5 = vld [vmem:[%s2668_s17 + $0xc0] sm:$0xff] }
  0xd2   : > { %375 = vst [vmem:[#allocation2 + $0x87] sm:$0xff] %v366_v6  ;;  %718 = vrot.lane.b32.xlu1 %v2257_v2, %s2567_s25  ;;  %716 = vrot.lane.b32.xlu0 %v2256_v3, %s2567_s25 }
  0xd4   : > { %v360_v7 = vpop.permute.xlu1 %359  ;;  %v358_v8 = vpop.permute.xlu0 %357 }
  0xd5   : > { %v367_v9 = vsel %vm264_vm0, %v358_v8, %v360_v7 }
  0xd6   : > { %376 = vst [vmem:[#allocation2 + $0x8f] sm:$0xff] %v367_v9  ;;  %722 = vrot.lane.b32.xlu1 %v2765_v26, %s2567_s25  ;;  %720 = vrot.lane.b32.xlu0 %v2768_v27, %s2567_s25  ;;  %v2300_v9 = vld [vmem:[%s2668_s17 + $0xd8] sm:$0x7f] }
  0xd8   : > { %v364_v10 = vpop.permute.xlu1 %363  ;;  %v362_v11 = vpop.permute.xlu0 %361 }
  0xd9   : > { %v368_v12 = vsel %vm264_vm0, %v362_v11, %v364_v10  ;;  %v2299_v10 = vld [vmem:[%s2668_s17 + $0xd0] sm:$0x7f] }
  0xda   : > { %377 = vst [vmem:[#allocation2 + $0x97] sm:$0xff] %v368_v12  ;;  %726 = vrot.lane.b32.xlu1 %v2775_v28, %s2567_s25  ;;  %724 = vrot.lane.b32.xlu0 %v2778_v29, %s2567_s25 }
  0xdc   : > { %v397_v13 = vpop.permute.xlu1 %396  ;;  %v395_v14 = vpop.permute.xlu0 %394 }
  0xdd   : > { %v410_v15 = vsel %vm310_vm1, %v395_v14, %v397_v13 }
  0xde   : > { %419 = vst [vmem:[#allocation2 + $0x9f] sm:$0xfe] %v410_v15  ;;  %730 = vrot.lane.b32.xlu1 %v2828_v61, %s2567_s25  ;;  %728 = vrot.lane.b32.xlu0 %v2831_v62, %s2567_s25 }
  0xe0   : > { %v401_v18 = vpop.permute.xlu1 %400  ;;  %v399_v19 = vpop.permute.xlu0 %398 }
  0xe1   : > { %v411_v20 = vsel %vm310_vm1, %v399_v19, %v401_v18 }
  0xe2   : > { %420 = vst [vmem:[#allocation2 + $0xa7] sm:$0xff] %v411_v20  ;;  %778 = vrot.lane.b32.xlu1 %v2270_v16, %s2566_s13  ;;  %776 = vrot.lane.b32.xlu0 %v2269_v17, %s2566_s13  ;;  %v2961_v20 = vld [vmem:[%s2668_s17 + $0x120] sm:$0xff] }
  0xe3   : > { %1298 = vst [vmem:[#allocation2 + $0x3d7] sm:$0xff] %v2961_v20  ;;  %1398 = vst [vmem:[#allocation2 + $0x436] sm:$0xff] %v2961_v20 }
  0xe4   : > { %v405_v21 = vpop.permute.xlu1 %404  ;;  %v403_v22 = vpop.permute.xlu0 %402 }
  0xe5   : > { %v412_v23 = vsel %vm310_vm1, %v403_v22, %v405_v21 }
  0xe6   : > { %421 = vst [vmem:[#allocation2 + $0xaf] sm:$0xff] %v412_v23  ;;  %782 = vrot.lane.b32.xlu1 %v2765_v26, %s2566_s13  ;;  %780 = vrot.lane.b32.xlu0 %v2768_v27, %s2566_s13 }
  0xe8   : > { %v409_v24 = vpop.permute.xlu1 %408  ;;  %v407_v25 = vpop.permute.xlu0 %406 }
  0xe9   : > { %v413_v30 = vsel %vm310_vm1, %v407_v25, %v409_v24  ;;  %v2308_v24 = vld [vmem:[%s2668_s17 + $0xd8] sm:$0x7f]  ;;  %v2307_v25 = vld [vmem:[%s2668_s17 + $0xd0] sm:$0x7f] }
  0xea   : > { %422 = vst [vmem:[#allocation2 + $0xb7] sm:$0xff] %v413_v30  ;;  %786 = vrot.lane.b32.xlu1 %v2775_v28, %s2566_s13  ;;  %784 = vrot.lane.b32.xlu0 %v2778_v29, %s2566_s13 }
  0xec   : > { %v457_v31 = vpop.permute.xlu1 %456  ;;  %v455_v32 = vpop.permute.xlu0 %454 }
  0xed   : > { %v474_v33 = vsel %vm264_vm0, %v455_v32, %v457_v31 }
  0xee   : > { %485 = vst [vmem:[#allocation2 + $0xde] sm:$0xfc] %v474_v33  ;;  %790 = vrot.lane.b32.xlu1 %v2828_v61, %s2566_s13  ;;  %788 = vrot.lane.b32.xlu0 %v2831_v62, %s2566_s13  ;;  %v2314_v33 = vld [vmem:[%s2668_s17 + $0xa8] sm:$0xfe] }
  0xf0   : > { %v461_v36 = vpop.permute.xlu1 %460  ;;  %v459_v37 = vpop.permute.xlu0 %458 }
  0xf1   : > { %v475_v38 = vsel %vm264_vm0, %v459_v37, %v461_v36 }
  0xf2   : > { %486 = vst [vmem:[#allocation2 + $0xe6] sm:$0xff] %v475_v38  ;;  %794 = vrot.lane.b32.xlu1 %v2278_v34, %s2566_s13  ;;  %792 = vrot.lane.b32.xlu0 %v2277_v35, %s2566_s13  ;;  %v2313_v34 = vld [vmem:[%s2668_s17 + $0xa0] sm:$0xfe] }
  0xf4   : > { %v465_v43 = vpop.permute.xlu1 %464  ;;  %v463_v44 = vpop.permute.xlu0 %462 }
  0xf5   : > { %v476_v45 = vsel %vm264_vm0, %v463_v44, %v465_v43 }
  0xf6   : > { %487 = vst [vmem:[#allocation2 + $0xee] sm:$0xff] %v476_v45  ;;  %834 = vrot.lane.b32.xlu1 %v2280_v40, %s2567_s25  ;;  %832 = vrot.lane.b32.xlu0 %v2279_v42, %s2567_s25 }
  0xf8   : > { %v469_v47 = vpop.permute.xlu1 %468  ;;  %v467_v48 = vpop.permute.xlu0 %466 }
  0xf9   : > { %v477_v49 = vsel %vm264_vm0, %v467_v48, %v469_v47  ;;  %v2995_v47 = vld [vmem:[%s2668_s17 + $0xd8] sm:$0xff] }
  0xfa   : > { %488 = vst [vmem:[#allocation2 + $0xf6] sm:$0xff] %v477_v49  ;;  %838 = vrot.lane.b32.xlu1 %v2765_v26, %s2567_s25  ;;  %836 = vrot.lane.b32.xlu0 %v2768_v27, %s2567_s25 }
  0xfc   : > { %v473_v51 = vpop.permute.xlu1 %472  ;;  %v471_v52 = vpop.permute.xlu0 %470 }
  0xfd   : > { %v478_v53 = vsel %vm264_vm0, %v471_v52, %v473_v51  ;;  %v2322_v52 = vld [vmem:[%s2668_s17 + $0xa8] sm:$0xfe] }
  0xfe   : > { %489 = vst [vmem:[#allocation2 + $0xfe] sm:$0x1] %v478_v53  ;;  %842 = vrot.lane.b32.xlu1 %v2775_v28, %s2567_s25  ;;  %840 = vrot.lane.b32.xlu0 %v2778_v29, %s2567_s25  ;;  %v2321_v53 = vld [vmem:[%s2668_s17 + $0xa0] sm:$0xfe] }
 0x100   : > { %v513_v26 = vpop.permute.xlu1 %512  ;;  %v511_v27 = vpop.permute.xlu0 %510 }
 0x101   : > { %v530_v54 = vsel %vm310_vm1, %v511_v27, %v513_v26 }
 0x102   : > { %541 = vst [vmem:[#allocation2 + $0xfe] sm:$0xfc] %v530_v54  ;;  %846 = vrot.lane.b32.xlu1 %v2828_v61, %s2567_s25  ;;  %844 = vrot.lane.b32.xlu0 %v2831_v62, %s2567_s25 }
 0x104   : > { %v517_v28 = vpop.permute.xlu1 %516  ;;  %v515_v57 = vpop.permute.xlu0 %514 }
 0x105   : > { %v531_v29 = vsel %vm310_vm1, %v515_v57, %v517_v28 }
 0x106   : > { %542 = vst [vmem:[#allocation2 + $0x106] sm:$0xff] %v531_v29  ;;  %850 = vrot.lane.b32.xlu1 %v2288_v55, %s2567_s25  ;;  %848 = vrot.lane.b32.xlu0 %v2287_v56, %s2567_s25 }
 0x108   : > { %v521_v60 = vpop.permute.xlu1 %520  ;;  %v519_v61 = vpop.permute.xlu0 %518 }
 0x109   : > { %v532_v62 = vsel %vm310_vm1, %v519_v61, %v521_v60 }
 0x10a   : > { %543 = vst [vmem:[#allocation2 + $0x10e] sm:$0xff] %v532_v62  ;;  %896 = vrot.lane.b32.xlu1 %v2294_v58, %s2566_s13  ;;  %894 = vrot.lane.b32.xlu0 %v2293_v59, %s2566_s13  ;;  %v2335_v62 = vld [vmem:[%s2668_s17 + $0xa8] sm:$0xfc] }
 0x10c   : > { %v525_v1 = vpop.permute.xlu1 %524  ;;  %v523_v2 = vpop.permute.xlu0 %522 }
 0x10d   : > { %v533_v3 = vsel %vm310_vm1, %v523_v2, %v525_v1  ;;  %v2334_v1 = vld [vmem:[%s2668_s17 + $0xa0] sm:$0xfc] }
 0x10e   : > { %544 = vst [vmem:[#allocation2 + $0x116] sm:$0xff] %v533_v3  ;;  %900 = vrot.lane.b32.xlu1 %v2930_v63, %s2566_s13  ;;  %898 = vrot.lane.b32.xlu0 %v2933_v0, %s2566_s13 }
 0x110   : > { %v529_v6 = vpop.permute.xlu1 %528  ;;  %v527_v7 = vpop.permute.xlu0 %526 }
 0x111   : > { %v534_v8 = vsel %vm310_vm1, %v527_v7, %v529_v6 }
 0x112   : > { %545 = vst [vmem:[#allocation2 + $0x11e] sm:$0x1] %v534_v8  ;;  %904 = vrot.lane.b32.xlu1 %v2941_v4, %s2566_s13  ;;  %902 = vrot.lane.b32.xlu0 %v2944_v5, %s2566_s13 }
 0x114   : > { %v575_v11 = vpop.permute.xlu1 %574  ;;  %v573_v12 = vpop.permute.xlu0 %572 }
 0x115   : > { %v588_v13 = vsel %vm264_vm0, %v573_v12, %v575_v11 }
 0x116   : > { %597 = vst [vmem:[#allocation2 + $0x140] sm:$0xff] %v588_v13  ;;  %908 = vrot.lane.b32.xlu1 %v2300_v9, %s2566_s13  ;;  %906 = vrot.lane.b32.xlu0 %v2299_v10, %s2566_s13 }
 0x118   : > { %v579_v14 = vpop.permute.xlu1 %578  ;;  %v577_v15 = vpop.permute.xlu0 %576 }
 0x119   : > { %v589_v16 = vsel %vm264_vm0, %v577_v15, %v579_v14 }
 0x11a   : > { %598 = vst [vmem:[#allocation2 + $0x148] sm:$0xff] %v589_v16  ;;  %941 = vrot.lane.b32.xlu1 %v2294_v58, %s2567_s25  ;;  %939 = vrot.lane.b32.xlu0 %v2293_v59, %s2567_s25  ;;  %v2343_v16 = vld [vmem:[%s2668_s17 + $0xe8] sm:$0x1] }
 0x11c   : > { %v583_v17 = vpop.permute.xlu1 %582  ;;  %v581_v18 = vpop.permute.xlu0 %580 }
 0x11d   : > { %v590_v19 = vsel %vm264_vm0, %v581_v18, %v583_v17  ;;  %v2342_v17 = vld [vmem:[%s2668_s17 + $0xe0] sm:$0x1] }
 0x11e   : > { %599 = vst [vmem:[#allocation2 + $0x150] sm:$0xff] %v590_v19  ;;  %945 = vrot.lane.b32.xlu1 %v2930_v63, %s2567_s25  ;;  %943 = vrot.lane.b32.xlu0 %v2933_v0, %s2567_s25 }
 0x120   : > { %v587_v21 = vpop.permute.xlu1 %586  ;;  %v585_v22 = vpop.permute.xlu0 %584 }
 0x121   : > { %v591_v23 = vsel %vm264_vm0, %v585_v22, %v587_v21  ;;  %v2345_v22 = vld [vmem:[%s2668_s17 + $0xa8] sm:$0xfc] }
 0x122   : > { %600 = vst [vmem:[#allocation2 + $0x158] sm:$0x7f] %v591_v23  ;;  %949 = vrot.lane.b32.xlu1 %v2941_v4, %s2567_s25  ;;  %947 = vrot.lane.b32.xlu0 %v2944_v5, %s2567_s25  ;;  %v2344_v23 = vld [vmem:[%s2668_s17 + $0xa0] sm:$0xfc] }
 0x124   : > { %v620_v30 = vpop.permute.xlu1 %619  ;;  %v618_v31 = vpop.permute.xlu0 %617 }
 0x125   : > { %v633_v32 = vsel %vm310_vm1, %v618_v31, %v620_v30 }
 0x126   : > { %642 = vst [vmem:[#allocation2 + $0x160] sm:$0xff] %v633_v32  ;;  %953 = vrot.lane.b32.xlu1 %v2308_v24, %s2567_s25  ;;  %951 = vrot.lane.b32.xlu0 %v2307_v25, %s2567_s25 }
 0x128   : > { %v624_v35 = vpop.permute.xlu1 %623  ;;  %v622_v36 = vpop.permute.xlu0 %621 }
 0x129   : > { %v634_v37 = vsel %vm310_vm1, %v622_v36, %v624_v35 }
 0x12a   : > { %643 = vst [vmem:[#allocation2 + $0x168] sm:$0xff] %v634_v37  ;;  %995 = vrot.lane.b32.xlu1 %v2314_v33, %s2566_s13  ;;  %993 = vrot.lane.b32.xlu0 %v2313_v34, %s2566_s13 }
 0x12c   : > { %v628_v38 = vpop.permute.xlu1 %627  ;;  %v626_v40 = vpop.permute.xlu0 %625 }
 0x12d   : > { %v635_v42 = vsel %vm310_vm1, %v626_v40, %v628_v38 }
 0x12e   : > { %644 = vst [vmem:[#allocation2 + $0x170] sm:$0xff] %v635_v42  ;;  %999 = vrot.lane.b32.xlu1 %v2930_v63, %s2566_s13  ;;  %997 = vrot.lane.b32.xlu0 %v2933_v0, %s2566_s13 }
 0x130   : > { %v632_v43 = vpop.permute.xlu1 %631  ;;  %v630_v44 = vpop.permute.xlu0 %629 }
 0x131   : > { %v636_v45 = vsel %vm310_vm1, %v630_v44, %v632_v43 }
 0x132   : > { %645 = vst [vmem:[#allocation2 + $0x178] sm:$0x7f] %v636_v45  ;;  %1003 = vrot.lane.b32.xlu1 %v2941_v4, %s2566_s13  ;;  %1001 = vrot.lane.b32.xlu0 %v2944_v5, %s2566_s13 }
 0x134   : > { %v674_v48 = vpop.permute.xlu1 %673  ;;  %v672_v49 = vpop.permute.xlu0 %671 }
 0x135   : > { %v687_v51 = vsel %vm264_vm0, %v672_v49, %v674_v48 }
 0x136   : > { %696 = vst [vmem:[#allocation2 + $0x19f] sm:$0xfe] %v687_v51  ;;  %1007 = vrot.lane.b32.xlu1 %v2995_v47, %s2566_s13  ;;  %1005 = vrot.lane.b32.xlu0 %v2794_v41, %s2566_s13 }
 0x138   : > { %v678_v26 = vpop.permute.xlu1 %677  ;;  %v676_v27 = vpop.permute.xlu0 %675 }
 0x139   : > { %v688_v54 = vsel %vm264_vm0, %v676_v27, %v678_v26 }
 0x13a   : > { %697 = vst [vmem:[#allocation2 + $0x1a7] sm:$0xff] %v688_v54  ;;  %1040 = vrot.lane.b32.xlu1 %v2322_v52, %s2567_s25  ;;  %1038 = vrot.lane.b32.xlu0 %v2321_v53, %s2567_s25  ;;  %v3086_v52 = vld [vmem:[%s2668_s17 + $0x118] sm:$0xff]  ;;  %v2365_v54 = vld [vmem:[%s2668_s17 + $0x128] sm:$0x7f] }
 0x13c   : > { %v682_v55 = vpop.permute.xlu1 %681  ;;  %v680_v56 = vpop.permute.xlu0 %679 }
 0x13d   : > { %v689_v28 = vsel %vm264_vm0, %v680_v56, %v682_v55  ;;  %v2364_v55 = vld [vmem:[%s2668_s17 + $0x120] sm:$0x7f] }
 0x13e   : > { %698 = vst [vmem:[#allocation2 + $0x1af] sm:$0xff] %v689_v28  ;;  %1044 = vrot.lane.b32.xlu1 %v2930_v63, %s2567_s25  ;;  %1042 = vrot.lane.b32.xlu0 %v2933_v0, %s2567_s25 }
 0x140   : > { %v686_v57 = vpop.permute.xlu1 %685  ;;  %v684_v29 = vpop.permute.xlu0 %683 }
 0x141   : > { %v690_v58 = vsel %vm264_vm0, %v684_v29, %v686_v57 }
 0x142   : > { %699 = vst [vmem:[#allocation2 + $0x1b7] sm:$0xff] %v690_v58  ;;  %1048 = vrot.lane.b32.xlu1 %v2941_v4, %s2567_s25  ;;  %1046 = vrot.lane.b32.xlu0 %v2944_v5, %s2567_s25 }
 0x144   : > { %v719_v59 = vpop.permute.xlu1 %718  ;;  %v717_v60 = vpop.permute.xlu0 %716 }
 0x145   : > { %v732_v61 = vsel %vm310_vm1, %v717_v60, %v719_v59 }
 0x146   : > { %741 = vst [vmem:[#allocation2 + $0x1bf] sm:$0xfe] %v732_v61  ;;  %1052 = vrot.lane.b32.xlu1 %v2995_v47, %s2567_s25  ;;  %1050 = vrot.lane.b32.xlu0 %v2794_v41, %s2567_s25 }
 0x148   : > { %v723_v2 = vpop.permute.xlu1 %722  ;;  %v721_v3 = vpop.permute.xlu0 %720 }
 0x149   : > { %v733_v6 = vsel %vm310_vm1, %v721_v3, %v723_v2 }
 0x14a   : > { %742 = vst [vmem:[#allocation2 + $0x1c7] sm:$0xff] %v733_v6  ;;  %1100 = vrot.lane.b32.xlu1 %v2335_v62, %s2566_s13  ;;  %1098 = vrot.lane.b32.xlu0 %v2334_v1, %s2566_s13  ;;  %v2372_v6 = vld [vmem:[%s2668_s17 + $0x120] sm:$0x7f] }
 0x14c   : > { %v727_v7 = vpop.permute.xlu1 %726  ;;  %v725_v8 = vpop.permute.xlu0 %724 }
 0x14d   : > { %v734_v9 = vsel %vm310_vm1, %v725_v8, %v727_v7 }
 0x14e   : > { %743 = vst [vmem:[#allocation2 + $0x1cf] sm:$0xff] %v734_v9  ;;  %1104 = vrot.lane.b32.xlu1 %v2930_v63, %s2566_s13  ;;  %1102 = vrot.lane.b32.xlu0 %v2933_v0, %s2566_s13 }
 0x150   : > { %v731_v10 = vpop.permute.xlu1 %730  ;;  %v729_v11 = vpop.permute.xlu0 %728 }
 0x151   : > { %v735_v12 = vsel %vm310_vm1, %v729_v11, %v731_v10  ;;  %v2379_v10 = vld [vmem:[%s2668_s17 + $0xf8] sm:$0xfe]  ;;  %v2378_v11 = vld [vmem:[%s2668_s17 + $0xf0] sm:$0xfe] }
 0x152   : > { %744 = vst [vmem:[#allocation2 + $0x1d7] sm:$0xff] %v735_v12  ;;  %1108 = vrot.lane.b32.xlu1 %v2941_v4, %s2566_s13  ;;  %1106 = vrot.lane.b32.xlu0 %v2944_v5, %s2566_s13 }
 0x154   : > { %v779_v13 = vpop.permute.xlu1 %778  ;;  %v777_v14 = vpop.permute.xlu0 %776 }
 0x155   : > { %v796_v15 = vsel %vm264_vm0, %v777_v14, %v779_v13 }
 0x156   : > { %807 = vst [vmem:[#allocation2 + $0x1fe] sm:$0xfc] %v796_v15  ;;  %1112 = vrot.lane.b32.xlu1 %v2995_v47, %s2566_s13  ;;  %1110 = vrot.lane.b32.xlu0 %v2794_v41, %s2566_s13 }
 0x158   : > { %v783_v18 = vpop.permute.xlu1 %782  ;;  %v781_v19 = vpop.permute.xlu0 %780 }
 0x159   : > { %v797_v21 = vsel %vm264_vm0, %v781_v19, %v783_v18 }
 0x15a   : > { %808 = vst [vmem:[#allocation2 + $0x206] sm:$0xff] %v797_v21  ;;  %1116 = vrot.lane.b32.xlu1 %v2343_v16, %s2566_s13  ;;  %1114 = vrot.lane.b32.xlu0 %v2342_v17, %s2566_s13 }
 0x15c   : > { %v787_v24 = vpop.permute.xlu1 %786  ;;  %v785_v25 = vpop.permute.xlu0 %784 }
 0x15d   : > { %v798_v30 = vsel %vm264_vm0, %v785_v25, %v787_v24 }
 0x15e   : > { %809 = vst [vmem:[#allocation2 + $0x20e] sm:$0xff] %v798_v30  ;;  %1156 = vrot.lane.b32.xlu1 %v2345_v22, %s2567_s25  ;;  %1154 = vrot.lane.b32.xlu0 %v2344_v23, %s2567_s25  ;;  %v3133_v22 = vld [vmem:[%s2668_s17 + $0x128] sm:$0xff]  ;;  %v2387_v30 = vld [vmem:[%s2668_s17 + $0xf8] sm:$0xfe] }
 0x160   : > { %v791_v31 = vpop.permute.xlu1 %790  ;;  %v789_v32 = vpop.permute.xlu0 %788 }
 0x161   : > { %v799_v33 = vsel %vm264_vm0, %v789_v32, %v791_v31  ;;  %v2386_v31 = vld [vmem:[%s2668_s17 + $0xf0] sm:$0xfe] }
 0x162   : > { %810 = vst [vmem:[#allocation2 + $0x216] sm:$0xff] %v799_v33  ;;  %1160 = vrot.lane.b32.xlu1 %v2930_v63, %s2567_s25  ;;  %1158 = vrot.lane.b32.xlu0 %v2933_v0, %s2567_s25  ;;  %v2353_v63 = vld [vmem:[%s2668_s17 + $0xe8] sm:$0x1]  ;;  %v2352_v0 = vld [vmem:[%s2668_s17 + $0xe0] sm:$0x1] }
 0x164   : > { %v795_v34 = vpop.permute.xlu1 %794  ;;  %v793_v35 = vpop.permute.xlu0 %792 }
 0x165   : > { %v800_v36 = vsel %vm264_vm0, %v793_v35, %v795_v34 }
 0x166   : > { %811 = vst [vmem:[#allocation2 + $0x21e] sm:$0x1] %v800_v36  ;;  %1164 = vrot.lane.b32.xlu1 %v2941_v4, %s2567_s25  ;;  %1162 = vrot.lane.b32.xlu0 %v2944_v5, %s2567_s25  ;;  %v2359_v5 = vld [vmem:[%s2668_s17 + $0xf8] sm:$0xff] }
 0x168   : > { %v835_v37 = vpop.permute.xlu1 %834  ;;  %v833_v38 = vpop.permute.xlu0 %832 }
 0x169   : > { %v852_v40 = vsel %vm310_vm1, %v833_v38, %v835_v37 }
 0x16a   : > { %863 = vst [vmem:[#allocation2 + $0x21e] sm:$0xfc] %v852_v40  ;;  %1168 = vrot.lane.b32.xlu1 %v2995_v47, %s2567_s25  ;;  %1166 = vrot.lane.b32.xlu0 %v2794_v41, %s2567_s25  ;;  %v3078_v41 = vld [vmem:[%s2668_s17 + $0x108] sm:$0xff] }
 0x16c   : > { %v839_v42 = vpop.permute.xlu1 %838  ;;  %v837_v4 = vpop.permute.xlu0 %836 }
 0x16d   : > { %v853_v43 = vsel %vm310_vm1, %v837_v4, %v839_v42 }
 0x16e   : > { %864 = vst [vmem:[#allocation2 + $0x226] sm:$0xff] %v853_v43  ;;  %1172 = vrot.lane.b32.xlu1 %v2353_v63, %s2567_s25  ;;  %1170 = vrot.lane.b32.xlu0 %v2352_v0, %s2567_s25  ;;  %v2400_v43 = vld [vmem:[%s2668_s17 + $0xf8] sm:$0xfc] }
 0x170   : > { %v843_v44 = vpop.permute.xlu1 %842  ;;  %v841_v45 = vpop.permute.xlu0 %840 }
 0x171   : > { %v854_v47 = vsel %vm310_vm1, %v841_v45, %v843_v44 }
 0x172   : > { %865 = vst [vmem:[#allocation2 + $0x22e] sm:$0xff] %v854_v47  ;;  %1218 = vrot.lane.b32.xlu1 %v2359_v5, %s2566_s13  ;;  %1216 = vrot.lane.b32.xlu0 %v2882_v39, %s2566_s13 }
 0x174   : > { %v847_v48 = vpop.permute.xlu1 %846  ;;  %v845_v49 = vpop.permute.xlu0 %844 }
 0x175   : > { %v855_v51 = vsel %vm310_vm1, %v845_v49, %v847_v48 }
 0x176   : > { %866 = vst [vmem:[#allocation2 + $0x236] sm:$0xff] %v855_v51  ;;  %1222 = vrot.lane.b32.xlu1 %v3078_v41, %s2566_s13  ;;  %1220 = vrot.lane.b32.xlu0 %v2891_v46, %s2566_s13 }
 0x178   : > { %v851_v53 = vpop.permute.xlu1 %850  ;;  %v849_v26 = vpop.permute.xlu0 %848 }
 0x179   : > { %v856_v27 = vsel %vm310_vm1, %v849_v26, %v851_v53 }
 0x17a   : > { %867 = vst [vmem:[#allocation2 + $0x23e] sm:$0x1] %v856_v27  ;;  %1226 = vrot.lane.b32.xlu1 %v3086_v52, %s2566_s13  ;;  %1224 = vrot.lane.b32.xlu0 %v2900_v50, %s2566_s13 }
 0x17c   : > { %v897_v56 = vpop.permute.xlu1 %896  ;;  %v895_v28 = vpop.permute.xlu0 %894 }
 0x17d   : > { %v910_v57 = vsel %vm264_vm0, %v895_v28, %v897_v56  ;;  %v2408_v28 = vld [vmem:[%s2668_s17 + $0x138] sm:$0x1] }
 0x17e   : > { %919 = vst [vmem:[#allocation2 + $0x260] sm:$0xff] %v910_v57  ;;  %1230 = vrot.lane.b32.xlu1 %v2365_v54, %s2566_s13  ;;  %1228 = vrot.lane.b32.xlu0 %v2364_v55, %s2566_s13  ;;  %v2407_v57 = vld [vmem:[%s2668_s17 + $0x130] sm:$0x1] }
 0x180   : > { %v901_v29 = vpop.permute.xlu1 %900  ;;  %v899_v58 = vpop.permute.xlu0 %898 }
 0x181   : > { %v911_v59 = vsel %vm264_vm0, %v899_v58, %v901_v29 }
 0x182   : > { %920 = vst [vmem:[#allocation2 + $0x268] sm:$0xff] %v911_v59  ;;  %1263 = vrot.lane.b32.xlu1 %v2359_v5, %s2567_s25  ;;  %1261 = vrot.lane.b32.xlu0 %v2882_v39, %s2567_s25  ;;  %v2373_v39 = vld [vmem:[%s2668_s17 + $0x128] sm:$0x7f]  ;;  %v2399_v5 = vld [vmem:[%s2668_s17 + $0xf0] sm:$0xfc] }
 0x184   : > { %v905_v60 = vpop.permute.xlu1 %904  ;;  %v903_v61 = vpop.permute.xlu0 %902 }
 0x185   : > { %v912_v62 = vsel %vm264_vm0, %v903_v61, %v905_v60  ;;  %v2410_v60 = vld [vmem:[%s2668_s17 + $0xf8] sm:$0xfc]  ;;  %v2409_v61 = vld [vmem:[%s2668_s17 + $0xf0] sm:$0xfc] }
 0x186   : > { %921 = vst [vmem:[#allocation2 + $0x270] sm:$0xff] %v912_v62  ;;  %1267 = vrot.lane.b32.xlu1 %v3078_v41, %s2567_s25  ;;  %1265 = vrot.lane.b32.xlu0 %v2891_v46, %s2567_s25 }
 0x188   : > { %v909_v1 = vpop.permute.xlu1 %908  ;;  %v907_v2 = vpop.permute.xlu0 %906 }
 0x189   : > { %v913_v3 = vsel %vm264_vm0, %v907_v2, %v909_v1 }
 0x18a   : > { %922 = vst [vmem:[#allocation2 + $0x278] sm:$0x7f] %v913_v3  ;;  %1271 = vrot.lane.b32.xlu1 %v3086_v52, %s2567_s25  ;;  %1269 = vrot.lane.b32.xlu0 %v2900_v50, %s2567_s25 }
 0x18c   : > { %v942_v7 = vpop.permute.xlu1 %941  ;;  %v940_v8 = vpop.permute.xlu0 %939 }
 0x18d   : > { %v955_v9 = vsel %vm310_vm1, %v940_v8, %v942_v7  ;;  %v224_v7 = vld [vmem:[%s2668_s17] sm:$0xff]  ;;  %v225_v8 = vld [vmem:[%s2668_s17 + $0x10] sm:$0xff] }
 0x18e   : > { %964 = vst [vmem:[#allocation2 + $0x280] sm:$0xff] %v955_v9  ;;  %1275 = vrot.lane.b32.xlu1 %v2373_v39, %s2567_s25  ;;  %1273 = vrot.lane.b32.xlu0 %v2372_v6, %s2567_s25  ;;  %v226_v9 = vld [vmem:[%s2668_s17 + $0x20] sm:$0xff]  ;;  %228 = vst [vmem:[#allocation2] sm:$0xff] %v224_v7 }
 0x18f   : > { %229 = vst [vmem:[#allocation2 + $0x8] sm:$0xff] %v225_v8  ;;  %230 = vst [vmem:[#allocation2 + $0x10] sm:$0xff] %v226_v9 }
 0x190   : > { %v946_v12 = vpop.permute.xlu1 %945  ;;  %v944_v13 = vpop.permute.xlu0 %943  ;;  %330 = vst [vmem:[#allocation2 + $0x67] sm:$0xff] %v225_v8  ;;  %331 = vst [vmem:[#allocation2 + $0x6f] sm:$0xff] %v226_v9 }
 0x191   : > { %v956_v14 = vsel %vm310_vm1, %v944_v13, %v946_v12  ;;  %430 = vst [vmem:[#allocation2 + $0xc6] sm:$0xff] %v225_v8  ;;  %431 = vst [vmem:[#allocation2 + $0xce] sm:$0xff] %v226_v9  ;;  %v327_v12 = vld [vmem:[%s2668_s17 + $0x30] sm:$0xff]  ;;  %v427_v13 = vld [vmem:[%s2668_s17 + $0x40] sm:$0x1] }
 0x192   : > { %965 = vst [vmem:[#allocation2 + $0x288] sm:$0xff] %v956_v14  ;;  %1317 = vrot.lane.b32.xlu1 %v2379_v10, %s2566_s13  ;;  %1315 = vrot.lane.b32.xlu0 %v2378_v11, %s2566_s13  ;;  %v227_v10 = vld [vmem:[%s2668_s17 + $0x30] sm:$0x7f]  ;;  %v324_v11 = vld [vmem:[%s2668_s17] sm:$0xfe]  ;;  %332 = vst [vmem:[#allocation2 + $0x77] sm:$0xff] %v327_v12 }
 0x193   : > { %231 = vst [vmem:[#allocation2 + $0x18] sm:$0x7f] %v227_v10  ;;  %329 = vst [vmem:[#allocation2 + $0x5f] sm:$0xfe] %v324_v11 }
 0x194   : > { %v950_v15 = vpop.permute.xlu1 %949  ;;  %v948_v16 = vpop.permute.xlu0 %947  ;;  %432 = vst [vmem:[#allocation2 + $0xd6] sm:$0xff] %v327_v12  ;;  %433 = vst [vmem:[#allocation2 + $0xde] sm:$0x1] %v427_v13 }
 0x195   : > { %v957_v17 = vsel %vm310_vm1, %v948_v16, %v950_v15  ;;  %v2224_v15 = vld [vmem:[%s2668_s17 + $0x50] sm:$0xff]  ;;  %v2225_v16 = vld [vmem:[%s2668_s17 + $0x60] sm:$0xff] }
 0x196   : > { %966 = vst [vmem:[#allocation2 + $0x290] sm:$0xff] %v957_v17  ;;  %1321 = vrot.lane.b32.xlu1 %v3078_v41, %s2566_s13  ;;  %1319 = vrot.lane.b32.xlu0 %v2891_v46, %s2566_s13  ;;  %v2226_v17 = vld [vmem:[%s2668_s17 + $0x70] sm:$0xff]  ;;  %552 = vst [vmem:[#allocation2 + $0x120] sm:$0xff] %v2224_v15 }
 0x197   : > { %553 = vst [vmem:[#allocation2 + $0x128] sm:$0xff] %v2225_v16  ;;  %554 = vst [vmem:[#allocation2 + $0x130] sm:$0xff] %v2226_v17 }
 0x198   : > { %v954_v18 = vpop.permute.xlu1 %953  ;;  %v952_v19 = vpop.permute.xlu0 %951  ;;  %652 = vst [vmem:[#allocation2 + $0x187] sm:$0xff] %v2225_v16  ;;  %653 = vst [vmem:[#allocation2 + $0x18f] sm:$0xff] %v2226_v17 }
 0x199   : > { %v958_v21 = vsel %vm310_vm1, %v952_v19, %v954_v18  ;;  %v2227_v19 = vld [vmem:[%s2668_s17 + $0x80] sm:$0x7f]  ;;  %752 = vst [vmem:[#allocation2 + $0x1e6] sm:$0xff] %v2225_v16  ;;  %753 = vst [vmem:[#allocation2 + $0x1ee] sm:$0xff] %v2226_v17 }
 0x19a   : > { %967 = vst [vmem:[#allocation2 + $0x298] sm:$0x7f] %v958_v21  ;;  %1325 = vrot.lane.b32.xlu1 %v3086_v52, %s2566_s13  ;;  %1323 = vrot.lane.b32.xlu0 %v2900_v50, %s2566_s13  ;;  %v2244_v21 = vld [vmem:[%s2668_s17 + $0x50] sm:$0xfe]  ;;  %555 = vst [vmem:[#allocation2 + $0x138] sm:$0x7f] %v2227_v19 }
 0x19b   : > { %651 = vst [vmem:[#allocation2 + $0x17f] sm:$0xfe] %v2244_v21 }
 0x19c   : > { %v996_v23 = vpop.permute.xlu1 %995  ;;  %v994_v24 = vpop.permute.xlu0 %993 }
 0x19d   : > { %v1009_v25 = vsel %vm264_vm0, %v994_v24, %v996_v23  ;;  %v2247_v23 = vld [vmem:[%s2668_s17 + $0x80] sm:$0xff]  ;;  %v2264_v24 = vld [vmem:[%s2668_s17 + $0x50] sm:$0xfc] }
 0x19e   : > { %1018 = vst [vmem:[#allocation2 + $0x2bf] sm:$0xfe] %v1009_v25  ;;  %1329 = vrot.lane.b32.xlu1 %v3133_v22, %s2566_s13  ;;  %1327 = vrot.lane.b32.xlu0 %v2961_v20, %s2566_s13  ;;  %654 = vst [vmem:[#allocation2 + $0x197] sm:$0xff] %v2247_v23  ;;  %v2268_v25 = vld [vmem:[%s2668_s17 + $0x90] sm:$0x1] }
 0x19f   : > { %754 = vst [vmem:[#allocation2 + $0x1f6] sm:$0xff] %v2247_v23  ;;  %751 = vst [vmem:[#allocation2 + $0x1de] sm:$0xfc] %v2264_v24 }
 0x1a0   : > { %v1000_v32 = vpop.permute.xlu1 %999  ;;  %v998_v33 = vpop.permute.xlu0 %997  ;;  %755 = vst [vmem:[#allocation2 + $0x1fe] sm:$0x1] %v2268_v25 }
 0x1a1   : > { %v1010_v34 = vsel %vm264_vm0, %v998_v33, %v1000_v32  ;;  %v2291_v32 = vld [vmem:[%s2668_s17 + $0xc0] sm:$0xff] }
 0x1a2   : > { %1019 = vst [vmem:[#allocation2 + $0x2c7] sm:$0xff] %v1010_v34  ;;  %1362 = vrot.lane.b32.xlu1 %v2387_v30, %s2567_s25  ;;  %1360 = vrot.lane.b32.xlu0 %v2386_v31, %s2567_s25  ;;  %v2289_v30 = vld [vmem:[%s2668_s17 + $0xa0] sm:$0xff]  ;;  %v2290_v31 = vld [vmem:[%s2668_s17 + $0xb0] sm:$0xff]  ;;  %876 = vst [vmem:[#allocation2 + $0x250] sm:$0xff] %v2291_v32 }
 0x1a3   : > { %874 = vst [vmem:[#allocation2 + $0x240] sm:$0xff] %v2289_v30  ;;  %875 = vst [vmem:[#allocation2 + $0x248] sm:$0xff] %v2290_v31 }
 0x1a4   : > { %v1004_v35 = vpop.permute.xlu1 %1003  ;;  %v1002_v36 = vpop.permute.xlu0 %1001  ;;  %974 = vst [vmem:[#allocation2 + $0x2a7] sm:$0xff] %v2290_v31  ;;  %975 = vst [vmem:[#allocation2 + $0x2af] sm:$0xff] %v2291_v32 }
 0x1a5   : > { %v1011_v37 = vsel %vm264_vm0, %v1002_v36, %v1004_v35  ;;  %v2329_v35 = vld [vmem:[%s2668_s17 + $0xa0] sm:$0xfc]  ;;  %1074 = vst [vmem:[#allocation2 + $0x306] sm:$0xff] %v2290_v31  ;;  %1075 = vst [vmem:[#allocation2 + $0x30e] sm:$0xff] %v2291_v32 }
 0x1a6   : > { %1020 = vst [vmem:[#allocation2 + $0x2cf] sm:$0xff] %v1011_v37  ;;  %1366 = vrot.lane.b32.xlu1 %v3078_v41, %s2567_s25  ;;  %1364 = vrot.lane.b32.xlu0 %v2891_v46, %s2567_s25  ;;  %v2333_v37 = vld [vmem:[%s2668_s17 + $0xe0] sm:$0x1]  ;;  %1073 = vst [vmem:[#allocation2 + $0x2fe] sm:$0xfc] %v2329_v35 }
 0x1a7   : > { %1077 = vst [vmem:[#allocation2 + $0x31e] sm:$0x1] %v2333_v37 }
 0x1a8   : > { %v1008_v38 = vpop.permute.xlu1 %1007  ;;  %v1006_v40 = vpop.permute.xlu0 %1005 }
 0x1a9   : > { %v1012_v63 = vsel %vm264_vm0, %v1006_v40, %v1008_v38  ;;  %v2357_v38 = vld [vmem:[%s2668_s17 + $0x120] sm:$0x7f]  ;;  %v2374_v40 = vld [vmem:[%s2668_s17 + $0xf0] sm:$0xfe] }
 0x1aa   : > { %1021 = vst [vmem:[#allocation2 + $0x2d7] sm:$0xff] %v1012_v63  ;;  %1370 = vrot.lane.b32.xlu1 %v3086_v52, %s2567_s25  ;;  %1368 = vrot.lane.b32.xlu0 %v2900_v50, %s2567_s25  ;;  %1199 = vst [vmem:[#allocation2 + $0x378] sm:$0x7f] %v2357_v38  ;;  %v2394_v63 = vld [vmem:[%s2668_s17 + $0xf0] sm:$0xfc] }
 0x1ab   : > { %1295 = vst [vmem:[#allocation2 + $0x3bf] sm:$0xfe] %v2374_v40  ;;  %1395 = vst [vmem:[#allocation2 + $0x41e] sm:$0xfc] %v2394_v63 }
 0x1ac   : > { %v1041_v0 = vpop.permute.xlu1 %1040  ;;  %v1039_v42 = vpop.permute.xlu0 %1038 }
 0x1ad   : > { %v1054_v4 = vsel %vm310_vm1, %v1039_v42, %v1041_v0  ;;  %v2398_v0 = vld [vmem:[%s2668_s17 + $0x130] sm:$0x1]  ;;  %v2418_v42 = vld [vmem:[%s2668_s17 + $0x138] sm:$0x1] }
 0x1ae   : > { %1063 = vst [vmem:[#allocation2 + $0x2df] sm:$0xfe] %v1054_v4  ;;  %1374 = vrot.lane.b32.xlu1 %v3133_v22, %s2567_s25  ;;  %1372 = vrot.lane.b32.xlu0 %v2961_v20, %s2567_s25  ;;  %v2417_v4 = vld [vmem:[%s2668_s17 + $0x130] sm:$0x1]  ;;  %1399 = vst [vmem:[#allocation2 + $0x43e] sm:$0x1] %v2398_v0 }
 0x1b0   : > { %v1045_v44 = vpop.permute.xlu1 %1044  ;;  %v1043_v45 = vpop.permute.xlu0 %1042 }
 0x1b1   : > { %v1055_v47 = vsel %vm310_vm1, %v1043_v45, %v1045_v44 }
 0x1b2   : > { %1064 = vst [vmem:[#allocation2 + $0x2e7] sm:$0xff] %v1055_v47  ;;  %1422 = vrot.lane.b32.xlu1 %v2400_v43, %s2566_s13  ;;  %1420 = vrot.lane.b32.xlu0 %v2399_v5, %s2566_s13 }
 0x1b4   : > { %v1049_v48 = vpop.permute.xlu1 %1048  ;;  %v1047_v49 = vpop.permute.xlu0 %1046 }
 0x1b5   : > { %v1056_v51 = vsel %vm310_vm1, %v1047_v49, %v1049_v48 }
 0x1b6   : > { %1065 = vst [vmem:[#allocation2 + $0x2ef] sm:$0xff] %v1056_v51  ;;  %1426 = vrot.lane.b32.xlu1 %v3078_v41, %s2566_s13  ;;  %1424 = vrot.lane.b32.xlu0 %v2891_v46, %s2566_s13 }
 0x1b8   : > { %v1053_v53 = vpop.permute.xlu1 %1052  ;;  %v1051_v26 = vpop.permute.xlu0 %1050 }
 0x1b9   : > { %v1057_v27 = vsel %vm310_vm1, %v1051_v26, %v1053_v53 }
 0x1ba   : > { %1066 = vst [vmem:[#allocation2 + $0x2f7] sm:$0xff] %v1057_v27  ;;  %1430 = vrot.lane.b32.xlu1 %v3086_v52, %s2566_s13  ;;  %1428 = vrot.lane.b32.xlu0 %v2900_v50, %s2566_s13 }
 0x1bc   : > { %v1101_v54 = vpop.permute.xlu1 %1100  ;;  %v1099_v55 = vpop.permute.xlu0 %1098 }
 0x1bd   : > { %v1118_v56 = vsel %vm264_vm0, %v1099_v55, %v1101_v54 }
 0x1be   : > { %1129 = vst [vmem:[#allocation2 + $0x31e] sm:$0xfc] %v1118_v56  ;;  %1434 = vrot.lane.b32.xlu1 %v3133_v22, %s2566_s13  ;;  %1432 = vrot.lane.b32.xlu0 %v2961_v20, %s2566_s13 }
 0x1c0   : > { %v1105_v29 = vpop.permute.xlu1 %1104  ;;  %v1103_v58 = vpop.permute.xlu0 %1102 }
 0x1c1   : > { %v1119_v59 = vsel %vm264_vm0, %v1103_v58, %v1105_v29 }
 0x1c2   : > { %1130 = vst [vmem:[#allocation2 + $0x326] sm:$0xff] %v1119_v59  ;;  %1438 = vrot.lane.b32.xlu1 %v2408_v28, %s2566_s13  ;;  %1436 = vrot.lane.b32.xlu0 %v2407_v57, %s2566_s13 }
 0x1c4   : > { %v1109_v62 = vpop.permute.xlu1 %1108  ;;  %v1107_v1 = vpop.permute.xlu0 %1106 }
 0x1c5   : > { %v1120_v2 = vsel %vm264_vm0, %v1107_v1, %v1109_v62 }
 0x1c6   : > { %1131 = vst [vmem:[#allocation2 + $0x32e] sm:$0xff] %v1120_v2  ;;  %1478 = vrot.lane.b32.xlu1 %v2410_v60, %s2567_s25  ;;  %1476 = vrot.lane.b32.xlu0 %v2409_v61, %s2567_s25 }
 0x1c8   : > { %v1113_v3 = vpop.permute.xlu1 %1112  ;;  %v1111_v39 = vpop.permute.xlu0 %1110 }
 0x1c9   : > { %v1121_v6 = vsel %vm264_vm0, %v1111_v39, %v1113_v3 }
 0x1ca   : > { %1132 = vst [vmem:[#allocation2 + $0x336] sm:$0xff] %v1121_v6  ;;  %1482 = vrot.lane.b32.xlu1 %v3078_v41, %s2567_s25  ;;  %1480 = vrot.lane.b32.xlu0 %v2891_v46, %s2567_s25  ;;  %v423_v41 = vld [vmem:[%s2668_s17] sm:$0xfc] }
 0x1cb   : > { %429 = vst [vmem:[#allocation2 + $0xbe] sm:$0xfc] %v423_v41 }
 0x1cc   : > { %v1117_v46 = vpop.permute.xlu1 %1116  ;;  %v1115_v14 = vpop.permute.xlu0 %1114 }
 0x1cd   : > { %v1122_v18 = vsel %vm264_vm0, %v1115_v14, %v1117_v46 }
 0x1ce   : > { %1133 = vst [vmem:[#allocation2 + $0x33e] sm:$0x1] %v1122_v18  ;;  %1486 = vrot.lane.b32.xlu1 %v3086_v52, %s2567_s25  ;;  %1484 = vrot.lane.b32.xlu0 %v2900_v50, %s2567_s25  ;;  %v2292_v52 = vld [vmem:[%s2668_s17 + $0xd0] sm:$0x7f]  ;;  %v2309_v50 = vld [vmem:[%s2668_s17 + $0xa0] sm:$0xfe] }
 0x1cf   : > { %877 = vst [vmem:[#allocation2 + $0x258] sm:$0x7f] %v2292_v52  ;;  %973 = vst [vmem:[#allocation2 + $0x29f] sm:$0xfe] %v2309_v50 }
 0x1d0   : > { %v1157_v33 = vpop.permute.xlu1 %1156  ;;  %v1155_v34 = vpop.permute.xlu0 %1154 }
 0x1d1   : > { %v1174_v36 = vsel %vm310_vm1, %v1155_v34, %v1157_v33 }
 0x1d2   : > { %1185 = vst [vmem:[#allocation2 + $0x33e] sm:$0xfc] %v1174_v36  ;;  %1490 = vrot.lane.b32.xlu1 %v3133_v22, %s2567_s25  ;;  %1488 = vrot.lane.b32.xlu0 %v2961_v20, %s2567_s25 }
 0x1d4   : > { %v1161_v43 = vpop.permute.xlu1 %1160  ;;  %v1159_v5 = vpop.permute.xlu0 %1158 }
 0x1d5   : > { %v1175_v44 = vsel %vm310_vm1, %v1159_v5, %v1161_v43 }
 0x1d6   : > { %1186 = vst [vmem:[#allocation2 + $0x346] sm:$0xff] %v1175_v44  ;;  %1494 = vrot.lane.b32.xlu1 %v2418_v42, %s2567_s25  ;;  %1492 = vrot.lane.b32.xlu0 %v2417_v4, %s2567_s25 }
 0x1d8   : > { %v1165_v22 = vpop.permute.xlu1 %1164  ;;  %v1163_v20 = vpop.permute.xlu0 %1162 }
 0x1d9   : > { %v1176_v45 = vsel %vm310_vm1, %v1163_v20, %v1165_v22 }
 0x1da   : > { %1187 = vst [vmem:[#allocation2 + $0x34e] sm:$0xff] %v1176_v45 }
 0x1dc   : > { %v1169_v47 = vpop.permute.xlu1 %1168  ;;  %v1167_v48 = vpop.permute.xlu0 %1166 }
 0x1dd   : > { %v1177_v49 = vsel %vm310_vm1, %v1167_v48, %v1169_v47 }
 0x1de   : > { %1188 = vst [vmem:[#allocation2 + $0x356] sm:$0xff] %v1177_v49 }
 0x1e0   : > { %v1173_v51 = vpop.permute.xlu1 %1172  ;;  %v1171_v53 = vpop.permute.xlu0 %1170 }
 0x1e1   : > { %v1178_v26 = vsel %vm310_vm1, %v1171_v53, %v1173_v51 }
 0x1e2   : > { %1189 = vst [vmem:[#allocation2 + $0x35e] sm:$0x1] %v1178_v26 }
 0x1e4   : > { %v1219_v27 = vpop.permute.xlu1 %1218  ;;  %v1217_v54 = vpop.permute.xlu0 %1216 }
 0x1e5   : > { %v1232_v55 = vsel %vm264_vm0, %v1217_v54, %v1219_v27 }
 0x1e6   : > { %1241 = vst [vmem:[#allocation2 + $0x380] sm:$0xff] %v1232_v55 }
 0x1e8   : > { %v1223_v56 = vpop.permute.xlu1 %1222  ;;  %v1221_v28 = vpop.permute.xlu0 %1220 }
 0x1e9   : > { %v1233_v57 = vsel %vm264_vm0, %v1221_v28, %v1223_v56 }
 0x1ea   : > { %1242 = vst [vmem:[#allocation2 + $0x388] sm:$0xff] %v1233_v57 }
 0x1ec   : > { %v1227_v29 = vpop.permute.xlu1 %1226  ;;  %v1225_v58 = vpop.permute.xlu0 %1224 }
 0x1ed   : > { %v1234_v59 = vsel %vm264_vm0, %v1225_v58, %v1227_v29 }
 0x1ee   : > { %1243 = vst [vmem:[#allocation2 + $0x390] sm:$0xff] %v1234_v59 }
 0x1f0   : > { %v1231_v60 = vpop.permute.xlu1 %1230  ;;  %v1229_v61 = vpop.permute.xlu0 %1228 }
 0x1f1   : > { %v1235_v62 = vsel %vm264_vm0, %v1229_v61, %v1231_v60 }
 0x1f2   : > { %1244 = vst [vmem:[#allocation2 + $0x398] sm:$0x7f] %v1235_v62 }
 0x1f4   : > { %v1264_v1 = vpop.permute.xlu1 %1263  ;;  %v1262_v2 = vpop.permute.xlu0 %1261 }
 0x1f5   : > { %v1277_v3 = vsel %vm310_vm1, %v1262_v2, %v1264_v1 }
 0x1f6   : > { %1286 = vst [vmem:[#allocation2 + $0x3a0] sm:$0xff] %v1277_v3 }
 0x1f8   : > { %v1268_v39 = vpop.permute.xlu1 %1267  ;;  %v1266_v6 = vpop.permute.xlu0 %1265 }
 0x1f9   : > { %v1278_v7 = vsel %vm310_vm1, %v1266_v6, %v1268_v39 }
 0x1fa   : > { %1287 = vst [vmem:[#allocation2 + $0x3a8] sm:$0xff] %v1278_v7 }
 0x1fc   : > { %v1272_v8 = vpop.permute.xlu1 %1271  ;;  %v1270_v9 = vpop.permute.xlu0 %1269 }
 0x1fd   : > { %v1279_v10 = vsel %vm310_vm1, %v1270_v9, %v1272_v8 }
 0x1fe   : > { %1288 = vst [vmem:[#allocation2 + $0x3b0] sm:$0xff] %v1279_v10 }
 0x200   : > { %v1276_v11 = vpop.permute.xlu1 %1275  ;;  %v1274_v12 = vpop.permute.xlu0 %1273 }
 0x201   : > { %v1280_v41 = vsel %vm310_vm1, %v1274_v12, %v1276_v11 }
 0x202   : > { %1289 = vst [vmem:[#allocation2 + $0x3b8] sm:$0x7f] %v1280_v41 }
 0x204   : > { %v1318_v13 = vpop.permute.xlu1 %1317  ;;  %v1316_v46 = vpop.permute.xlu0 %1315 }
 0x205   : > { %v1331_v14 = vsel %vm264_vm0, %v1316_v46, %v1318_v13 }
 0x206   : > { %1340 = vst [vmem:[#allocation2 + $0x3df] sm:$0xfe] %v1331_v14 }
 0x208   : > { %v1322_v15 = vpop.permute.xlu1 %1321  ;;  %v1320_v16 = vpop.permute.xlu0 %1319 }
 0x209   : > { %v1332_v17 = vsel %vm264_vm0, %v1320_v16, %v1322_v15 }
 0x20a   : > { %1341 = vst [vmem:[#allocation2 + $0x3e7] sm:$0xff] %v1332_v17 }
 0x20c   : > { %v1326_v18 = vpop.permute.xlu1 %1325  ;;  %v1324_v19 = vpop.permute.xlu0 %1323 }
 0x20d   : > { %v1333_v21 = vsel %vm264_vm0, %v1324_v19, %v1326_v18 }
 0x20e   : > { %1342 = vst [vmem:[#allocation2 + $0x3ef] sm:$0xff] %v1333_v21 }
 0x210   : > { %v1330_v23 = vpop.permute.xlu1 %1329  ;;  %v1328_v24 = vpop.permute.xlu0 %1327 }
 0x211   : > { %v1334_v25 = vsel %vm264_vm0, %v1328_v24, %v1330_v23 }
 0x212   : > { %1343 = vst [vmem:[#allocation2 + $0x3f7] sm:$0xff] %v1334_v25 }
 0x214   : > { %v1363_v30 = vpop.permute.xlu1 %1362  ;;  %v1361_v31 = vpop.permute.xlu0 %1360 }
 0x215   : > { %v1376_v32 = vsel %vm310_vm1, %v1361_v31, %v1363_v30 }
 0x216   : > { %1385 = vst [vmem:[#allocation2 + $0x3ff] sm:$0xfe] %v1376_v32 }
 0x218   : > { %v1367_v33 = vpop.permute.xlu1 %1366  ;;  %v1365_v34 = vpop.permute.xlu0 %1364 }
 0x219   : > { %v1377_v52 = vsel %vm310_vm1, %v1365_v34, %v1367_v33 }
 0x21a   : > { %1386 = vst [vmem:[#allocation2 + $0x407] sm:$0xff] %v1377_v52 }
 0x21c   : > { %v1371_v50 = vpop.permute.xlu1 %1370  ;;  %v1369_v35 = vpop.permute.xlu0 %1368 }
 0x21d   : > { %v1378_v36 = vsel %vm310_vm1, %v1369_v35, %v1371_v50 }
 0x21e   : > { %1387 = vst [vmem:[#allocation2 + $0x40f] sm:$0xff] %v1378_v36 }
 0x220   : > { %v1375_v37 = vpop.permute.xlu1 %1374  ;;  %v1373_v38 = vpop.permute.xlu0 %1372 }
 0x221   : > { %v1379_v40 = vsel %vm310_vm1, %v1373_v38, %v1375_v37 }
 0x222   : > { %1388 = vst [vmem:[#allocation2 + $0x417] sm:$0xff] %v1379_v40 }
 0x224   : > { %v1423_v63 = vpop.permute.xlu1 %1422  ;;  %v1421_v0 = vpop.permute.xlu0 %1420 }
 0x225   : > { %v1440_v42 = vsel %vm264_vm0, %v1421_v0, %v1423_v63 }
 0x226   : > { %1451 = vst [vmem:[#allocation2 + $0x43e] sm:$0xfc] %v1440_v42 }
 0x228   : > { %v1427_v4 = vpop.permute.xlu1 %1426  ;;  %v1425_v43 = vpop.permute.xlu0 %1424 }
 0x229   : > { %v1441_v5 = vsel %vm264_vm0, %v1425_v43, %v1427_v4 }
 0x22a   : > { %1452 = vst [vmem:[#allocation2 + $0x446] sm:$0xff] %v1441_v5 }
 0x22c   : > { %v1431_v44 = vpop.permute.xlu1 %1430  ;;  %v1429_v22 = vpop.permute.xlu0 %1428 }
 0x22d   : > { %v1442_v20 = vsel %vm264_vm0, %v1429_v22, %v1431_v44 }
 0x22e   : > { %1453 = vst [vmem:[#allocation2 + $0x44e] sm:$0xff] %v1442_v20 }
 0x230   : > { %v1435_v45 = vpop.permute.xlu1 %1434  ;;  %v1433_v47 = vpop.permute.xlu0 %1432 }
 0x231   : > { %v1443_v48 = vsel %vm264_vm0, %v1433_v47, %v1435_v45 }
 0x232   : > { %1454 = vst [vmem:[#allocation2 + $0x456] sm:$0xff] %v1443_v48 }
 0x234   : > { %v1439_v49 = vpop.permute.xlu1 %1438  ;;  %v1437_v51 = vpop.permute.xlu0 %1436 }
 0x235   : > { %v1444_v53 = vsel %vm264_vm0, %v1437_v51, %v1439_v49 }
 0x236   : > { %1455 = vst [vmem:[#allocation2 + $0x45e] sm:$0x1] %v1444_v53 }
 0x238   : > { %v1479_v26 = vpop.permute.xlu1 %1478  ;;  %v1477_v27 = vpop.permute.xlu0 %1476 }
 0x239   : > { %v1496_v54 = vsel %vm310_vm1, %v1477_v27, %v1479_v26 }
 0x23a   : > { %1507 = vst [vmem:[#allocation2 + $0x45e] sm:$0xfc] %v1496_v54 }
 0x23c   : > { %v1483_v55 = vpop.permute.xlu1 %1482  ;;  %v1481_v56 = vpop.permute.xlu0 %1480 }
 0x23d   : > { %v1497_v28 = vsel %vm310_vm1, %v1481_v56, %v1483_v55 }
 0x23e   : > { %1508 = vst [vmem:[#allocation2 + $0x466] sm:$0xff] %v1497_v28 }
 0x240   : > { %v1487_v57 = vpop.permute.xlu1 %1486  ;;  %v1485_v29 = vpop.permute.xlu0 %1484 }
 0x241   : > { %v1498_v58 = vsel %vm310_vm1, %v1485_v29, %v1487_v57 }
 0x242   : > { %1509 = vst [vmem:[#allocation2 + $0x46e] sm:$0xff] %v1498_v58 }
 0x244   : > { %v1491_v59 = vpop.permute.xlu1 %1490  ;;  %v1489_v60 = vpop.permute.xlu0 %1488 }
 0x245   : > { %v1499_v61 = vsel %vm310_vm1, %v1489_v60, %v1491_v59 }
 0x246   : > { %1510 = vst [vmem:[#allocation2 + $0x476] sm:$0xff] %v1499_v61 }
 0x248   : > { %v1495_v62 = vpop.permute.xlu1 %1494  ;;  %v1493_v1 = vpop.permute.xlu0 %1492 }
 0x249   : > { %v1500_v2 = vsel %vm310_vm1, %v1493_v1, %v1495_v62 }
 0x24a   : > { %1511 = vst [vmem:[#allocation2 + $0x47e] sm:$0x1] %v1500_v2 }
 0x24b PF: > { %s3267_s26 = sshll.u32 %s2546_s12, 7  ;;  %v1514_v3 = vld [vmem:[#allocation2] sm:$0xff]  ;;  %v1515_v39 = vld [vmem:[#allocation2 + $0x8] sm:$0xff]  ;;  %v1516_v6 = vld [vmem:[#allocation2 + $0x10] sm:$0xff] }
 0x24c   : > { %s1513_s27 = sld [smem:[#allocation3 + %s3267_s26]]  ;;  %s1527_s28 = sadd.s32 1, %s3267_s26  ;;  %v1517_v7 = vld [vmem:[#allocation2 + $0x18] sm:$0x7f]  ;;  %v1530_v8 = vld [vmem:[#allocation2 + $0x20] sm:$0xff]  ;;  %v1531_v9 = vld [vmem:[#allocation2 + $0x28] sm:$0xff] }
 0x24d   : > { %s1528_s29 = sld [smem:[#allocation3 + %s1527_s28]]  ;;  %s1543_s30 = sadd.s32 2, %s3267_s26  ;;  %v1532_v11 = vld [vmem:[#allocation2 + $0x30] sm:$0xff]  ;;  %v1533_v12 = vld [vmem:[#allocation2 + $0x38] sm:$0x7f]  ;;  %v1546_v41 = vld [vmem:[#allocation2 + $0x40] sm:$0xff] }
 0x24e   : > { %s1544_s4 = sld [smem:[#allocation3 + %s1543_s30]]  ;;  %s1559_s5 = sadd.s32 3, %s3267_s26  ;;  %v1547_v16 = vld [vmem:[#allocation2 + $0x48] sm:$0xff]  ;;  %v1548_v17 = vld [vmem:[#allocation2 + $0x50] sm:$0xff]  ;;  %v1549_v18 = vld [vmem:[#allocation2 + $0x58] sm:$0x7f] }
 0x24f   : > { %s3273_s6 = sld [smem:[#allocation3 + %s1559_s5]]  ;;  %s1575_s7 = sadd.s32 4, %s3267_s26  ;;  %v1562_v52 = vld [vmem:[#allocation2 + $0x60] sm:$0xff]  ;;  %v1563_v50 = vld [vmem:[#allocation2 + $0x68] sm:$0xff]  ;;  %v1564_v40 = vld [vmem:[#allocation2 + $0x70] sm:$0xff] }
 0x250   : > { %s3276_s8 = sld [smem:[#allocation3 + %s1575_s7]]  ;;  %s1591_s9 = sadd.s32 5, %s3267_s26  ;;  %v1565_v63 = vld [vmem:[#allocation2 + $0x78] sm:$0x7f]  ;;  %v1578_v0 = vld [vmem:[#allocation2 + $0x80] sm:$0xff]  ;;  %v1579_v4 = vld [vmem:[#allocation2 + $0x88] sm:$0xff] }
 0x251   : > { %s3279_s10 = sld [smem:[#allocation3 + %s1591_s9]]  ;;  %s1607_s11 = sadd.s32 6, %s3267_s26  ;;  %v1580_v43 = vld [vmem:[#allocation2 + $0x90] sm:$0xff]  ;;  %v1581_v5 = vld [vmem:[#allocation2 + $0x98] sm:$0x7f]  ;;  %v1594_v51 = vld [vmem:[#allocation2 + $0xa0] sm:$0xff] }
 0x252   : > { %v1518_v10 = vstv %s1513_s27  ;;  %s3282_s17 = sld [smem:[#allocation3 + %s1607_s11]]  ;;  %s1623_s20 = sadd.s32 7, %s3267_s26  ;;  %v1595_v55 = vld [vmem:[#allocation2 + $0xa8] sm:$0xff]  ;;  %v1596_v56 = vld [vmem:[#allocation2 + $0xb0] sm:$0xff]  ;;  %v1597_v28 = vld [vmem:[#allocation2 + $0xb8] sm:$0x7f] }
 0x253   : > { %v1519_v13 = vmul.f32 %v1518_v10, %v1514_v3  ;;  %v1520_v46 = vmul.f32 %v1518_v10, %v1515_v39  ;;  %v1521_v14 = vmul.f32 %v1518_v10, %v1516_v6  ;;  %v1522_v15 = vmul.f32 %v1518_v10, %v1517_v7  ;;  %s1639_s21 = sadd.s32 8, %s3267_s26  ;;  %s1655_s22 = sadd.s32 9, %s3267_s26  ;;  %v1610_v60 = vld [vmem:[#allocation2 + $0xc0] sm:$0xff]  ;;  %v1611_v3 = vld [vmem:[#allocation2 + $0xc8] sm:$0xff]  ;;  %v1612_v39 = vld [vmem:[#allocation2 + $0xd0] sm:$0xff] }
 0x254   : > { %v1534_v19 = vstv %s1528_s29  ;;  %v1550_v21 = vstv %s1544_s4  ;;  %s1671_s23 = sadd.s32 10, %s3267_s26  ;;  %s3292_s13 = sld [smem:[#allocation3 + %s1623_s20]]  ;;  %v1613_v6 = vld [vmem:[#allocation2 + $0xd8] sm:$0x7f] }
 0x255   : > { %v1535_v23 = vmul.f32 %v1534_v19, %v1530_v8  ;;  %v1536_v24 = vmul.f32 %v1534_v19, %v1531_v9  ;;  %v1537_v25 = vmul.f32 %v1534_v19, %v1532_v11  ;;  %v1538_v30 = vmul.f32 %v1534_v19, %v1533_v12  ;;  %s3294_s25 = sld [smem:[#allocation3 + %s1639_s21]]  ;;  %s1687_s29 = sadd.s32 11, %s3267_s26 }
 0x256   : > { %v1551_v31 = vmul.f32 %v1550_v21, %v1546_v41  ;;  %v1552_v32 = vmul.f32 %v1550_v21, %v1547_v16  ;;  %v1553_v33 = vmul.f32 %v1550_v21, %v1548_v17  ;;  %v1554_v34 = vmul.f32 %v1550_v21, %v1549_v18  ;;  %s3296_s27 = sld [smem:[#allocation3 + %s1655_s22]]  ;;  %s1703_s30 = sadd.s32 12, %s3267_s26  ;;  %v1626_v17 = vld [vmem:[#allocation2 + $0xe0] sm:$0xff]  ;;  %v1627_v18 = vld [vmem:[#allocation2 + $0xe8] sm:$0xff] }
 0x257   : > { %v1539_v35 = vadd.f32 %v1535_v23, %v1519_v13  ;;  %v1540_v36 = vadd.f32 %v1536_v24, %v1520_v46  ;;  %v1541_v37 = vadd.f32 %v1537_v25, %v1521_v14  ;;  %v1542_v38 = vadd.f32 %v1538_v30, %v1522_v15  ;;  %s3298_s28 = sld [smem:[#allocation3 + %s1671_s23]]  ;;  %s1719_s4 = sadd.s32 13, %s3267_s26  ;;  %v1628_v25 = vld [vmem:[#allocation2 + $0xf0] sm:$0xff]  ;;  %v1629_v30 = vld [vmem:[#allocation2 + $0xf8] sm:$0x7f] }
 0x258   : > { %v1566_v42 = vstv %s3273_s6  ;;  %v1582_v44 = vstv %s3276_s8  ;;  %v1598_v22 = vstv %s3279_s10  ;;  %v1614_v20 = vstv %s3282_s17  ;;  %s1735_s5 = sadd.s32 14, %s3267_s26  ;;  %s3308_s6 = sld [smem:[#allocation3 + %s1687_s29]] }
 0x259   : > { %v1555_v45 = vadd.f32 %v1551_v31, %v1539_v35  ;;  %v1556_v47 = vadd.f32 %v1552_v32, %v1540_v36  ;;  %v1557_v48 = vadd.f32 %v1553_v33, %v1541_v37  ;;  %v1558_v49 = vadd.f32 %v1554_v34, %v1542_v38  ;;  %v1642_v31 = vld [vmem:[#allocation2 + $0x100] sm:$0xff]  ;;  %v1643_v33 = vld [vmem:[#allocation2 + $0x108] sm:$0xff]  ;;  %v1644_v34 = vld [vmem:[#allocation2 + $0x110] sm:$0xff]  ;;  %s3310_s7 = sld [smem:[#allocation3 + %s1703_s30]]  ;;  %s1751_s10 = sadd.s32 15, %s3267_s26 }
 0x25a   : > { %v1567_v53 = vmul.f32 %v1566_v42, %v1562_v52  ;;  %v1568_v26 = vmul.f32 %v1566_v42, %v1563_v50  ;;  %v1569_v27 = vmul.f32 %v1566_v42, %v1564_v40  ;;  %v1570_v54 = vmul.f32 %v1566_v42, %v1565_v63  ;;  %v1645_v52 = vld [vmem:[#allocation2 + $0x118] sm:$0x7f]  ;;  %s3312_s8 = sld [smem:[#allocation3 + %s1719_s4]]  ;;  %s1767_s11 = sadd.s32 16, %s3267_s26 }
 0x25b   : > { %v1583_v57 = vmul.f32 %v1582_v44, %v1578_v0  ;;  %v1584_v29 = vmul.f32 %v1582_v44, %v1579_v4  ;;  %v1585_v58 = vmul.f32 %v1582_v44, %v1580_v43  ;;  %v1586_v59 = vmul.f32 %v1582_v44, %v1581_v5  ;;  %v1658_v0 = vld [vmem:[#allocation2 + $0x120] sm:$0xff]  ;;  %s3314_s9 = sld [smem:[#allocation3 + %s1735_s5]]  ;;  %v1659_v44 = vld [vmem:[#allocation2 + $0x128] sm:$0xff]  ;;  %s1783_s17 = sadd.s32 17, %s3267_s26 }
 0x25c   : > { %v1571_v61 = vadd.f32 %v1567_v53, %v1555_v45  ;;  %v1572_v62 = vadd.f32 %v1568_v26, %v1556_v47  ;;  %v1573_v1 = vadd.f32 %v1569_v27, %v1557_v48  ;;  %v1574_v2 = vadd.f32 %v1570_v54, %v1558_v49  ;;  %s1799_s20 = sadd.s32 18, %s3267_s26  ;;  %s3324_s21 = sld [smem:[#allocation3 + %s1751_s10]] }
 0x25d   : > { %v1599_v7 = vmul.f32 %v1598_v22, %v1594_v51  ;;  %v1600_v8 = vmul.f32 %v1598_v22, %v1595_v55  ;;  %v1601_v9 = vmul.f32 %v1598_v22, %v1596_v56  ;;  %v1602_v10 = vmul.f32 %v1598_v22, %v1597_v28  ;;  %v1660_v22 = vld [vmem:[#allocation2 + $0x130] sm:$0xff]  ;;  %v1674_v51 = vld [vmem:[#allocation2 + $0x140] sm:$0xff]  ;;  %v1675_v55 = vld [vmem:[#allocation2 + $0x148] sm:$0xff]  ;;  %s3326_s22 = sld [smem:[#allocation3 + %s1767_s11]]  ;;  %s1863_s29 = sadd.s32 22, %s3267_s26 }
 0x25e   : > { %v1587_v11 = vadd.f32 %v1583_v57, %v1571_v61  ;;  %v1588_v12 = vadd.f32 %v1584_v29, %v1572_v62  ;;  %v1589_v41 = vadd.f32 %v1585_v58, %v1573_v1  ;;  %v1590_v13 = vadd.f32 %v1586_v59, %v1574_v2  ;;  %v1676_v56 = vld [vmem:[#allocation2 + $0x150] sm:$0xff]  ;;  %v1677_v28 = vld [vmem:[#allocation2 + $0x158] sm:$0x7f]  ;;  %s3328_s23 = sld [smem:[#allocation3 + %s1783_s17]]  ;;  %s1927_s10 = sadd.s32 26, %s3267_s26 }
 0x25f   : > { %v1615_v46 = vmul.f32 %v1614_v20, %v1610_v60  ;;  %v1616_v14 = vmul.f32 %v1614_v20, %v1611_v3  ;;  %v1617_v15 = vmul.f32 %v1614_v20, %v1612_v39  ;;  %v1618_v16 = vmul.f32 %v1614_v20, %v1613_v6  ;;  %v1661_v20 = vld [vmem:[#allocation2 + $0x138] sm:$0x7f] }
 0x260   : > { %v1603_v19 = vadd.f32 %v1599_v7, %v1587_v11  ;;  %v1604_v21 = vadd.f32 %v1600_v8, %v1588_v12  ;;  %v1605_v23 = vadd.f32 %v1601_v9, %v1589_v41  ;;  %v1606_v24 = vadd.f32 %v1602_v10, %v1590_v13  ;;  %v1690_v7 = vld [vmem:[#allocation2 + $0x160] sm:$0xff]  ;;  %v1691_v8 = vld [vmem:[#allocation2 + $0x168] sm:$0xff]  ;;  %v1692_v41 = vld [vmem:[#allocation2 + $0x170] sm:$0xff] }
 0x261   : > { %v1630_v32 = vstv %s3292_s13  ;;  %v1646_v50 = vstv %s3294_s25  ;;  %v1662_v35 = vstv %s3296_s27  ;;  %v1678_v36 = vstv %s3298_s28  ;;  %v1693_v13 = vld [vmem:[#allocation2 + $0x178] sm:$0x7f]  ;;  %s3330_s13 = sld [smem:[#allocation3 + %s1799_s20]]  ;;  %s1815_s25 = sadd.s32 19, %s3267_s26 }
 0x262   : > { %v1619_v37 = vadd.f32 %v1615_v46, %v1603_v19  ;;  %v1620_v38 = vadd.f32 %v1616_v14, %v1604_v21  ;;  %v1621_v40 = vadd.f32 %v1617_v15, %v1605_v23  ;;  %v1622_v63 = vadd.f32 %v1618_v16, %v1606_v24  ;;  %v1706_v46 = vld [vmem:[#allocation2 + $0x180] sm:$0xff]  ;;  %v1707_v15 = vld [vmem:[#allocation2 + $0x188] sm:$0xff]  ;;  %v1708_v16 = vld [vmem:[#allocation2 + $0x190] sm:$0xff]  ;;  %s1831_s27 = sadd.s32 20, %s3267_s26  ;;  %s1847_s28 = sadd.s32 21, %s3267_s26 }
 0x263   : > { %v1631_v42 = vmul.f32 %v1630_v32, %v1626_v17  ;;  %v1632_v4 = vmul.f32 %v1630_v32, %v1627_v18  ;;  %v1633_v43 = vmul.f32 %v1630_v32, %v1628_v25  ;;  %v1634_v5 = vmul.f32 %v1630_v32, %v1629_v30  ;;  %v1709_v17 = vld [vmem:[#allocation2 + $0x198] sm:$0x7f]  ;;  %s3340_s30 = sld [smem:[#allocation3 + %s1815_s25]]  ;;  %s1991_s25 = sadd.s32 30, %s3267_s26 }
 0x264   : > { %v1647_v45 = vmul.f32 %v1646_v50, %v1642_v31  ;;  %v1648_v47 = vmul.f32 %v1646_v50, %v1643_v33  ;;  %v1649_v48 = vmul.f32 %v1646_v50, %v1644_v34  ;;  %v1650_v49 = vmul.f32 %v1646_v50, %v1645_v52  ;;  %v1722_v31 = vld [vmem:[#allocation2 + $0x1a0] sm:$0xff]  ;;  %v1723_v50 = vld [vmem:[#allocation2 + $0x1a8] sm:$0xff]  ;;  %s3342_s4 = sld [smem:[#allocation3 + %s1831_s27]] }
 0x265   : > { %v1635_v53 = vadd.f32 %v1631_v42, %v1619_v37  ;;  %v1636_v26 = vadd.f32 %v1632_v4, %v1620_v38  ;;  %v1637_v27 = vadd.f32 %v1633_v43, %v1621_v40  ;;  %v1638_v54 = vadd.f32 %v1634_v5, %v1622_v63  ;;  %s3344_s5 = sld [smem:[#allocation3 + %s1847_s28]] }
 0x266   : > { %v1663_v57 = vmul.f32 %v1662_v35, %v1658_v0  ;;  %v1664_v29 = vmul.f32 %v1662_v35, %v1659_v44  ;;  %v1665_v58 = vmul.f32 %v1662_v35, %v1660_v22  ;;  %v1666_v59 = vmul.f32 %v1662_v35, %v1661_v20  ;;  %v1724_v35 = vld [vmem:[#allocation2 + $0x1b0] sm:$0xff]  ;;  %v1738_v0 = vld [vmem:[#allocation2 + $0x1c0] sm:$0xff]  ;;  %v1739_v44 = vld [vmem:[#allocation2 + $0x1c8] sm:$0xff] }
 0x267   : > { %v1651_v60 = vadd.f32 %v1647_v45, %v1635_v53  ;;  %v1652_v61 = vadd.f32 %v1648_v47, %v1636_v26  ;;  %v1653_v62 = vadd.f32 %v1649_v48, %v1637_v27  ;;  %v1654_v1 = vadd.f32 %v1650_v49, %v1638_v54  ;;  %v1740_v22 = vld [vmem:[#allocation2 + $0x1d0] sm:$0xff]  ;;  %v1741_v20 = vld [vmem:[#allocation2 + $0x1d8] sm:$0x7f] }
 0x268   : > { %v1679_v2 = vmul.f32 %v1678_v36, %v1674_v51  ;;  %v1680_v3 = vmul.f32 %v1678_v36, %v1675_v55  ;;  %v1681_v39 = vmul.f32 %v1678_v36, %v1676_v56  ;;  %v1682_v6 = vmul.f32 %v1678_v36, %v1677_v28  ;;  %v1725_v36 = vld [vmem:[#allocation2 + $0x1b8] sm:$0x7f] }
 0x269   : > { %v1667_v9 = vadd.f32 %v1663_v57, %v1651_v60  ;;  %v1668_v10 = vadd.f32 %v1664_v29, %v1652_v61  ;;  %v1669_v11 = vadd.f32 %v1665_v58, %v1653_v62  ;;  %v1670_v12 = vadd.f32 %v1666_v59, %v1654_v1  ;;  %v1754_v57 = vld [vmem:[#allocation2 + $0x1e0] sm:$0xff]  ;;  %v1755_v29 = vld [vmem:[#allocation2 + $0x1e8] sm:$0xff]  ;;  %v1756_v62 = vld [vmem:[#allocation2 + $0x1f0] sm:$0xff] }
 0x26a   : > { %v1694_v14 = vstv %s3308_s6  ;;  %v1710_v18 = vstv %s3310_s7  ;;  %v1726_v19 = vstv %s3312_s8  ;;  %v1742_v21 = vstv %s3314_s9  ;;  %v1757_v1 = vld [vmem:[#allocation2 + $0x1f8] sm:$0x7f]  ;;  %s3346_s6 = sld [smem:[#allocation3 + %s1863_s29]]  ;;  %s1879_s7 = sadd.s32 23, %s3267_s26 }
 0x26b   : > { %v1683_v23 = vadd.f32 %v1679_v2, %v1667_v9  ;;  %v1684_v24 = vadd.f32 %v1680_v3, %v1668_v10  ;;  %v1685_v25 = vadd.f32 %v1681_v39, %v1669_v11  ;;  %v1686_v30 = vadd.f32 %v1682_v6, %v1670_v12  ;;  %v1770_v2 = vld [vmem:[#allocation2 + $0x200] sm:$0xff]  ;;  %v1771_v39 = vld [vmem:[#allocation2 + $0x208] sm:$0xff]  ;;  %v1772_v6 = vld [vmem:[#allocation2 + $0x210] sm:$0xff]  ;;  %s1895_s8 = sadd.s32 24, %s3267_s26  ;;  %s1911_s9 = sadd.s32 25, %s3267_s26 }
 0x26c   : > { %v1695_v32 = vmul.f32 %v1694_v14, %v1690_v7  ;;  %v1696_v33 = vmul.f32 %v1694_v14, %v1691_v8  ;;  %v1697_v34 = vmul.f32 %v1694_v14, %v1692_v41  ;;  %v1698_v52 = vmul.f32 %v1694_v14, %v1693_v13  ;;  %v1773_v7 = vld [vmem:[#allocation2 + $0x218] sm:$0x7f]  ;;  %s3356_s11 = sld [smem:[#allocation3 + %s1879_s7]]  ;;  %s2055_s7 = sadd.s32 34, %s3267_s26 }
 0x26d   : > { %v1711_v37 = vmul.f32 %v1710_v18, %v1706_v46  ;;  %v1712_v38 = vmul.f32 %v1710_v18, %v1707_v15  ;;  %v1713_v40 = vmul.f32 %v1710_v18, %v1708_v16  ;;  %v1714_v63 = vmul.f32 %v1710_v18, %v1709_v17  ;;  %v1786_v46 = vld [vmem:[#allocation2 + $0x220] sm:$0xff]  ;;  %v1787_v18 = vld [vmem:[#allocation2 + $0x228] sm:$0xff]  ;;  %s3358_s17 = sld [smem:[#allocation3 + %s1895_s8]] }
 0x26e   : > { %v1699_v42 = vadd.f32 %v1695_v32, %v1683_v23  ;;  %v1700_v4 = vadd.f32 %v1696_v33, %v1684_v24  ;;  %v1701_v43 = vadd.f32 %v1697_v34, %v1685_v25  ;;  %v1702_v5 = vadd.f32 %v1698_v52, %v1686_v30  ;;  %s3360_s20 = sld [smem:[#allocation3 + %s1911_s9]] }
 0x26f   : > { %v1727_v45 = vmul.f32 %v1726_v19, %v1722_v31  ;;  %v1728_v47 = vmul.f32 %v1726_v19, %v1723_v50  ;;  %v1729_v48 = vmul.f32 %v1726_v19, %v1724_v35  ;;  %v1730_v49 = vmul.f32 %v1726_v19, %v1725_v36  ;;  %v1788_v19 = vld [vmem:[#allocation2 + $0x230] sm:$0xff]  ;;  %v1802_v31 = vld [vmem:[#allocation2 + $0x240] sm:$0xff]  ;;  %v1803_v50 = vld [vmem:[#allocation2 + $0x248] sm:$0xff] }
 0x270   : > { %v1715_v51 = vadd.f32 %v1711_v37, %v1699_v42  ;;  %v1716_v53 = vadd.f32 %v1712_v38, %v1700_v4  ;;  %v1717_v26 = vadd.f32 %v1713_v40, %v1701_v43  ;;  %v1718_v27 = vadd.f32 %v1714_v63, %v1702_v5  ;;  %v1804_v35 = vld [vmem:[#allocation2 + $0x250] sm:$0xff]  ;;  %v1805_v36 = vld [vmem:[#allocation2 + $0x258] sm:$0x7f] }
 0x271   : > { %v1743_v54 = vmul.f32 %v1742_v21, %v1738_v0  ;;  %v1744_v55 = vmul.f32 %v1742_v21, %v1739_v44  ;;  %v1745_v56 = vmul.f32 %v1742_v21, %v1740_v22  ;;  %v1746_v28 = vmul.f32 %v1742_v21, %v1741_v20  ;;  %v1789_v21 = vld [vmem:[#allocation2 + $0x238] sm:$0x7f] }
 0x272   : > { %v1731_v58 = vadd.f32 %v1727_v45, %v1715_v51  ;;  %v1732_v59 = vadd.f32 %v1728_v47, %v1716_v53  ;;  %v1733_v60 = vadd.f32 %v1729_v48, %v1717_v26  ;;  %v1734_v61 = vadd.f32 %v1730_v49, %v1718_v27  ;;  %v1818_v45 = vld [vmem:[#allocation2 + $0x260] sm:$0xff]  ;;  %v1819_v47 = vld [vmem:[#allocation2 + $0x268] sm:$0xff]  ;;  %v1820_v26 = vld [vmem:[#allocation2 + $0x270] sm:$0xff] }
 0x273   : > { %v1758_v3 = vstv %s3324_s21  ;;  %v1774_v8 = vstv %s3326_s22  ;;  %v1790_v9 = vstv %s3328_s23  ;;  %v1806_v10 = vstv %s3330_s13  ;;  %v1821_v27 = vld [vmem:[#allocation2 + $0x278] sm:$0x7f]  ;;  %s3362_s21 = sld [smem:[#allocation3 + %s1927_s10]]  ;;  %s1943_s22 = sadd.s32 27, %s3267_s26 }
 0x274   : > { %v1747_v11 = vadd.f32 %v1743_v54, %v1731_v58  ;;  %v1748_v12 = vadd.f32 %v1744_v55, %v1732_v59  ;;  %v1749_v41 = vadd.f32 %v1745_v56, %v1733_v60  ;;  %v1750_v13 = vadd.f32 %v1746_v28, %v1734_v61  ;;  %v1834_v54 = vld [vmem:[#allocation2 + $0x280] sm:$0xff]  ;;  %v1835_v56 = vld [vmem:[#allocation2 + $0x288] sm:$0xff]  ;;  %v1836_v28 = vld [vmem:[#allocation2 + $0x290] sm:$0xff]  ;;  %s1959_s23 = sadd.s32 28, %s3267_s26  ;;  %s1975_s13 = sadd.s32 29, %s3267_s26 }
 0x275   : > { %v1759_v14 = vmul.f32 %v1758_v3, %v1754_v57  ;;  %v1760_v15 = vmul.f32 %v1758_v3, %v1755_v29  ;;  %v1761_v16 = vmul.f32 %v1758_v3, %v1756_v62  ;;  %v1762_v17 = vmul.f32 %v1758_v3, %v1757_v1  ;;  %v1837_v57 = vld [vmem:[#allocation2 + $0x298] sm:$0x7f]  ;;  %s3372_s27 = sld [smem:[#allocation3 + %s1943_s22]] }
 0x276   : > { %v1775_v23 = vmul.f32 %v1774_v8, %v1770_v2  ;;  %v1776_v24 = vmul.f32 %v1774_v8, %v1771_v39  ;;  %v1777_v25 = vmul.f32 %v1774_v8, %v1772_v6  ;;  %v1778_v30 = vmul.f32 %v1774_v8, %v1773_v7  ;;  %v1850_v2 = vld [vmem:[#allocation2 + $0x2a0] sm:$0xff]  ;;  %v1851_v8 = vld [vmem:[#allocation2 + $0x2a8] sm:$0xff]  ;;  %s3374_s28 = sld [smem:[#allocation3 + %s1959_s23]] }
 0x277   : > { %v1763_v32 = vadd.f32 %v1759_v14, %v1747_v11  ;;  %v1764_v33 = vadd.f32 %v1760_v15, %v1748_v12  ;;  %v1765_v34 = vadd.f32 %v1761_v16, %v1749_v41  ;;  %v1766_v52 = vadd.f32 %v1762_v17, %v1750_v13  ;;  %s3376_s29 = sld [smem:[#allocation3 + %s1975_s13]] }
 0x278   : > { %v1791_v37 = vmul.f32 %v1790_v9, %v1786_v46  ;;  %v1792_v38 = vmul.f32 %v1790_v9, %v1787_v18  ;;  %v1793_v40 = vmul.f32 %v1790_v9, %v1788_v19  ;;  %v1794_v63 = vmul.f32 %v1790_v9, %v1789_v21  ;;  %v1852_v9 = vld [vmem:[#allocation2 + $0x2b0] sm:$0xff]  ;;  %v1866_v46 = vld [vmem:[#allocation2 + $0x2c0] sm:$0xff]  ;;  %v1867_v18 = vld [vmem:[#allocation2 + $0x2c8] sm:$0xff] }
 0x279   : > { %v1779_v0 = vadd.f32 %v1775_v23, %v1763_v32  ;;  %v1780_v42 = vadd.f32 %v1776_v24, %v1764_v33  ;;  %v1781_v4 = vadd.f32 %v1777_v25, %v1765_v34  ;;  %v1782_v43 = vadd.f32 %v1778_v30, %v1766_v52  ;;  %v1868_v19 = vld [vmem:[#allocation2 + $0x2d0] sm:$0xff]  ;;  %v1869_v21 = vld [vmem:[#allocation2 + $0x2d8] sm:$0x7f] }
 0x27a   : > { %v1807_v5 = vmul.f32 %v1806_v10, %v1802_v31  ;;  %v1808_v44 = vmul.f32 %v1806_v10, %v1803_v50  ;;  %v1809_v22 = vmul.f32 %v1806_v10, %v1804_v35  ;;  %v1810_v20 = vmul.f32 %v1806_v10, %v1805_v36  ;;  %v1853_v10 = vld [vmem:[#allocation2 + $0x2b8] sm:$0x7f] }
 0x27b   : > { %v1795_v48 = vadd.f32 %v1791_v37, %v1779_v0  ;;  %v1796_v49 = vadd.f32 %v1792_v38, %v1780_v42  ;;  %v1797_v51 = vadd.f32 %v1793_v40, %v1781_v4  ;;  %v1798_v53 = vadd.f32 %v1794_v63, %v1782_v43  ;;  %v1882_v37 = vld [vmem:[#allocation2 + $0x2e0] sm:$0xff]  ;;  %v1883_v38 = vld [vmem:[#allocation2 + $0x2e8] sm:$0xff]  ;;  %v1884_v4 = vld [vmem:[#allocation2 + $0x2f0] sm:$0xff] }
 0x27c   : > { %v1822_v55 = vstv %s3340_s30  ;;  %v1838_v29 = vstv %s3342_s4  ;;  %v1854_v58 = vstv %s3344_s5  ;;  %v1870_v59 = vstv %s3346_s6  ;;  %v1885_v43 = vld [vmem:[#allocation2 + $0x2f8] sm:$0x7f]  ;;  %s3378_s30 = sld [smem:[#allocation3 + %s1991_s25]]  ;;  %s2007_s4 = sadd.s32 31, %s3267_s26 }
 0x27d   : > { %v1811_v60 = vadd.f32 %v1807_v5, %v1795_v48  ;;  %v1812_v61 = vadd.f32 %v1808_v44, %v1796_v49  ;;  %v1813_v62 = vadd.f32 %v1809_v22, %v1797_v51  ;;  %v1814_v1 = vadd.f32 %v1810_v20, %v1798_v53  ;;  %v1898_v5 = vld [vmem:[#allocation2 + $0x300] sm:$0xff]  ;;  %v1899_v22 = vld [vmem:[#allocation2 + $0x308] sm:$0xff]  ;;  %v1900_v20 = vld [vmem:[#allocation2 + $0x310] sm:$0xff]  ;;  %s2023_s5 = sadd.s32 32, %s3267_s26  ;;  %s2039_s6 = sadd.s32 33, %s3267_s26 }
 0x27e   : > { %v1823_v3 = vmul.f32 %v1822_v55, %v1818_v45  ;;  %v1824_v39 = vmul.f32 %v1822_v55, %v1819_v47  ;;  %v1825_v6 = vmul.f32 %v1822_v55, %v1820_v26  ;;  %v1826_v7 = vmul.f32 %v1822_v55, %v1821_v27  ;;  %v1901_v45 = vld [vmem:[#allocation2 + $0x318] sm:$0x7f]  ;;  %s3388_s8 = sld [smem:[#allocation3 + %s2007_s4]] }
 0x27f   : > { %v1839_v11 = vmul.f32 %v1838_v29, %v1834_v54  ;;  %v1840_v12 = vmul.f32 %v1838_v29, %v1835_v56  ;;  %v1841_v41 = vmul.f32 %v1838_v29, %v1836_v28  ;;  %v1842_v13 = vmul.f32 %v1838_v29, %v1837_v57  ;;  %v1914_v54 = vld [vmem:[#allocation2 + $0x320] sm:$0xff]  ;;  %v1915_v29 = vld [vmem:[#allocation2 + $0x328] sm:$0xff]  ;;  %s3390_s9 = sld [smem:[#allocation3 + %s2023_s5]] }
 0x280   : > { %v1827_v14 = vadd.f32 %v1823_v3, %v1811_v60  ;;  %v1828_v15 = vadd.f32 %v1824_v39, %v1812_v61  ;;  %v1829_v16 = vadd.f32 %v1825_v6, %v1813_v62  ;;  %v1830_v17 = vadd.f32 %v1826_v7, %v1814_v1  ;;  %s3392_s10 = sld [smem:[#allocation3 + %s2039_s6]] }
 0x281   : > { %v1855_v23 = vmul.f32 %v1854_v58, %v1850_v2  ;;  %v1856_v24 = vmul.f32 %v1854_v58, %v1851_v8  ;;  %v1857_v25 = vmul.f32 %v1854_v58, %v1852_v9  ;;  %v1858_v30 = vmul.f32 %v1854_v58, %v1853_v10  ;;  %v1916_v58 = vld [vmem:[#allocation2 + $0x330] sm:$0xff]  ;;  %v1930_v2 = vld [vmem:[#allocation2 + $0x340] sm:$0xff]  ;;  %v1931_v8 = vld [vmem:[#allocation2 + $0x348] sm:$0xff] }
 0x282   : > { %v1843_v31 = vadd.f32 %v1839_v11, %v1827_v14  ;;  %v1844_v32 = vadd.f32 %v1840_v12, %v1828_v15  ;;  %v1845_v33 = vadd.f32 %v1841_v41, %v1829_v16  ;;  %v1846_v34 = vadd.f32 %v1842_v13, %v1830_v17  ;;  %v1932_v9 = vld [vmem:[#allocation2 + $0x350] sm:$0xff]  ;;  %v1933_v10 = vld [vmem:[#allocation2 + $0x358] sm:$0x7f] }
 0x283   : > { %v1871_v52 = vmul.f32 %v1870_v59, %v1866_v46  ;;  %v1872_v50 = vmul.f32 %v1870_v59, %v1867_v18  ;;  %v1873_v35 = vmul.f32 %v1870_v59, %v1868_v19  ;;  %v1874_v36 = vmul.f32 %v1870_v59, %v1869_v21  ;;  %v1917_v59 = vld [vmem:[#allocation2 + $0x338] sm:$0x7f] }
 0x284   : > { %v1859_v40 = vadd.f32 %v1855_v23, %v1843_v31  ;;  %v1860_v63 = vadd.f32 %v1856_v24, %v1844_v32  ;;  %v1861_v0 = vadd.f32 %v1857_v25, %v1845_v33  ;;  %v1862_v42 = vadd.f32 %v1858_v30, %v1846_v34  ;;  %v1946_v23 = vld [vmem:[#allocation2 + $0x360] sm:$0xff]  ;;  %v1947_v24 = vld [vmem:[#allocation2 + $0x368] sm:$0xff]  ;;  %v1948_v33 = vld [vmem:[#allocation2 + $0x370] sm:$0xff] }
 0x285   : > { %v1886_v44 = vstv %s3356_s11  ;;  %v1902_v47 = vstv %s3358_s17  ;;  %v1918_v48 = vstv %s3360_s20  ;;  %v1934_v49 = vstv %s3362_s21  ;;  %v1949_v34 = vld [vmem:[#allocation2 + $0x378] sm:$0x7f]  ;;  %s3394_s11 = sld [smem:[#allocation3 + %s2055_s7]]  ;;  %s2071_s17 = sadd.s32 35, %s3267_s26 }
 0x286   : > { %v1875_v51 = vadd.f32 %v1871_v52, %v1859_v40  ;;  %v1876_v53 = vadd.f32 %v1872_v50, %v1860_v63  ;;  %v1877_v26 = vadd.f32 %v1873_v35, %v1861_v0  ;;  %v1878_v27 = vadd.f32 %v1874_v36, %v1862_v42  ;;  %v1962_v52 = vld [vmem:[#allocation2 + $0x380] sm:$0xff]  ;;  %v1963_v35 = vld [vmem:[#allocation2 + $0x388] sm:$0xff]  ;;  %v1964_v36 = vld [vmem:[#allocation2 + $0x390] sm:$0xff]  ;;  %s3401_s26 = sld [smem:[#allocation3 + %s2071_s17]] }
 0x287   : > { %v1887_v55 = vmul.f32 %v1886_v44, %v1882_v37  ;;  %v1888_v56 = vmul.f32 %v1886_v44, %v1883_v38  ;;  %v1889_v28 = vmul.f32 %v1886_v44, %v1884_v4  ;;  %v1890_v57 = vmul.f32 %v1886_v44, %v1885_v43  ;;  %v1965_v37 = vld [vmem:[#allocation2 + $0x398] sm:$0x7f]  ;;  %s2087_s20 = sld [smem:[#allocation5 + %s2546_s12]] }
 0x288   : > { %v1903_v60 = vmul.f32 %v1902_v47, %v1898_v5  ;;  %v1904_v61 = vmul.f32 %v1902_v47, %v1899_v22  ;;  %v1905_v62 = vmul.f32 %v1902_v47, %v1900_v20  ;;  %v1906_v1 = vmul.f32 %v1902_v47, %v1901_v45  ;;  %v1978_v5 = vld [vmem:[#allocation2 + $0x3a0] sm:$0xff]  ;;  %v1979_v47 = vld [vmem:[#allocation2 + $0x3a8] sm:$0xff] }
 0x289   : > { %v1891_v3 = vadd.f32 %v1887_v55, %v1875_v51  ;;  %v1892_v39 = vadd.f32 %v1888_v56, %v1876_v53  ;;  %v1893_v6 = vadd.f32 %v1889_v28, %v1877_v26  ;;  %v1894_v7 = vadd.f32 %v1890_v57, %v1878_v27 }
 0x28a   : > { %v1919_v11 = vmul.f32 %v1918_v48, %v1914_v54  ;;  %v1920_v12 = vmul.f32 %v1918_v48, %v1915_v29  ;;  %v1921_v41 = vmul.f32 %v1918_v48, %v1916_v58  ;;  %v1922_v13 = vmul.f32 %v1918_v48, %v1917_v59  ;;  %v1980_v48 = vld [vmem:[#allocation2 + $0x3b0] sm:$0xff]  ;;  %v1994_v54 = vld [vmem:[#allocation2 + $0x3c0] sm:$0xff]  ;;  %v1995_v29 = vld [vmem:[#allocation2 + $0x3c8] sm:$0xff] }
 0x28b   : > { %v1907_v46 = vadd.f32 %v1903_v60, %v1891_v3  ;;  %v1908_v14 = vadd.f32 %v1904_v61, %v1892_v39  ;;  %v1909_v15 = vadd.f32 %v1905_v62, %v1893_v6  ;;  %v1910_v16 = vadd.f32 %v1906_v1, %v1894_v7  ;;  %v1996_v58 = vld [vmem:[#allocation2 + $0x3d0] sm:$0xff]  ;;  %v1997_v59 = vld [vmem:[#allocation2 + $0x3d8] sm:$0x7f] }
 0x28c   : > { %v1935_v17 = vmul.f32 %v1934_v49, %v1930_v2  ;;  %v1936_v18 = vmul.f32 %v1934_v49, %v1931_v8  ;;  %v1937_v19 = vmul.f32 %v1934_v49, %v1932_v9  ;;  %v1938_v21 = vmul.f32 %v1934_v49, %v1933_v10  ;;  %v1981_v49 = vld [vmem:[#allocation2 + $0x3b8] sm:$0x7f] }
 0x28d   : > { %v1923_v25 = vadd.f32 %v1919_v11, %v1907_v46  ;;  %v1924_v30 = vadd.f32 %v1920_v12, %v1908_v14  ;;  %v1925_v31 = vadd.f32 %v1921_v41, %v1909_v15  ;;  %v1926_v32 = vadd.f32 %v1922_v13, %v1910_v16  ;;  %v2010_v11 = vld [vmem:[#allocation2 + $0x3e0] sm:$0xff]  ;;  %v2011_v12 = vld [vmem:[#allocation2 + $0x3e8] sm:$0xff]  ;;  %v2012_v15 = vld [vmem:[#allocation2 + $0x3f0] sm:$0xff] }
 0x28e   : > { %v1950_v50 = vstv %s3372_s27  ;;  %v1966_v38 = vstv %s3374_s28  ;;  %v1982_v40 = vstv %s3376_s29  ;;  %v1998_v63 = vstv %s3378_s30  ;;  %v2013_v16 = vld [vmem:[#allocation2 + $0x3f8] sm:$0x7f] }
 0x28f   : > { %v1939_v0 = vadd.f32 %v1935_v17, %v1923_v25  ;;  %v1940_v42 = vadd.f32 %v1936_v18, %v1924_v30  ;;  %v1941_v4 = vadd.f32 %v1937_v19, %v1925_v31  ;;  %v1942_v43 = vadd.f32 %v1938_v21, %v1926_v32  ;;  %v2026_v17 = vld [vmem:[#allocation2 + $0x400] sm:$0xff]  ;;  %v2027_v19 = vld [vmem:[#allocation2 + $0x408] sm:$0xff]  ;;  %v2028_v21 = vld [vmem:[#allocation2 + $0x410] sm:$0xff] }
 0x290   : > { %v1951_v44 = vmul.f32 %v1950_v50, %v1946_v23  ;;  %v1952_v22 = vmul.f32 %v1950_v50, %v1947_v24  ;;  %v1953_v20 = vmul.f32 %v1950_v50, %v1948_v33  ;;  %v1954_v45 = vmul.f32 %v1950_v50, %v1949_v34  ;;  %v2029_v23 = vld [vmem:[#allocation2 + $0x418] sm:$0x7f] }
 0x291   : > { %v1967_v51 = vmul.f32 %v1966_v38, %v1962_v52  ;;  %v1968_v53 = vmul.f32 %v1966_v38, %v1963_v35  ;;  %v1969_v26 = vmul.f32 %v1966_v38, %v1964_v36  ;;  %v1970_v27 = vmul.f32 %v1966_v38, %v1965_v37  ;;  %v2042_v52 = vld [vmem:[#allocation2 + $0x420] sm:$0xff]  ;;  %v2043_v38 = vld [vmem:[#allocation2 + $0x428] sm:$0xff] }
 0x292   : > { %v1955_v55 = vadd.f32 %v1951_v44, %v1939_v0  ;;  %v1956_v56 = vadd.f32 %v1952_v22, %v1940_v42  ;;  %v1957_v28 = vadd.f32 %v1953_v20, %v1941_v4  ;;  %v1958_v57 = vadd.f32 %v1954_v45, %v1942_v43 }
 0x293   : > { %v1983_v60 = vmul.f32 %v1982_v40, %v1978_v5  ;;  %v1984_v61 = vmul.f32 %v1982_v40, %v1979_v47  ;;  %v1985_v62 = vmul.f32 %v1982_v40, %v1980_v48  ;;  %v1986_v1 = vmul.f32 %v1982_v40, %v1981_v49  ;;  %v2044_v40 = vld [vmem:[#allocation2 + $0x430] sm:$0xff]  ;;  %v2058_v5 = vld [vmem:[#allocation2 + $0x440] sm:$0xff]  ;;  %v2059_v47 = vld [vmem:[#allocation2 + $0x448] sm:$0xff] }
 0x294   : > { %v1971_v2 = vadd.f32 %v1967_v51, %v1955_v55  ;;  %v1972_v3 = vadd.f32 %v1968_v53, %v1956_v56  ;;  %v1973_v39 = vadd.f32 %v1969_v26, %v1957_v28  ;;  %v1974_v6 = vadd.f32 %v1970_v27, %v1958_v57  ;;  %v2060_v48 = vld [vmem:[#allocation2 + $0x450] sm:$0xff]  ;;  %v2061_v49 = vld [vmem:[#allocation2 + $0x458] sm:$0x7f] }
 0x295   : > { %v1999_v7 = vmul.f32 %v1998_v63, %v1994_v54  ;;  %v2000_v8 = vmul.f32 %v1998_v63, %v1995_v29  ;;  %v2001_v9 = vmul.f32 %v1998_v63, %v1996_v58  ;;  %v2002_v10 = vmul.f32 %v1998_v63, %v1997_v59  ;;  %v2045_v63 = vld [vmem:[#allocation2 + $0x438] sm:$0x7f] }
 0x296   : > { %v1987_v41 = vadd.f32 %v1983_v60, %v1971_v2  ;;  %v1988_v13 = vadd.f32 %v1984_v61, %v1972_v3  ;;  %v1989_v46 = vadd.f32 %v1985_v62, %v1973_v39  ;;  %v1990_v14 = vadd.f32 %v1986_v1, %v1974_v6  ;;  %v2074_v60 = vld [vmem:[#allocation2 + $0x460] sm:$0xff]  ;;  %v2075_v3 = vld [vmem:[#allocation2 + $0x468] sm:$0xff]  ;;  %v2076_v39 = vld [vmem:[#allocation2 + $0x470] sm:$0xff] }
 0x297   : > { %v2014_v18 = vstv %s3388_s8  ;;  %v2030_v24 = vstv %s3390_s9  ;;  %v2046_v25 = vstv %s3392_s10  ;;  %v2062_v30 = vstv %s3394_s11  ;;  %v2077_v6 = vld [vmem:[#allocation2 + $0x478] sm:$0x7f] }
 0x298   : > { %v2003_v31 = vadd.f32 %v1999_v7, %v1987_v41  ;;  %v2004_v32 = vadd.f32 %v2000_v8, %v1988_v13  ;;  %v2005_v33 = vadd.f32 %v2001_v9, %v1989_v46  ;;  %v2006_v34 = vadd.f32 %v2002_v10, %v1990_v14 }
 0x299   : > { %v2015_v50 = vmul.f32 %v2014_v18, %v2010_v11  ;;  %v2016_v35 = vmul.f32 %v2014_v18, %v2011_v12  ;;  %v2017_v36 = vmul.f32 %v2014_v18, %v2012_v15  ;;  %v2018_v37 = vmul.f32 %v2014_v18, %v2013_v16 }
 0x29a   : > { %v2031_v0 = vmul.f32 %v2030_v24, %v2026_v17  ;;  %v2032_v42 = vmul.f32 %v2030_v24, %v2027_v19  ;;  %v2033_v4 = vmul.f32 %v2030_v24, %v2028_v21  ;;  %v2034_v43 = vmul.f32 %v2030_v24, %v2029_v23 }
 0x29b   : > { %v2019_v44 = vadd.f32 %v2015_v50, %v2003_v31  ;;  %v2020_v22 = vadd.f32 %v2016_v35, %v2004_v32  ;;  %v2021_v20 = vadd.f32 %v2017_v36, %v2005_v33  ;;  %v2022_v45 = vadd.f32 %v2018_v37, %v2006_v34 }
 0x29c   : > { %v2047_v51 = vmul.f32 %v2046_v25, %v2042_v52  ;;  %v2048_v53 = vmul.f32 %v2046_v25, %v2043_v38  ;;  %v2049_v26 = vmul.f32 %v2046_v25, %v2044_v40  ;;  %v2050_v27 = vmul.f32 %v2046_v25, %v2045_v63 }
 0x29d   : > { %v2035_v54 = vadd.f32 %v2031_v0, %v2019_v44  ;;  %v2036_v55 = vadd.f32 %v2032_v42, %v2020_v22  ;;  %v2037_v56 = vadd.f32 %v2033_v4, %v2021_v20  ;;  %v2038_v28 = vadd.f32 %v2034_v43, %v2022_v45 }
 0x29e   : > { %v2063_v57 = vmul.f32 %v2062_v30, %v2058_v5  ;;  %v2064_v29 = vmul.f32 %v2062_v30, %v2059_v47  ;;  %v2065_v58 = vmul.f32 %v2062_v30, %v2060_v48  ;;  %v2066_v59 = vmul.f32 %v2062_v30, %v2061_v49 }
 0x29f   : > { %v2051_v61 = vadd.f32 %v2047_v51, %v2035_v54  ;;  %v2052_v62 = vadd.f32 %v2048_v53, %v2036_v55  ;;  %v2053_v1 = vadd.f32 %v2049_v26, %v2037_v56  ;;  %v2054_v2 = vadd.f32 %v2050_v27, %v2038_v28 }
 0x2a0   : > { %v2078_v7 = vstv %s3401_s26  ;;  %v2088_v14 = vstv %s2087_s20 }
 0x2a1   : > { %v2067_v8 = vadd.f32 %v2063_v57, %v2051_v61  ;;  %v2068_v9 = vadd.f32 %v2064_v29, %v2052_v62  ;;  %v2069_v10 = vadd.f32 %v2065_v58, %v2053_v1  ;;  %v2070_v11 = vadd.f32 %v2066_v59, %v2054_v2 }
 0x2a2   : > { %v2079_v12 = vmul.f32 %v2078_v7, %v2074_v60  ;;  %v2080_v41 = vmul.f32 %v2078_v7, %v2075_v3  ;;  %v2081_v13 = vmul.f32 %v2078_v7, %v2076_v39  ;;  %v2082_v46 = vmul.f32 %v2078_v7, %v2077_v6 }
 0x2a4   : > { %v2083_v15 = vadd.f32 %v2079_v12, %v2067_v8  ;;  %v2084_v16 = vadd.f32 %v2080_v41, %v2068_v9  ;;  %v2085_v17 = vadd.f32 %v2081_v13, %v2069_v10  ;;  %v2086_v18 = vadd.f32 %v2082_v46, %v2070_v11 }
 0x2a6   : > { %v2089_v19 = vadd.f32 %v2088_v14, %v2083_v15  ;;  %v2090_v21 = vadd.f32 %v2088_v14, %v2084_v16  ;;  %v2091_v23 = vadd.f32 %v2088_v14, %v2085_v17  ;;  %v2092_v24 = vadd.f32 %v2088_v14, %v2086_v18 }
 0x2a8   : > { %v2093_v25 = vmax.f32 %v2089_v19, 0.0  ;;  %v2094_v30 = vmax.f32 %v2090_v21, 0.0  ;;  %v2095_v31 = vmax.f32 %v2091_v23, 0.0  ;;  %v2096_v32 = vmax.f32 %v2092_v24, 0.0 }
 0x2aa   : > { %2097 = vst [vmem:[%s2673_s24] sm:$0xff] %v2093_v25  ;;  %2098 = vst [vmem:[%s2673_s24 + $0x8] sm:$0xff] %v2094_v30 }
 0x2ab   : > { %2099 = vst [vmem:[%s2673_s24 + $0x10] sm:$0xff] %v2095_v31  ;;  %2100 = vst [vmem:[%s2673_s24 + $0x18] sm:$0x7f] %v2096_v32 }
 0x2ac PF: > { %s15_s16 = sadd.s32 1, %s2562_s16   ;;  %s3436_s12 = smov %s2554_s14 }
 0x2ad   : > { %p12_p9 = scmp.ge.s32.totalorder %s15_s16, 18   ;;  %s3437_s13 = smov %s2558_s15 }
 0x2ae   : > { %s3438_s14 = smov %s3441_s18  ;;  %s3439_s15 = smov %s3445_s19 }
 0x2af   :  { %14 = sbr.rel (!%p12_p9) target bundleno = 4 (0x4), region = 148 }
 0x2b6   :  { %2130 = vsyncpa [#allocation4], 1 }
 0x2b7   :  { %2132 = vsyncpa [#allocation4 + $0x1], 1 }
 0x2b8   :  { %2133 = vsyncpa [#allocation6], 1 }

</bundles_post_ra>
